<compile_context>
chip_gen: v5e
topology: v5e:2x2
jax: 0.10.0
libtpu: 0.0.40
codegen_flags: <defaults>
</compile_context>

<pallas_src>
import jax
import jax.numpy as jnp
from jax.experimental import pallas as pl
from jax.experimental.pallas import tpu as pltpu


# ---------------- Fused Pallas kernel ----------------

def make_fused_kernel(num_layers, seq_len, hidden_size):
    H = hidden_size

    def kernel(*refs):
        # refs layout:
        #   [0]                       x        (seq, in_dim)
        #   [1 + 3l .. 3 + 3l)        layer l: w_ih_t (in_l, 4H), whh_gates (4, H, H), b (1, 4H)
        #   [-5:]                     h0 (L,1,H), c0 (L,1,H), out_w (1,H), out_b (1,1), o_ref (1, seq)
        x_ref = refs[0]
        layer_refs = refs[1:1 + 3 * num_layers]
        h0_ref, c0_ref, out_w_ref, out_b_ref, o_ref = refs[1 + 3 * num_layers:]

        x = x_ref[...]                                   # (seq, in_dim) f32
        for l in range(num_layers):
            wih_t_ref = layer_refs[3 * l]
            whh_g_ref = layer_refs[3 * l + 1]
            b_ref = layer_refs[3 * l + 2]

            # Hoisted input->hidden projection for the whole sequence (M = seq matmul).
            pre = (jnp.dot(x, wih_t_ref[...], preferred_element_type=jnp.float32)
                   + b_ref[...])                         # (seq, 4H)
            # Split gates ONCE per layer (static lane slices), not per step.
            pg = [pre[:, g * H:(g + 1) * H] for g in range(4)]      # 4 x (seq, H)
            w = [whh_g_ref[g] for g in range(4)]                    # 4 x (H, H)

            h = h0_ref[l]                                # (1, H)
            c = c0_ref[l]                                # (1, H)

            last = (l == num_layers - 1)
            if last:
                w_out = out_w_ref[...]                   # (1, H)
                outs = []
            else:
                ys = []

            # Static unroll over the (short, fixed) sequence.
            for t in range(seq_len):
                gi = jax.nn.sigmoid(pg[0][t:t + 1, :] +
                                    jnp.dot(h, w[0], preferred_element_type=jnp.float32))
                gf = jax.nn.sigmoid(pg[1][t:t + 1, :] +
                                    jnp.dot(h, w[1], preferred_element_type=jnp.float32))
                gg = jnp.tanh(pg[2][t:t + 1, :] +
                              jnp.dot(h, w[2], preferred_element_type=jnp.float32))
                go = jax.nn.sigmoid(pg[3][t:t + 1, :] +
                                    jnp.dot(h, w[3], preferred_element_type=jnp.float32))
                c = gf * c + gi * gg
                h = go * jnp.tanh(c)
                if last:
                    # Fold the linear head into the step: scalar h_t . w_out.
                    outs.append(jnp.sum(h * w_out, axis=1, keepdims=True))   # (1, 1)
                else:
                    ys.append(h)

            if last:
                # Lane-dense output row: (1, seq).
                o_ref[...] = jnp.concatenate(outs, axis=1) + out_b_ref[...]
            else:
                x = jnp.concatenate(ys, axis=0)          # (seq, H) -> next layer input

    return kernel


# ---------------- Wrapper ----------------

_VMEM = pl.BlockSpec(memory_space=pltpu.MemorySpace.VMEM)


def autoregressive_forward(inputs, params, h0, c0):
    """inputs: (seq_len, input_dim) -> (seq_len, 1, 1), like the PyTorch module."""
    seq_len = inputs.shape[0]
    x = inputs.reshape(seq_len, -1)          # == inputs.view(len(inputs), 1, -1), batch = 1
    num_layers = len(params["lstm"])
    H = params["lstm"][0]["whh_gates"].shape[-1]

    args = [x]
    for lp in params["lstm"]:
        args += [lp["w_ih_t"], lp["whh_gates"], lp["b"]]
    args += [h0, c0, params["out_w_row"], params["out_b"]]

    # Advisory cost estimate for XLA scheduling around the fused call.
    flops = 0
    for lp in params["lstm"]:
        in_l = lp["w_ih_t"].shape[0]
        flops += 2 * seq_len * in_l * 4 * H          # hoisted input projection
        flops += 2 * seq_len * H * 4 * H             # recurrent matmuls
    flops += 2 * seq_len * H                          # folded linear head
    transcendentals = 5 * seq_len * num_layers * H    # 3 sigmoid + 2 tanh per unit/step
    bytes_accessed = sum(a.size * a.dtype.itemsize for a in args) + seq_len * 4

    kernel = make_fused_kernel(num_layers, seq_len, H)
    out_row = pl.pallas_call(
        kernel,
        out_shape=jax.ShapeDtypeStruct((1, seq_len), jnp.float32),
        in_specs=[_VMEM] * len(args),
        out_specs=_VMEM,
        cost_estimate=pl.CostEstimate(flops=flops,
                                      transcendentals=transcendentals,
                                      bytes_accessed=bytes_accessed),
        compiler_params=pltpu.CompilerParams(),
    )(*args)
    return out_row.reshape(seq_len, 1, 1)


# ---------------- Deterministic parameter init (PyTorch-style) ----------------

def init_params(key, input_dim, hidden_size, num_layers):
    """PyTorch LSTM params: gate order [i, f, g, o]; uniform(-1/sqrt(H), 1/sqrt(H))."""
    H = hidden_size
    bound = 1.0 / (H ** 0.5)
    layers = []
    for l in range(num_layers):
        in_dim = input_dim if l == 0 else H
        key, k1, k2, k3, k4 = jax.random.split(key, 5)
        w_ih = jax.random.uniform(k1, (4 * H, in_dim), jnp.float32, -bound, bound)
        w_hh = jax.random.uniform(k2, (4 * H, H), jnp.float32, -bound, bound)
        b_ih = jax.random.uniform(k3, (4 * H,), jnp.float32, -bound, bound)
        b_hh = jax.random.uniform(k4, (4 * H,), jnp.float32, -bound, bound)
        # Pre-split W_hh^T column-wise into per-gate (H, H) blocks, stacked (4, H, H).
        whh_t = w_hh.T                                               # (H, 4H)
        whh_gates = jnp.stack([whh_t[:, g * H:(g + 1) * H] for g in range(4)], axis=0)
        layers.append({
            "w_ih_t": jnp.asarray(w_ih.T),                           # (in_dim, 4H)
            "whh_gates": whh_gates,                                  # (4, H, H)
            "b": (b_ih + b_hh).reshape(1, 4 * H),                    # (1, 4H)
        })
    key, k1, k2 = jax.random.split(key, 3)
    out_w = jax.random.uniform(k1, (1, H), jnp.float32, -bound, bound)
    out_b = jax.random.uniform(k2, (1,), jnp.float32, -bound, bound)
    return {
        "lstm": layers,
        "out_w_row": out_w,                  # (1, H) row for the folded head
        "out_b": out_b.reshape(1, 1),        # (1, 1)
    }


# ---------------- Main ----------------

if __name__ == "__main__":
    input_dim, hidden_size, num_layers = 4, 32, 2
    seq_len = 8

    root = jax.random.PRNGKey(0)
    k_params, k_x, k_h0, k_c0 = jax.random.split(root, 4)

    params = init_params(k_params, input_dim, hidden_size, num_layers)
    inputs = jax.random.normal(k_x, (seq_len, input_dim), jnp.float32)

    # TODO(synk): PyTorch draws fresh randn h0/c0 on every forward(); we draw them
    # deterministically once here (semantics of the recurrence are otherwise identical).
    h0 = jax.random.normal(k_h0, (num_layers, 1, hidden_size), jnp.float32)
    c0 = jax.random.normal(k_c0, (num_layers, 1, hidden_size), jnp.float32)

    out = autoregressive_forward(inputs, params, h0, c0)
    out = jax.block_until_ready(out)
    assert out.shape == (seq_len, 1, 1), out.shape
    assert bool(jnp.all(jnp.isfinite(out)))
    print("KERNEL_OK")
</pallas_src>

<mosaic_0001>
module attributes {stable_mosaic.version = 11 : i64} {
  func.func @kernel(%arg0: memref<8x4xf32, #tpu.memory_space<vmem>>, %arg1: memref<4x128xf32, #tpu.memory_space<vmem>>, %arg2: memref<4x32x32xf32, #tpu.memory_space<vmem>>, %arg3: memref<1x128xf32, #tpu.memory_space<vmem>>, %arg4: memref<32x128xf32, #tpu.memory_space<vmem>>, %arg5: memref<4x32x32xf32, #tpu.memory_space<vmem>>, %arg6: memref<1x128xf32, #tpu.memory_space<vmem>>, %arg7: memref<2x1x32xf32, #tpu.memory_space<vmem>>, %arg8: memref<2x1x32xf32, #tpu.memory_space<vmem>>, %arg9: memref<1x32xf32, #tpu.memory_space<vmem>>, %arg10: memref<1x1xf32, #tpu.memory_space<vmem>>, %arg11: memref<1x8xf32, #tpu.memory_space<vmem>>) attributes {dimension_semantics = [], scalar_prefetch = 0 : i64, scratch_operands = 0 : i64, tpu.core_type = #tpu.core_type<tc>} {
    %c0 = arith.constant 0 : index
    %c0_0 = arith.constant 0 : index
    %0 = vector.load %arg0[%c0, %c0_0] : memref<8x4xf32, #tpu.memory_space<vmem>>, vector<8x4xf32>
    %c0_1 = arith.constant 0 : index
    %c0_2 = arith.constant 0 : index
    %1 = vector.load %arg1[%c0_1, %c0_2] : memref<4x128xf32, #tpu.memory_space<vmem>>, vector<4x128xf32>
    %cst = arith.constant dense<0.000000e+00> : vector<8x128xf32>
    %2 = tpu.matmul %0, %1, %cst {dimension_numbers = #tpu.dot_dimension_numbers<[1], [0], [0], [1], [0, 0, 1, 1], [], []>} : vector<8x4xf32>, vector<4x128xf32>, vector<8x128xf32> -> vector<8x128xf32>
    %c0_3 = arith.constant 0 : index
    %c0_4 = arith.constant 0 : index
    %3 = vector.load %arg3[%c0_3, %c0_4] : memref<1x128xf32, #tpu.memory_space<vmem>>, vector<1x128xf32>
    %4 = vector.broadcast %3 : vector<1x128xf32> to vector<8x128xf32>
    %5 = arith.addf %2, %4 : vector<8x128xf32>
    %6 = vector.extract_strided_slice %5 {offsets = [0, 0], sizes = [8, 32], strides = [1, 1]} : vector<8x128xf32> to vector<8x32xf32>
    %7 = vector.extract_strided_slice %5 {offsets = [0, 32], sizes = [8, 32], strides = [1, 1]} : vector<8x128xf32> to vector<8x32xf32>
    %8 = vector.extract_strided_slice %5 {offsets = [0, 64], sizes = [8, 32], strides = [1, 1]} : vector<8x128xf32> to vector<8x32xf32>
    %9 = vector.extract_strided_slice %5 {offsets = [0, 96], sizes = [8, 32], strides = [1, 1]} : vector<8x128xf32> to vector<8x32xf32>
    %c0_5 = arith.constant 0 : index
    %c0_6 = arith.constant 0 : index
    %c0_7 = arith.constant 0 : index
    %10 = vector.load %arg2[%c0_5, %c0_6, %c0_7] : memref<4x32x32xf32, #tpu.memory_space<vmem>>, vector<1x32x32xf32>
    %11 = vector.shape_cast %10 : vector<1x32x32xf32> to vector<32x32xf32>
    %c1 = arith.constant 1 : index
    %c0_8 = arith.constant 0 : index
    %c0_9 = arith.constant 0 : index
    %12 = vector.load %arg2[%c1, %c0_8, %c0_9] : memref<4x32x32xf32, #tpu.memory_space<vmem>>, vector<1x32x32xf32>
    %13 = vector.shape_cast %12 : vector<1x32x32xf32> to vector<32x32xf32>
    %c2 = arith.constant 2 : index
    %c0_10 = arith.constant 0 : index
    %c0_11 = arith.constant 0 : index
    %14 = vector.load %arg2[%c2, %c0_10, %c0_11] : memref<4x32x32xf32, #tpu.memory_space<vmem>>, vector<1x32x32xf32>
    %15 = vector.shape_cast %14 : vector<1x32x32xf32> to vector<32x32xf32>
    %c3 = arith.constant 3 : index
    %c0_12 = arith.constant 0 : index
    %c0_13 = arith.constant 0 : index
    %16 = vector.load %arg2[%c3, %c0_12, %c0_13] : memref<4x32x32xf32, #tpu.memory_space<vmem>>, vector<1x32x32xf32>
    %17 = vector.shape_cast %16 : vector<1x32x32xf32> to vector<32x32xf32>
    %c0_14 = arith.constant 0 : index
    %c0_15 = arith.constant 0 : index
    %c0_16 = arith.constant 0 : index
    %18 = vector.load %arg7[%c0_14, %c0_15, %c0_16] : memref<2x1x32xf32, #tpu.memory_space<vmem>>, vector<1x1x32xf32>
    %19 = vector.shape_cast %18 : vector<1x1x32xf32> to vector<1x32xf32>
    %c0_17 = arith.constant 0 : index
    %c0_18 = arith.constant 0 : index
    %c0_19 = arith.constant 0 : index
    %20 = vector.load %arg8[%c0_17, %c0_18, %c0_19] : memref<2x1x32xf32, #tpu.memory_space<vmem>>, vector<1x1x32xf32>
    %21 = vector.shape_cast %20 : vector<1x1x32xf32> to vector<1x32xf32>
    %22 = vector.extract_strided_slice %6 {offsets = [0, 0], sizes = [1, 32], strides = [1, 1]} : vector<8x32xf32> to vector<1x32xf32>
    %cst_20 = arith.constant dense<0.000000e+00> : vector<1x32xf32>
    %23 = tpu.matmul %19, %11, %cst_20 {dimension_numbers = #tpu.dot_dimension_numbers<[1], [0], [0], [1], [0, 0, 1, 1], [], []>} : vector<1x32xf32>, vector<32x32xf32>, vector<1x32xf32> -> vector<1x32xf32>
    %24 = arith.addf %22, %23 : vector<1x32xf32>
    %25 = arith.negf %24 : vector<1x32xf32>
    %26 = math.exp %25 : vector<1x32xf32>
    %cst_21 = arith.constant 1.000000e+00 : f32
    %27 = vector.broadcast %cst_21 : f32 to vector<1x32xf32>
    %28 = arith.addf %27, %26 : vector<1x32xf32>
    %29 = arith.divf %27, %28 : vector<1x32xf32>
    %30 = vector.extract_strided_slice %7 {offsets = [0, 0], sizes = [1, 32], strides = [1, 1]} : vector<8x32xf32> to vector<1x32xf32>
    %cst_22 = arith.constant dense<0.000000e+00> : vector<1x32xf32>
    %31 = tpu.matmul %19, %13, %cst_22 {dimension_numbers = #tpu.dot_dimension_numbers<[1], [0], [0], [1], [0, 0, 1, 1], [], []>} : vector<1x32xf32>, vector<32x32xf32>, vector<1x32xf32> -> vector<1x32xf32>
    %32 = arith.addf %30, %31 : vector<1x32xf32>
    %33 = arith.negf %32 : vector<1x32xf32>
    %34 = math.exp %33 : vector<1x32xf32>
    %cst_23 = arith.constant 1.000000e+00 : f32
    %35 = vector.broadcast %cst_23 : f32 to vector<1x32xf32>
    %36 = arith.addf %35, %34 : vector<1x32xf32>
    %37 = arith.divf %35, %36 : vector<1x32xf32>
    %38 = vector.extract_strided_slice %8 {offsets = [0, 0], sizes = [1, 32], strides = [1, 1]} : vector<8x32xf32> to vector<1x32xf32>
    %cst_24 = arith.constant dense<0.000000e+00> : vector<1x32xf32>
    %39 = tpu.matmul %19, %15, %cst_24 {dimension_numbers = #tpu.dot_dimension_numbers<[1], [0], [0], [1], [0, 0, 1, 1], [], []>} : vector<1x32xf32>, vector<32x32xf32>, vector<1x32xf32> -> vector<1x32xf32>
    %40 = arith.addf %38, %39 : vector<1x32xf32>
    %41 = math.tanh %40 : vector<1x32xf32>
    %42 = vector.extract_strided_slice %9 {offsets = [0, 0], sizes = [1, 32], strides = [1, 1]} : vector<8x32xf32> to vector<1x32xf32>
    %cst_25 = arith.constant dense<0.000000e+00> : vector<1x32xf32>
    %43 = tpu.matmul %19, %17, %cst_25 {dimension_numbers = #tpu.dot_dimension_numbers<[1], [0], [0], [1], [0, 0, 1, 1], [], []>} : vector<1x32xf32>, vector<32x32xf32>, vector<1x32xf32> -> vector<1x32xf32>
    %44 = arith.addf %42, %43 : vector<1x32xf32>
    %45 = arith.negf %44 : vector<1x32xf32>
    %46 = math.exp %45 : vector<1x32xf32>
    %cst_26 = arith.constant 1.000000e+00 : f32
    %47 = vector.broadcast %cst_26 : f32 to vector<1x32xf32>
    %48 = arith.addf %47, %46 : vector<1x32xf32>
    %49 = arith.divf %47, %48 : vector<1x32xf32>
    %50 = arith.mulf %37, %21 : vector<1x32xf32>
    %51 = arith.mulf %29, %41 : vector<1x32xf32>
    %52 = arith.addf %50, %51 : vector<1x32xf32>
    %53 = math.tanh %52 : vector<1x32xf32>
    %54 = arith.mulf %49, %53 : vector<1x32xf32>
    %55 = vector.extract_strided_slice %6 {offsets = [1, 0], sizes = [1, 32], strides = [1, 1]} : vector<8x32xf32> to vector<1x32xf32>
    %cst_27 = arith.constant dense<0.000000e+00> : vector<1x32xf32>
    %56 = tpu.matmul %54, %11, %cst_27 {dimension_numbers = #tpu.dot_dimension_numbers<[1], [0], [0], [1], [0, 0, 1, 1], [], []>} : vector<1x32xf32>, vector<32x32xf32>, vector<1x32xf32> -> vector<1x32xf32>
    %57 = arith.addf %55, %56 : vector<1x32xf32>
    %58 = arith.negf %57 : vector<1x32xf32>
    %59 = math.exp %58 : vector<1x32xf32>
    %cst_28 = arith.constant 1.000000e+00 : f32
    %60 = vector.broadcast %cst_28 : f32 to vector<1x32xf32>
    %61 = arith.addf %60, %59 : vector<1x32xf32>
    %62 = arith.divf %60, %61 : vector<1x32xf32>
    %63 = vector.extract_strided_slice %7 {offsets = [1, 0], sizes = [1, 32], strides = [1, 1]} : vector<8x32xf32> to vector<1x32xf32>
    %cst_29 = arith.constant dense<0.000000e+00> : vector<1x32xf32>
    %64 = tpu.matmul %54, %13, %cst_29 {dimension_numbers = #tpu.dot_dimension_numbers<[1], [0], [0], [1], [0, 0, 1, 1], [], []>} : vector<1x32xf32>, vector<32x32xf32>, vector<1x32xf32> -> vector<1x32xf32>
    %65 = arith.addf %63, %64 : vector<1x32xf32>
    %66 = arith.negf %65 : vector<1x32xf32>
    %67 = math.exp %66 : vector<1x32xf32>
    %cst_30 = arith.constant 1.000000e+00 : f32
    %68 = vector.broadcast %cst_30 : f32 to vector<1x32xf32>
    %69 = arith.addf %68, %67 : vector<1x32xf32>
    %70 = arith.divf %68, %69 : vector<1x32xf32>
    %71 = vector.extract_strided_slice %8 {offsets = [1, 0], sizes = [1, 32], strides = [1, 1]} : vector<8x32xf32> to vector<1x32xf32>
    %cst_31 = arith.constant dense<0.000000e+00> : vector<1x32xf32>
    %72 = tpu.matmul %54, %15, %cst_31 {dimension_numbers = #tpu.dot_dimension_numbers<[1], [0], [0], [1], [0, 0, 1, 1], [], []>} : vector<1x32xf32>, vector<32x32xf32>, vector<1x32xf32> -> vector<1x32xf32>
    %73 = arith.addf %71, %72 : vector<1x32xf32>
    %74 = math.tanh %73 : vector<1x32xf32>
    %75 = vector.extract_strided_slice %9 {offsets = [1, 0], sizes = [1, 32], strides = [1, 1]} : vector<8x32xf32> to vector<1x32xf32>
    %cst_32 = arith.constant dense<0.000000e+00> : vector<1x32xf32>
    %76 = tpu.matmul %54, %17, %cst_32 {dimension_numbers = #tpu.dot_dimension_numbers<[1], [0], [0], [1], [0, 0, 1, 1], [], []>} : vector<1x32xf32>, vector<32x32xf32>, vector<1x32xf32> -> vector<1x32xf32>
    %77 = arith.addf %75, %76 : vector<1x32xf32>
    %78 = arith.negf %77 : vector<1x32xf32>
    %79 = math.exp %78 : vector<1x32xf32>
    %cst_33 = arith.constant 1.000000e+00 : f32
    %80 = vector.broadcast %cst_33 : f32 to vector<1x32xf32>
    %81 = arith.addf %80, %79 : vector<1x32xf32>
    %82 = arith.divf %80, %81 : vector<1x32xf32>
    %83 = arith.mulf %70, %52 : vector<1x32xf32>
    %84 = arith.mulf %62, %74 : vector<1x32xf32>
    %85 = arith.addf %83, %84 : vector<1x32xf32>
    %86 = math.tanh %85 : vector<1x32xf32>
    %87 = arith.mulf %82, %86 : vector<1x32xf32>
    %88 = vector.extract_strided_slice %6 {offsets = [2, 0], sizes = [1, 32], strides = [1, 1]} : vector<8x32xf32> to vector<1x32xf32>
    %cst_34 = arith.constant dense<0.000000e+00> : vector<1x32xf32>
    %89 = tpu.matmul %87, %11, %cst_34 {dimension_numbers = #tpu.dot_dimension_numbers<[1], [0], [0], [1], [0, 0, 1, 1], [], []>} : vector<1x32xf32>, vector<32x32xf32>, vector<1x32xf32> -> vector<1x32xf32>
    %90 = arith.addf %88, %89 : vector<1x32xf32>
    %91 = arith.negf %90 : vector<1x32xf32>
    %92 = math.exp %91 : vector<1x32xf32>
    %cst_35 = arith.constant 1.000000e+00 : f32
    %93 = vector.broadcast %cst_35 : f32 to vector<1x32xf32>
    %94 = arith.addf %93, %92 : vector<1x32xf32>
    %95 = arith.divf %93, %94 : vector<1x32xf32>
    %96 = vector.extract_strided_slice %7 {offsets = [2, 0], sizes = [1, 32], strides = [1, 1]} : vector<8x32xf32> to vector<1x32xf32>
    %cst_36 = arith.constant dense<0.000000e+00> : vector<1x32xf32>
    %97 = tpu.matmul %87, %13, %cst_36 {dimension_numbers = #tpu.dot_dimension_numbers<[1], [0], [0], [1], [0, 0, 1, 1], [], []>} : vector<1x32xf32>, vector<32x32xf32>, vector<1x32xf32> -> vector<1x32xf32>
    %98 = arith.addf %96, %97 : vector<1x32xf32>
    %99 = arith.negf %98 : vector<1x32xf32>
    %100 = math.exp %99 : vector<1x32xf32>
    %cst_37 = arith.constant 1.000000e+00 : f32
    %101 = vector.broadcast %cst_37 : f32 to vector<1x32xf32>
    %102 = arith.addf %101, %100 : vector<1x32xf32>
    %103 = arith.divf %101, %102 : vector<1x32xf32>
    %104 = vector.extract_strided_slice %8 {offsets = [2, 0], sizes = [1, 32], strides = [1, 1]} : vector<8x32xf32> to vector<1x32xf32>
    %cst_38 = arith.constant dense<0.000000e+00> : vector<1x32xf32>
    %105 = tpu.matmul %87, %15, %cst_38 {dimension_numbers = #tpu.dot_dimension_numbers<[1], [0], [0], [1], [0, 0, 1, 1], [], []>} : vector<1x32xf32>, vector<32x32xf32>, vector<1x32xf32> -> vector<1x32xf32>
    %106 = arith.addf %104, %105 : vector<1x32xf32>
    %107 = math.tanh %106 : vector<1x32xf32>
    %108 = vector.extract_strided_slice %9 {offsets = [2, 0], sizes = [1, 32], strides = [1, 1]} : vector<8x32xf32> to vector<1x32xf32>
    %cst_39 = arith.constant dense<0.000000e+00> : vector<1x32xf32>
    %109 = tpu.matmul %87, %17, %cst_39 {dimension_numbers = #tpu.dot_dimension_numbers<[1], [0], [0], [1], [0, 0, 1, 1], [], []>} : vector<1x32xf32>, vector<32x32xf32>, vector<1x32xf32> -> vector<1x32xf32>
    %110 = arith.addf %108, %109 : vector<1x32xf32>
    %111 = arith.negf %110 : vector<1x32xf32>
    %112 = math.exp %111 : vector<1x32xf32>
    %cst_40 = arith.constant 1.000000e+00 : f32
    %113 = vector.broadcast %cst_40 : f32 to vector<1x32xf32>
    %114 = arith.addf %113, %112 : vector<1x32xf32>
    %115 = arith.divf %113, %114 : vector<1x32xf32>
    %116 = arith.mulf %103, %85 : vector<1x32xf32>
    %117 = arith.mulf %95, %107 : vector<1x32xf32>
    %118 = arith.addf %116, %117 : vector<1x32xf32>
    %119 = math.tanh %118 : vector<1x32xf32>
    %120 = arith.mulf %115, %119 : vector<1x32xf32>
    %121 = vector.extract_strided_slice %6 {offsets = [3, 0], sizes = [1, 32], strides = [1, 1]} : vector<8x32xf32> to vector<1x32xf32>
    %cst_41 = arith.constant dense<0.000000e+00> : vector<1x32xf32>
    %122 = tpu.matmul %120, %11, %cst_41 {dimension_numbers = #tpu.dot_dimension_numbers<[1], [0], [0], [1], [0, 0, 1, 1], [], []>} : vector<1x32xf32>, vector<32x32xf32>, vector<1x32xf32> -> vector<1x32xf32>
    %123 = arith.addf %121, %122 : vector<1x32xf32>
    %124 = arith.negf %123 : vector<1x32xf32>
    %125 = math.exp %124 : vector<1x32xf32>
    %cst_42 = arith.constant 1.000000e+00 : f32
    %126 = vector.broadcast %cst_42 : f32 to vector<1x32xf32>
    %127 = arith.addf %126, %125 : vector<1x32xf32>
    %128 = arith.divf %126, %127 : vector<1x32xf32>
    %129 = vector.extract_strided_slice %7 {offsets = [3, 0], sizes = [1, 32], strides = [1, 1]} : vector<8x32xf32> to vector<1x32xf32>
    %cst_43 = arith.constant dense<0.000000e+00> : vector<1x32xf32>
    %130 = tpu.matmul %120, %13, %cst_43 {dimension_numbers = #tpu.dot_dimension_numbers<[1], [0], [0], [1], [0, 0, 1, 1], [], []>} : vector<1x32xf32>, vector<32x32xf32>, vector<1x32xf32> -> vector<1x32xf32>
    %131 = arith.addf %129, %130 : vector<1x32xf32>
    %132 = arith.negf %131 : vector<1x32xf32>
    %133 = math.exp %132 : vector<1x32xf32>
    %cst_44 = arith.constant 1.000000e+00 : f32
    %134 = vector.broadcast %cst_44 : f32 to vector<1x32xf32>
    %135 = arith.addf %134, %133 : vector<1x32xf32>
    %136 = arith.divf %134, %135 : vector<1x32xf32>
    %137 = vector.extract_strided_slice %8 {offsets = [3, 0], sizes = [1, 32], strides = [1, 1]} : vector<8x32xf32> to vector<1x32xf32>
    %cst_45 = arith.constant dense<0.000000e+00> : vector<1x32xf32>
    %138 = tpu.matmul %120, %15, %cst_45 {dimension_numbers = #tpu.dot_dimension_numbers<[1], [0], [0], [1], [0, 0, 1, 1], [], []>} : vector<1x32xf32>, vector<32x32xf32>, vector<1x32xf32> -> vector<1x32xf32>
    %139 = arith.addf %137, %138 : vector<1x32xf32>
    %140 = math.tanh %139 : vector<1x32xf32>
    %141 = vector.extract_strided_slice %9 {offsets = [3, 0], sizes = [1, 32], strides = [1, 1]} : vector<8x32xf32> to vector<1x32xf32>
    %cst_46 = arith.constant dense<0.000000e+00> : vector<1x32xf32>
    %142 = tpu.matmul %120, %17, %cst_46 {dimension_numbers = #tpu.dot_dimension_numbers<[1], [0], [0], [1], [0, 0, 1, 1], [], []>} : vector<1x32xf32>, vector<32x32xf32>, vector<1x32xf32> -> vector<1x32xf32>
    %143 = arith.addf %141, %142 : vector<1x32xf32>
    %144 = arith.negf %143 : vector<1x32xf32>
    %145 = math.exp %144 : vector<1x32xf32>
    %cst_47 = arith.constant 1.000000e+00 : f32
    %146 = vector.broadcast %cst_47 : f32 to vector<1x32xf32>
    %147 = arith.addf %146, %145 : vector<1x32xf32>
    %148 = arith.divf %146, %147 : vector<1x32xf32>
    %149 = arith.mulf %136, %118 : vector<1x32xf32>
    %150 = arith.mulf %128, %140 : vector<1x32xf32>
    %151 = arith.addf %149, %150 : vector<1x32xf32>
    %152 = math.tanh %151 : vector<1x32xf32>
    %153 = arith.mulf %148, %152 : vector<1x32xf32>
    %154 = vector.extract_strided_slice %6 {offsets = [4, 0], sizes = [1, 32], strides = [1, 1]} : vector<8x32xf32> to vector<1x32xf32>
    %cst_48 = arith.constant dense<0.000000e+00> : vector<1x32xf32>
    %155 = tpu.matmul %153, %11, %cst_48 {dimension_numbers = #tpu.dot_dimension_numbers<[1], [0], [0], [1], [0, 0, 1, 1], [], []>} : vector<1x32xf32>, vector<32x32xf32>, vector<1x32xf32> -> vector<1x32xf32>
    %156 = arith.addf %154, %155 : vector<1x32xf32>
    %157 = arith.negf %156 : vector<1x32xf32>
    %158 = math.exp %157 : vector<1x32xf32>
    %cst_49 = arith.constant 1.000000e+00 : f32
    %159 = vector.broadcast %cst_49 : f32 to vector<1x32xf32>
    %160 = arith.addf %159, %158 : vector<1x32xf32>
    %161 = arith.divf %159, %160 : vector<1x32xf32>
    %162 = vector.extract_strided_slice %7 {offsets = [4, 0], sizes = [1, 32], strides = [1, 1]} : vector<8x32xf32> to vector<1x32xf32>
    %cst_50 = arith.constant dense<0.000000e+00> : vector<1x32xf32>
    %163 = tpu.matmul %153, %13, %cst_50 {dimension_numbers = #tpu.dot_dimension_numbers<[1], [0], [0], [1], [0, 0, 1, 1], [], []>} : vector<1x32xf32>, vector<32x32xf32>, vector<1x32xf32> -> vector<1x32xf32>
    %164 = arith.addf %162, %163 : vector<1x32xf32>
    %165 = arith.negf %164 : vector<1x32xf32>
    %166 = math.exp %165 : vector<1x32xf32>
    %cst_51 = arith.constant 1.000000e+00 : f32
    %167 = vector.broadcast %cst_51 : f32 to vector<1x32xf32>
    %168 = arith.addf %167, %166 : vector<1x32xf32>
    %169 = arith.divf %167, %168 : vector<1x32xf32>
    %170 = vector.extract_strided_slice %8 {offsets = [4, 0], sizes = [1, 32], strides = [1, 1]} : vector<8x32xf32> to vector<1x32xf32>
    %cst_52 = arith.constant dense<0.000000e+00> : vector<1x32xf32>
    %171 = tpu.matmul %153, %15, %cst_52 {dimension_numbers = #tpu.dot_dimension_numbers<[1], [0], [0], [1], [0, 0, 1, 1], [], []>} : vector<1x32xf32>, vector<32x32xf32>, vector<1x32xf32> -> vector<1x32xf32>
    %172 = arith.addf %170, %171 : vector<1x32xf32>
    %173 = math.tanh %172 : vector<1x32xf32>
    %174 = vector.extract_strided_slice %9 {offsets = [4, 0], sizes = [1, 32], strides = [1, 1]} : vector<8x32xf32> to vector<1x32xf32>
    %cst_53 = arith.constant dense<0.000000e+00> : vector<1x32xf32>
    %175 = tpu.matmul %153, %17, %cst_53 {dimension_numbers = #tpu.dot_dimension_numbers<[1], [0], [0], [1], [0, 0, 1, 1], [], []>} : vector<1x32xf32>, vector<32x32xf32>, vector<1x32xf32> -> vector<1x32xf32>
    %176 = arith.addf %174, %175 : vector<1x32xf32>
    %177 = arith.negf %176 : vector<1x32xf32>
    %178 = math.exp %177 : vector<1x32xf32>
    %cst_54 = arith.constant 1.000000e+00 : f32
    %179 = vector.broadcast %cst_54 : f32 to vector<1x32xf32>
    %180 = arith.addf %179, %178 : vector<1x32xf32>
    %181 = arith.divf %179, %180 : vector<1x32xf32>
    %182 = arith.mulf %169, %151 : vector<1x32xf32>
    %183 = arith.mulf %161, %173 : vector<1x32xf32>
    %184 = arith.addf %182, %183 : vector<1x32xf32>
    %185 = math.tanh %184 : vector<1x32xf32>
    %186 = arith.mulf %181, %185 : vector<1x32xf32>
    %187 = vector.extract_strided_slice %6 {offsets = [5, 0], sizes = [1, 32], strides = [1, 1]} : vector<8x32xf32> to vector<1x32xf32>
    %cst_55 = arith.constant dense<0.000000e+00> : vector<1x32xf32>
    %188 = tpu.matmul %186, %11, %cst_55 {dimension_numbers = #tpu.dot_dimension_numbers<[1], [0], [0], [1], [0, 0, 1, 1], [], []>} : vector<1x32xf32>, vector<32x32xf32>, vector<1x32xf32> -> vector<1x32xf32>
    %189 = arith.addf %187, %188 : vector<1x32xf32>
    %190 = arith.negf %189 : vector<1x32xf32>
    %191 = math.exp %190 : vector<1x32xf32>
    %cst_56 = arith.constant 1.000000e+00 : f32
    %192 = vector.broadcast %cst_56 : f32 to vector<1x32xf32>
    %193 = arith.addf %192, %191 : vector<1x32xf32>
    %194 = arith.divf %192, %193 : vector<1x32xf32>
    %195 = vector.extract_strided_slice %7 {offsets = [5, 0], sizes = [1, 32], strides = [1, 1]} : vector<8x32xf32> to vector<1x32xf32>
    %cst_57 = arith.constant dense<0.000000e+00> : vector<1x32xf32>
    %196 = tpu.matmul %186, %13, %cst_57 {dimension_numbers = #tpu.dot_dimension_numbers<[1], [0], [0], [1], [0, 0, 1, 1], [], []>} : vector<1x32xf32>, vector<32x32xf32>, vector<1x32xf32> -> vector<1x32xf32>
    %197 = arith.addf %195, %196 : vector<1x32xf32>
    %198 = arith.negf %197 : vector<1x32xf32>
    %199 = math.exp %198 : vector<1x32xf32>
    %cst_58 = arith.constant 1.000000e+00 : f32
    %200 = vector.broadcast %cst_58 : f32 to vector<1x32xf32>
    %201 = arith.addf %200, %199 : vector<1x32xf32>
    %202 = arith.divf %200, %201 : vector<1x32xf32>
    %203 = vector.extract_strided_slice %8 {offsets = [5, 0], sizes = [1, 32], strides = [1, 1]} : vector<8x32xf32> to vector<1x32xf32>
    %cst_59 = arith.constant dense<0.000000e+00> : vector<1x32xf32>
    %204 = tpu.matmul %186, %15, %cst_59 {dimension_numbers = #tpu.dot_dimension_numbers<[1], [0], [0], [1], [0, 0, 1, 1], [], []>} : vector<1x32xf32>, vector<32x32xf32>, vector<1x32xf32> -> vector<1x32xf32>
    %205 = arith.addf %203, %204 : vector<1x32xf32>
    %206 = math.tanh %205 : vector<1x32xf32>
    %207 = vector.extract_strided_slice %9 {offsets = [5, 0], sizes = [1, 32], strides = [1, 1]} : vector<8x32xf32> to vector<1x32xf32>
    %cst_60 = arith.constant dense<0.000000e+00> : vector<1x32xf32>
    %208 = tpu.matmul %186, %17, %cst_60 {dimension_numbers = #tpu.dot_dimension_numbers<[1], [0], [0], [1], [0, 0, 1, 1], [], []>} : vector<1x32xf32>, vector<32x32xf32>, vector<1x32xf32> -> vector<1x32xf32>
    %209 = arith.addf %207, %208 : vector<1x32xf32>
    %210 = arith.negf %209 : vector<1x32xf32>
    %211 = math.exp %210 : vector<1x32xf32>
    %cst_61 = arith.constant 1.000000e+00 : f32
    %212 = vector.broadcast %cst_61 : f32 to vector<1x32xf32>
    %213 = arith.addf %212, %211 : vector<1x32xf32>
    %214 = arith.divf %212, %213 : vector<1x32xf32>
    %215 = arith.mulf %202, %184 : vector<1x32xf32>
    %216 = arith.mulf %194, %206 : vector<1x32xf32>
    %217 = arith.addf %215, %216 : vector<1x32xf32>
    %218 = math.tanh %217 : vector<1x32xf32>
    %219 = arith.mulf %214, %218 : vector<1x32xf32>
    %220 = vector.extract_strided_slice %6 {offsets = [6, 0], sizes = [1, 32], strides = [1, 1]} : vector<8x32xf32> to vector<1x32xf32>
    %cst_62 = arith.constant dense<0.000000e+00> : vector<1x32xf32>
    %221 = tpu.matmul %219, %11, %cst_62 {dimension_numbers = #tpu.dot_dimension_numbers<[1], [0], [0], [1], [0, 0, 1, 1], [], []>} : vector<1x32xf32>, vector<32x32xf32>, vector<1x32xf32> -> vector<1x32xf32>
    %222 = arith.addf %220, %221 : vector<1x32xf32>
    %223 = arith.negf %222 : vector<1x32xf32>
    %224 = math.exp %223 : vector<1x32xf32>
    %cst_63 = arith.constant 1.000000e+00 : f32
    %225 = vector.broadcast %cst_63 : f32 to vector<1x32xf32>
    %226 = arith.addf %225, %224 : vector<1x32xf32>
    %227 = arith.divf %225, %226 : vector<1x32xf32>
    %228 = vector.extract_strided_slice %7 {offsets = [6, 0], sizes = [1, 32], strides = [1, 1]} : vector<8x32xf32> to vector<1x32xf32>
    %cst_64 = arith.constant dense<0.000000e+00> : vector<1x32xf32>
    %229 = tpu.matmul %219, %13, %cst_64 {dimension_numbers = #tpu.dot_dimension_numbers<[1], [0], [0], [1], [0, 0, 1, 1], [], []>} : vector<1x32xf32>, vector<32x32xf32>, vector<1x32xf32> -> vector<1x32xf32>
    %230 = arith.addf %228, %229 : vector<1x32xf32>
    %231 = arith.negf %230 : vector<1x32xf32>
    %232 = math.exp %231 : vector<1x32xf32>
    %cst_65 = arith.constant 1.000000e+00 : f32
    %233 = vector.broadcast %cst_65 : f32 to vector<1x32xf32>
    %234 = arith.addf %233, %232 : vector<1x32xf32>
    %235 = arith.divf %233, %234 : vector<1x32xf32>
    %236 = vector.extract_strided_slice %8 {offsets = [6, 0], sizes = [1, 32], strides = [1, 1]} : vector<8x32xf32> to vector<1x32xf32>
    %cst_66 = arith.constant dense<0.000000e+00> : vector<1x32xf32>
    %237 = tpu.matmul %219, %15, %cst_66 {dimension_numbers = #tpu.dot_dimension_numbers<[1], [0], [0], [1], [0, 0, 1, 1], [], []>} : vector<1x32xf32>, vector<32x32xf32>, vector<1x32xf32> -> vector<1x32xf32>
    %238 = arith.addf %236, %237 : vector<1x32xf32>
    %239 = math.tanh %238 : vector<1x32xf32>
    %240 = vector.extract_strided_slice %9 {offsets = [6, 0], sizes = [1, 32], strides = [1, 1]} : vector<8x32xf32> to vector<1x32xf32>
    %cst_67 = arith.constant dense<0.000000e+00> : vector<1x32xf32>
    %241 = tpu.matmul %219, %17, %cst_67 {dimension_numbers = #tpu.dot_dimension_numbers<[1], [0], [0], [1], [0, 0, 1, 1], [], []>} : vector<1x32xf32>, vector<32x32xf32>, vector<1x32xf32> -> vector<1x32xf32>
    %242 = arith.addf %240, %241 : vector<1x32xf32>
    %243 = arith.negf %242 : vector<1x32xf32>
    %244 = math.exp %243 : vector<1x32xf32>
    %cst_68 = arith.constant 1.000000e+00 : f32
    %245 = vector.broadcast %cst_68 : f32 to vector<1x32xf32>
    %246 = arith.addf %245, %244 : vector<1x32xf32>
    %247 = arith.divf %245, %246 : vector<1x32xf32>
    %248 = arith.mulf %235, %217 : vector<1x32xf32>
    %249 = arith.mulf %227, %239 : vector<1x32xf32>
    %250 = arith.addf %248, %249 : vector<1x32xf32>
    %251 = math.tanh %250 : vector<1x32xf32>
    %252 = arith.mulf %247, %251 : vector<1x32xf32>
    %253 = vector.extract_strided_slice %6 {offsets = [7, 0], sizes = [1, 32], strides = [1, 1]} : vector<8x32xf32> to vector<1x32xf32>
    %cst_69 = arith.constant dense<0.000000e+00> : vector<1x32xf32>
    %254 = tpu.matmul %252, %11, %cst_69 {dimension_numbers = #tpu.dot_dimension_numbers<[1], [0], [0], [1], [0, 0, 1, 1], [], []>} : vector<1x32xf32>, vector<32x32xf32>, vector<1x32xf32> -> vector<1x32xf32>
    %255 = arith.addf %253, %254 : vector<1x32xf32>
    %256 = arith.negf %255 : vector<1x32xf32>
    %257 = math.exp %256 : vector<1x32xf32>
    %cst_70 = arith.constant 1.000000e+00 : f32
    %258 = vector.broadcast %cst_70 : f32 to vector<1x32xf32>
    %259 = arith.addf %258, %257 : vector<1x32xf32>
    %260 = arith.divf %258, %259 : vector<1x32xf32>
    %261 = vector.extract_strided_slice %7 {offsets = [7, 0], sizes = [1, 32], strides = [1, 1]} : vector<8x32xf32> to vector<1x32xf32>
    %cst_71 = arith.constant dense<0.000000e+00> : vector<1x32xf32>
    %262 = tpu.matmul %252, %13, %cst_71 {dimension_numbers = #tpu.dot_dimension_numbers<[1], [0], [0], [1], [0, 0, 1, 1], [], []>} : vector<1x32xf32>, vector<32x32xf32>, vector<1x32xf32> -> vector<1x32xf32>
    %263 = arith.addf %261, %262 : vector<1x32xf32>
    %264 = arith.negf %263 : vector<1x32xf32>
    %265 = math.exp %264 : vector<1x32xf32>
    %cst_72 = arith.constant 1.000000e+00 : f32
    %266 = vector.broadcast %cst_72 : f32 to vector<1x32xf32>
    %267 = arith.addf %266, %265 : vector<1x32xf32>
    %268 = arith.divf %266, %267 : vector<1x32xf32>
    %269 = vector.extract_strided_slice %8 {offsets = [7, 0], sizes = [1, 32], strides = [1, 1]} : vector<8x32xf32> to vector<1x32xf32>
    %cst_73 = arith.constant dense<0.000000e+00> : vector<1x32xf32>
    %270 = tpu.matmul %252, %15, %cst_73 {dimension_numbers = #tpu.dot_dimension_numbers<[1], [0], [0], [1], [0, 0, 1, 1], [], []>} : vector<1x32xf32>, vector<32x32xf32>, vector<1x32xf32> -> vector<1x32xf32>
    %271 = arith.addf %269, %270 : vector<1x32xf32>
    %272 = math.tanh %271 : vector<1x32xf32>
    %273 = vector.extract_strided_slice %9 {offsets = [7, 0], sizes = [1, 32], strides = [1, 1]} : vector<8x32xf32> to vector<1x32xf32>
    %cst_74 = arith.constant dense<0.000000e+00> : vector<1x32xf32>
    %274 = tpu.matmul %252, %17, %cst_74 {dimension_numbers = #tpu.dot_dimension_numbers<[1], [0], [0], [1], [0, 0, 1, 1], [], []>} : vector<1x32xf32>, vector<32x32xf32>, vector<1x32xf32> -> vector<1x32xf32>
    %275 = arith.addf %273, %274 : vector<1x32xf32>
    %276 = arith.negf %275 : vector<1x32xf32>
    %277 = math.exp %276 : vector<1x32xf32>
    %cst_75 = arith.constant 1.000000e+00 : f32
    %278 = vector.broadcast %cst_75 : f32 to vector<1x32xf32>
    %279 = arith.addf %278, %277 : vector<1x32xf32>
    %280 = arith.divf %278, %279 : vector<1x32xf32>
    %281 = arith.mulf %268, %250 : vector<1x32xf32>
    %282 = arith.mulf %260, %272 : vector<1x32xf32>
    %283 = arith.addf %281, %282 : vector<1x32xf32>
    %284 = math.tanh %283 : vector<1x32xf32>
    %285 = arith.mulf %280, %284 : vector<1x32xf32>
    %286 = tpu.concatenate %54, %87, %120, %153, %186, %219, %252, %285 in 0 : vector<1x32xf32>, vector<1x32xf32>, vector<1x32xf32>, vector<1x32xf32>, vector<1x32xf32>, vector<1x32xf32>, vector<1x32xf32>, vector<1x32xf32> -> vector<8x32xf32>
    %c0_76 = arith.constant 0 : index
    %c0_77 = arith.constant 0 : index
    %287 = vector.load %arg4[%c0_76, %c0_77] : memref<32x128xf32, #tpu.memory_space<vmem>>, vector<32x128xf32>
    %cst_78 = arith.constant dense<0.000000e+00> : vector<8x128xf32>
    %288 = tpu.matmul %286, %287, %cst_78 {dimension_numbers = #tpu.dot_dimension_numbers<[1], [0], [0], [1], [0, 0, 1, 1], [], []>} : vector<8x32xf32>, vector<32x128xf32>, vector<8x128xf32> -> vector<8x128xf32>
    %c0_79 = arith.constant 0 : index
    %c0_80 = arith.constant 0 : index
    %289 = vector.load %arg6[%c0_79, %c0_80] : memref<1x128xf32, #tpu.memory_space<vmem>>, vector<1x128xf32>
    %290 = vector.broadcast %289 : vector<1x128xf32> to vector<8x128xf32>
    %291 = arith.addf %288, %290 : vector<8x128xf32>
    %292 = vector.extract_strided_slice %291 {offsets = [0, 0], sizes = [8, 32], strides = [1, 1]} : vector<8x128xf32> to vector<8x32xf32>
    %293 = vector.extract_strided_slice %291 {offsets = [0, 32], sizes = [8, 32], strides = [1, 1]} : vector<8x128xf32> to vector<8x32xf32>
    %294 = vector.extract_strided_slice %291 {offsets = [0, 64], sizes = [8, 32], strides = [1, 1]} : vector<8x128xf32> to vector<8x32xf32>
    %295 = vector.extract_strided_slice %291 {offsets = [0, 96], sizes = [8, 32], strides = [1, 1]} : vector<8x128xf32> to vector<8x32xf32>
    %c0_81 = arith.constant 0 : index
    %c0_82 = arith.constant 0 : index
    %c0_83 = arith.constant 0 : index
    %296 = vector.load %arg5[%c0_81, %c0_82, %c0_83] : memref<4x32x32xf32, #tpu.memory_space<vmem>>, vector<1x32x32xf32>
    %297 = vector.shape_cast %296 : vector<1x32x32xf32> to vector<32x32xf32>
    %c1_84 = arith.constant 1 : index
    %c0_85 = arith.constant 0 : index
    %c0_86 = arith.constant 0 : index
    %298 = vector.load %arg5[%c1_84, %c0_85, %c0_86] : memref<4x32x32xf32, #tpu.memory_space<vmem>>, vector<1x32x32xf32>
    %299 = vector.shape_cast %298 : vector<1x32x32xf32> to vector<32x32xf32>
    %c2_87 = arith.constant 2 : index
    %c0_88 = arith.constant 0 : index
    %c0_89 = arith.constant 0 : index
    %300 = vector.load %arg5[%c2_87, %c0_88, %c0_89] : memref<4x32x32xf32, #tpu.memory_space<vmem>>, vector<1x32x32xf32>
    %301 = vector.shape_cast %300 : vector<1x32x32xf32> to vector<32x32xf32>
    %c3_90 = arith.constant 3 : index
    %c0_91 = arith.constant 0 : index
    %c0_92 = arith.constant 0 : index
    %302 = vector.load %arg5[%c3_90, %c0_91, %c0_92] : memref<4x32x32xf32, #tpu.memory_space<vmem>>, vector<1x32x32xf32>
    %303 = vector.shape_cast %302 : vector<1x32x32xf32> to vector<32x32xf32>
    %c1_93 = arith.constant 1 : index
    %c0_94 = arith.constant 0 : index
    %c0_95 = arith.constant 0 : index
    %304 = vector.load %arg7[%c1_93, %c0_94, %c0_95] : memref<2x1x32xf32, #tpu.memory_space<vmem>>, vector<1x1x32xf32>
    %305 = vector.shape_cast %304 : vector<1x1x32xf32> to vector<1x32xf32>
    %c1_96 = arith.constant 1 : index
    %c0_97 = arith.constant 0 : index
    %c0_98 = arith.constant 0 : index
    %306 = vector.load %arg8[%c1_96, %c0_97, %c0_98] : memref<2x1x32xf32, #tpu.memory_space<vmem>>, vector<1x1x32xf32>
    %307 = vector.shape_cast %306 : vector<1x1x32xf32> to vector<1x32xf32>
    %c0_99 = arith.constant 0 : index
    %c0_100 = arith.constant 0 : index
    %308 = vector.load %arg9[%c0_99, %c0_100] : memref<1x32xf32, #tpu.memory_space<vmem>>, vector<1x32xf32>
    %309 = vector.extract_strided_slice %292 {offsets = [0, 0], sizes = [1, 32], strides = [1, 1]} : vector<8x32xf32> to vector<1x32xf32>
    %cst_101 = arith.constant dense<0.000000e+00> : vector<1x32xf32>
    %310 = tpu.matmul %305, %297, %cst_101 {dimension_numbers = #tpu.dot_dimension_numbers<[1], [0], [0], [1], [0, 0, 1, 1], [], []>} : vector<1x32xf32>, vector<32x32xf32>, vector<1x32xf32> -> vector<1x32xf32>
    %311 = arith.addf %309, %310 : vector<1x32xf32>
    %312 = arith.negf %311 : vector<1x32xf32>
    %313 = math.exp %312 : vector<1x32xf32>
    %cst_102 = arith.constant 1.000000e+00 : f32
    %314 = vector.broadcast %cst_102 : f32 to vector<1x32xf32>
    %315 = arith.addf %314, %313 : vector<1x32xf32>
    %316 = arith.divf %314, %315 : vector<1x32xf32>
    %317 = vector.extract_strided_slice %293 {offsets = [0, 0], sizes = [1, 32], strides = [1, 1]} : vector<8x32xf32> to vector<1x32xf32>
    %cst_103 = arith.constant dense<0.000000e+00> : vector<1x32xf32>
    %318 = tpu.matmul %305, %299, %cst_103 {dimension_numbers = #tpu.dot_dimension_numbers<[1], [0], [0], [1], [0, 0, 1, 1], [], []>} : vector<1x32xf32>, vector<32x32xf32>, vector<1x32xf32> -> vector<1x32xf32>
    %319 = arith.addf %317, %318 : vector<1x32xf32>
    %320 = arith.negf %319 : vector<1x32xf32>
    %321 = math.exp %320 : vector<1x32xf32>
    %cst_104 = arith.constant 1.000000e+00 : f32
    %322 = vector.broadcast %cst_104 : f32 to vector<1x32xf32>
    %323 = arith.addf %322, %321 : vector<1x32xf32>
    %324 = arith.divf %322, %323 : vector<1x32xf32>
    %325 = vector.extract_strided_slice %294 {offsets = [0, 0], sizes = [1, 32], strides = [1, 1]} : vector<8x32xf32> to vector<1x32xf32>
    %cst_105 = arith.constant dense<0.000000e+00> : vector<1x32xf32>
    %326 = tpu.matmul %305, %301, %cst_105 {dimension_numbers = #tpu.dot_dimension_numbers<[1], [0], [0], [1], [0, 0, 1, 1], [], []>} : vector<1x32xf32>, vector<32x32xf32>, vector<1x32xf32> -> vector<1x32xf32>
    %327 = arith.addf %325, %326 : vector<1x32xf32>
    %328 = math.tanh %327 : vector<1x32xf32>
    %329 = vector.extract_strided_slice %295 {offsets = [0, 0], sizes = [1, 32], strides = [1, 1]} : vector<8x32xf32> to vector<1x32xf32>
    %cst_106 = arith.constant dense<0.000000e+00> : vector<1x32xf32>
    %330 = tpu.matmul %305, %303, %cst_106 {dimension_numbers = #tpu.dot_dimension_numbers<[1], [0], [0], [1], [0, 0, 1, 1], [], []>} : vector<1x32xf32>, vector<32x32xf32>, vector<1x32xf32> -> vector<1x32xf32>
    %331 = arith.addf %329, %330 : vector<1x32xf32>
    %332 = arith.negf %331 : vector<1x32xf32>
    %333 = math.exp %332 : vector<1x32xf32>
    %cst_107 = arith.constant 1.000000e+00 : f32
    %334 = vector.broadcast %cst_107 : f32 to vector<1x32xf32>
    %335 = arith.addf %334, %333 : vector<1x32xf32>
    %336 = arith.divf %334, %335 : vector<1x32xf32>
    %337 = arith.mulf %324, %307 : vector<1x32xf32>
    %338 = arith.mulf %316, %328 : vector<1x32xf32>
    %339 = arith.addf %337, %338 : vector<1x32xf32>
    %340 = math.tanh %339 : vector<1x32xf32>
    %341 = arith.mulf %336, %340 : vector<1x32xf32>
    %342 = arith.mulf %341, %308 : vector<1x32xf32>
    %cst_108 = arith.constant dense<0.000000e+00> : vector<1xf32>
    %343 = vector.multi_reduction <add>, %342, %cst_108 [1] : vector<1x32xf32> to vector<1xf32>
    %344 = vector.shape_cast %343 : vector<1xf32> to vector<1x1xf32>
    %345 = vector.extract_strided_slice %292 {offsets = [1, 0], sizes = [1, 32], strides = [1, 1]} : vector<8x32xf32> to vector<1x32xf32>
    %cst_109 = arith.constant dense<0.000000e+00> : vector<1x32xf32>
    %346 = tpu.matmul %341, %297, %cst_109 {dimension_numbers = #tpu.dot_dimension_numbers<[1], [0], [0], [1], [0, 0, 1, 1], [], []>} : vector<1x32xf32>, vector<32x32xf32>, vector<1x32xf32> -> vector<1x32xf32>
    %347 = arith.addf %345, %346 : vector<1x32xf32>
    %348 = arith.negf %347 : vector<1x32xf32>
    %349 = math.exp %348 : vector<1x32xf32>
    %cst_110 = arith.constant 1.000000e+00 : f32
    %350 = vector.broadcast %cst_110 : f32 to vector<1x32xf32>
    %351 = arith.addf %350, %349 : vector<1x32xf32>
    %352 = arith.divf %350, %351 : vector<1x32xf32>
    %353 = vector.extract_strided_slice %293 {offsets = [1, 0], sizes = [1, 32], strides = [1, 1]} : vector<8x32xf32> to vector<1x32xf32>
    %cst_111 = arith.constant dense<0.000000e+00> : vector<1x32xf32>
    %354 = tpu.matmul %341, %299, %cst_111 {dimension_numbers = #tpu.dot_dimension_numbers<[1], [0], [0], [1], [0, 0, 1, 1], [], []>} : vector<1x32xf32>, vector<32x32xf32>, vector<1x32xf32> -> vector<1x32xf32>
    %355 = arith.addf %353, %354 : vector<1x32xf32>
    %356 = arith.negf %355 : vector<1x32xf32>
    %357 = math.exp %356 : vector<1x32xf32>
    %cst_112 = arith.constant 1.000000e+00 : f32
    %358 = vector.broadcast %cst_112 : f32 to vector<1x32xf32>
    %359 = arith.addf %358, %357 : vector<1x32xf32>
    %360 = arith.divf %358, %359 : vector<1x32xf32>
    %361 = vector.extract_strided_slice %294 {offsets = [1, 0], sizes = [1, 32], strides = [1, 1]} : vector<8x32xf32> to vector<1x32xf32>
    %cst_113 = arith.constant dense<0.000000e+00> : vector<1x32xf32>
    %362 = tpu.matmul %341, %301, %cst_113 {dimension_numbers = #tpu.dot_dimension_numbers<[1], [0], [0], [1], [0, 0, 1, 1], [], []>} : vector<1x32xf32>, vector<32x32xf32>, vector<1x32xf32> -> vector<1x32xf32>
    %363 = arith.addf %361, %362 : vector<1x32xf32>
    %364 = math.tanh %363 : vector<1x32xf32>
    %365 = vector.extract_strided_slice %295 {offsets = [1, 0], sizes = [1, 32], strides = [1, 1]} : vector<8x32xf32> to vector<1x32xf32>
    %cst_114 = arith.constant dense<0.000000e+00> : vector<1x32xf32>
    %366 = tpu.matmul %341, %303, %cst_114 {dimension_numbers = #tpu.dot_dimension_numbers<[1], [0], [0], [1], [0, 0, 1, 1], [], []>} : vector<1x32xf32>, vector<32x32xf32>, vector<1x32xf32> -> vector<1x32xf32>
    %367 = arith.addf %365, %366 : vector<1x32xf32>
    %368 = arith.negf %367 : vector<1x32xf32>
    %369 = math.exp %368 : vector<1x32xf32>
    %cst_115 = arith.constant 1.000000e+00 : f32
    %370 = vector.broadcast %cst_115 : f32 to vector<1x32xf32>
    %371 = arith.addf %370, %369 : vector<1x32xf32>
    %372 = arith.divf %370, %371 : vector<1x32xf32>
    %373 = arith.mulf %360, %339 : vector<1x32xf32>
    %374 = arith.mulf %352, %364 : vector<1x32xf32>
    %375 = arith.addf %373, %374 : vector<1x32xf32>
    %376 = math.tanh %375 : vector<1x32xf32>
    %377 = arith.mulf %372, %376 : vector<1x32xf32>
    %378 = arith.mulf %377, %308 : vector<1x32xf32>
    %cst_116 = arith.constant dense<0.000000e+00> : vector<1xf32>
    %379 = vector.multi_reduction <add>, %378, %cst_116 [1] : vector<1x32xf32> to vector<1xf32>
    %380 = vector.shape_cast %379 : vector<1xf32> to vector<1x1xf32>
    %381 = vector.extract_strided_slice %292 {offsets = [2, 0], sizes = [1, 32], strides = [1, 1]} : vector<8x32xf32> to vector<1x32xf32>
    %cst_117 = arith.constant dense<0.000000e+00> : vector<1x32xf32>
    %382 = tpu.matmul %377, %297, %cst_117 {dimension_numbers = #tpu.dot_dimension_numbers<[1], [0], [0], [1], [0, 0, 1, 1], [], []>} : vector<1x32xf32>, vector<32x32xf32>, vector<1x32xf32> -> vector<1x32xf32>
    %383 = arith.addf %381, %382 : vector<1x32xf32>
    %384 = arith.negf %383 : vector<1x32xf32>
    %385 = math.exp %384 : vector<1x32xf32>
    %cst_118 = arith.constant 1.000000e+00 : f32
    %386 = vector.broadcast %cst_118 : f32 to vector<1x32xf32>
    %387 = arith.addf %386, %385 : vector<1x32xf32>
    %388 = arith.divf %386, %387 : vector<1x32xf32>
    %389 = vector.extract_strided_slice %293 {offsets = [2, 0], sizes = [1, 32], strides = [1, 1]} : vector<8x32xf32> to vector<1x32xf32>
    %cst_119 = arith.constant dense<0.000000e+00> : vector<1x32xf32>
    %390 = tpu.matmul %377, %299, %cst_119 {dimension_numbers = #tpu.dot_dimension_numbers<[1], [0], [0], [1], [0, 0, 1, 1], [], []>} : vector<1x32xf32>, vector<32x32xf32>, vector<1x32xf32> -> vector<1x32xf32>
    %391 = arith.addf %389, %390 : vector<1x32xf32>
    %392 = arith.negf %391 : vector<1x32xf32>
    %393 = math.exp %392 : vector<1x32xf32>
    %cst_120 = arith.constant 1.000000e+00 : f32
    %394 = vector.broadcast %cst_120 : f32 to vector<1x32xf32>
    %395 = arith.addf %394, %393 : vector<1x32xf32>
    %396 = arith.divf %394, %395 : vector<1x32xf32>
    %397 = vector.extract_strided_slice %294 {offsets = [2, 0], sizes = [1, 32], strides = [1, 1]} : vector<8x32xf32> to vector<1x32xf32>
    %cst_121 = arith.constant dense<0.000000e+00> : vector<1x32xf32>
    %398 = tpu.matmul %377, %301, %cst_121 {dimension_numbers = #tpu.dot_dimension_numbers<[1], [0], [0], [1], [0, 0, 1, 1], [], []>} : vector<1x32xf32>, vector<32x32xf32>, vector<1x32xf32> -> vector<1x32xf32>
    %399 = arith.addf %397, %398 : vector<1x32xf32>
    %400 = math.tanh %399 : vector<1x32xf32>
    %401 = vector.extract_strided_slice %295 {offsets = [2, 0], sizes = [1, 32], strides = [1, 1]} : vector<8x32xf32> to vector<1x32xf32>
    %cst_122 = arith.constant dense<0.000000e+00> : vector<1x32xf32>
    %402 = tpu.matmul %377, %303, %cst_122 {dimension_numbers = #tpu.dot_dimension_numbers<[1], [0], [0], [1], [0, 0, 1, 1], [], []>} : vector<1x32xf32>, vector<32x32xf32>, vector<1x32xf32> -> vector<1x32xf32>
    %403 = arith.addf %401, %402 : vector<1x32xf32>
    %404 = arith.negf %403 : vector<1x32xf32>
    %405 = math.exp %404 : vector<1x32xf32>
    %cst_123 = arith.constant 1.000000e+00 : f32
    %406 = vector.broadcast %cst_123 : f32 to vector<1x32xf32>
    %407 = arith.addf %406, %405 : vector<1x32xf32>
    %408 = arith.divf %406, %407 : vector<1x32xf32>
    %409 = arith.mulf %396, %375 : vector<1x32xf32>
    %410 = arith.mulf %388, %400 : vector<1x32xf32>
    %411 = arith.addf %409, %410 : vector<1x32xf32>
    %412 = math.tanh %411 : vector<1x32xf32>
    %413 = arith.mulf %408, %412 : vector<1x32xf32>
    %414 = arith.mulf %413, %308 : vector<1x32xf32>
    %cst_124 = arith.constant dense<0.000000e+00> : vector<1xf32>
    %415 = vector.multi_reduction <add>, %414, %cst_124 [1] : vector<1x32xf32> to vector<1xf32>
    %416 = vector.shape_cast %415 : vector<1xf32> to vector<1x1xf32>
    %417 = vector.extract_strided_slice %292 {offsets = [3, 0], sizes = [1, 32], strides = [1, 1]} : vector<8x32xf32> to vector<1x32xf32>
    %cst_125 = arith.constant dense<0.000000e+00> : vector<1x32xf32>
    %418 = tpu.matmul %413, %297, %cst_125 {dimension_numbers = #tpu.dot_dimension_numbers<[1], [0], [0], [1], [0, 0, 1, 1], [], []>} : vector<1x32xf32>, vector<32x32xf32>, vector<1x32xf32> -> vector<1x32xf32>
    %419 = arith.addf %417, %418 : vector<1x32xf32>
    %420 = arith.negf %419 : vector<1x32xf32>
    %421 = math.exp %420 : vector<1x32xf32>
    %cst_126 = arith.constant 1.000000e+00 : f32
    %422 = vector.broadcast %cst_126 : f32 to vector<1x32xf32>
    %423 = arith.addf %422, %421 : vector<1x32xf32>
    %424 = arith.divf %422, %423 : vector<1x32xf32>
    %425 = vector.extract_strided_slice %293 {offsets = [3, 0], sizes = [1, 32], strides = [1, 1]} : vector<8x32xf32> to vector<1x32xf32>
    %cst_127 = arith.constant dense<0.000000e+00> : vector<1x32xf32>
    %426 = tpu.matmul %413, %299, %cst_127 {dimension_numbers = #tpu.dot_dimension_numbers<[1], [0], [0], [1], [0, 0, 1, 1], [], []>} : vector<1x32xf32>, vector<32x32xf32>, vector<1x32xf32> -> vector<1x32xf32>
    %427 = arith.addf %425, %426 : vector<1x32xf32>
    %428 = arith.negf %427 : vector<1x32xf32>
    %429 = math.exp %428 : vector<1x32xf32>
    %cst_128 = arith.constant 1.000000e+00 : f32
    %430 = vector.broadcast %cst_128 : f32 to vector<1x32xf32>
    %431 = arith.addf %430, %429 : vector<1x32xf32>
    %432 = arith.divf %430, %431 : vector<1x32xf32>
    %433 = vector.extract_strided_slice %294 {offsets = [3, 0], sizes = [1, 32], strides = [1, 1]} : vector<8x32xf32> to vector<1x32xf32>
    %cst_129 = arith.constant dense<0.000000e+00> : vector<1x32xf32>
    %434 = tpu.matmul %413, %301, %cst_129 {dimension_numbers = #tpu.dot_dimension_numbers<[1], [0], [0], [1], [0, 0, 1, 1], [], []>} : vector<1x32xf32>, vector<32x32xf32>, vector<1x32xf32> -> vector<1x32xf32>
    %435 = arith.addf %433, %434 : vector<1x32xf32>
    %436 = math.tanh %435 : vector<1x32xf32>
    %437 = vector.extract_strided_slice %295 {offsets = [3, 0], sizes = [1, 32], strides = [1, 1]} : vector<8x32xf32> to vector<1x32xf32>
    %cst_130 = arith.constant dense<0.000000e+00> : vector<1x32xf32>
    %438 = tpu.matmul %413, %303, %cst_130 {dimension_numbers = #tpu.dot_dimension_numbers<[1], [0], [0], [1], [0, 0, 1, 1], [], []>} : vector<1x32xf32>, vector<32x32xf32>, vector<1x32xf32> -> vector<1x32xf32>
    %439 = arith.addf %437, %438 : vector<1x32xf32>
    %440 = arith.negf %439 : vector<1x32xf32>
    %441 = math.exp %440 : vector<1x32xf32>
    %cst_131 = arith.constant 1.000000e+00 : f32
    %442 = vector.broadcast %cst_131 : f32 to vector<1x32xf32>
    %443 = arith.addf %442, %441 : vector<1x32xf32>
    %444 = arith.divf %442, %443 : vector<1x32xf32>
    %445 = arith.mulf %432, %411 : vector<1x32xf32>
    %446 = arith.mulf %424, %436 : vector<1x32xf32>
    %447 = arith.addf %445, %446 : vector<1x32xf32>
    %448 = math.tanh %447 : vector<1x32xf32>
    %449 = arith.mulf %444, %448 : vector<1x32xf32>
    %450 = arith.mulf %449, %308 : vector<1x32xf32>
    %cst_132 = arith.constant dense<0.000000e+00> : vector<1xf32>
    %451 = vector.multi_reduction <add>, %450, %cst_132 [1] : vector<1x32xf32> to vector<1xf32>
    %452 = vector.shape_cast %451 : vector<1xf32> to vector<1x1xf32>
    %453 = vector.extract_strided_slice %292 {offsets = [4, 0], sizes = [1, 32], strides = [1, 1]} : vector<8x32xf32> to vector<1x32xf32>
    %cst_133 = arith.constant dense<0.000000e+00> : vector<1x32xf32>
    %454 = tpu.matmul %449, %297, %cst_133 {dimension_numbers = #tpu.dot_dimension_numbers<[1], [0], [0], [1], [0, 0, 1, 1], [], []>} : vector<1x32xf32>, vector<32x32xf32>, vector<1x32xf32> -> vector<1x32xf32>
    %455 = arith.addf %453, %454 : vector<1x32xf32>
    %456 = arith.negf %455 : vector<1x32xf32>
    %457 = math.exp %456 : vector<1x32xf32>
    %cst_134 = arith.constant 1.000000e+00 : f32
    %458 = vector.broadcast %cst_134 : f32 to vector<1x32xf32>
    %459 = arith.addf %458, %457 : vector<1x32xf32>
    %460 = arith.divf %458, %459 : vector<1x32xf32>
    %461 = vector.extract_strided_slice %293 {offsets = [4, 0], sizes = [1, 32], strides = [1, 1]} : vector<8x32xf32> to vector<1x32xf32>
    %cst_135 = arith.constant dense<0.000000e+00> : vector<1x32xf32>
    %462 = tpu.matmul %449, %299, %cst_135 {dimension_numbers = #tpu.dot_dimension_numbers<[1], [0], [0], [1], [0, 0, 1, 1], [], []>} : vector<1x32xf32>, vector<32x32xf32>, vector<1x32xf32> -> vector<1x32xf32>
    %463 = arith.addf %461, %462 : vector<1x32xf32>
    %464 = arith.negf %463 : vector<1x32xf32>
    %465 = math.exp %464 : vector<1x32xf32>
    %cst_136 = arith.constant 1.000000e+00 : f32
    %466 = vector.broadcast %cst_136 : f32 to vector<1x32xf32>
    %467 = arith.addf %466, %465 : vector<1x32xf32>
    %468 = arith.divf %466, %467 : vector<1x32xf32>
    %469 = vector.extract_strided_slice %294 {offsets = [4, 0], sizes = [1, 32], strides = [1, 1]} : vector<8x32xf32> to vector<1x32xf32>
    %cst_137 = arith.constant dense<0.000000e+00> : vector<1x32xf32>
    %470 = tpu.matmul %449, %301, %cst_137 {dimension_numbers = #tpu.dot_dimension_numbers<[1], [0], [0], [1], [0, 0, 1, 1], [], []>} : vector<1x32xf32>, vector<32x32xf32>, vector<1x32xf32> -> vector<1x32xf32>
    %471 = arith.addf %469, %470 : vector<1x32xf32>
    %472 = math.tanh %471 : vector<1x32xf32>
    %473 = vector.extract_strided_slice %295 {offsets = [4, 0], sizes = [1, 32], strides = [1, 1]} : vector<8x32xf32> to vector<1x32xf32>
    %cst_138 = arith.constant dense<0.000000e+00> : vector<1x32xf32>
    %474 = tpu.matmul %449, %303, %cst_138 {dimension_numbers = #tpu.dot_dimension_numbers<[1], [0], [0], [1], [0, 0, 1, 1], [], []>} : vector<1x32xf32>, vector<32x32xf32>, vector<1x32xf32> -> vector<1x32xf32>
    %475 = arith.addf %473, %474 : vector<1x32xf32>
    %476 = arith.negf %475 : vector<1x32xf32>
    %477 = math.exp %476 : vector<1x32xf32>
    %cst_139 = arith.constant 1.000000e+00 : f32
    %478 = vector.broadcast %cst_139 : f32 to vector<1x32xf32>
    %479 = arith.addf %478, %477 : vector<1x32xf32>
    %480 = arith.divf %478, %479 : vector<1x32xf32>
    %481 = arith.mulf %468, %447 : vector<1x32xf32>
    %482 = arith.mulf %460, %472 : vector<1x32xf32>
    %483 = arith.addf %481, %482 : vector<1x32xf32>
    %484 = math.tanh %483 : vector<1x32xf32>
    %485 = arith.mulf %480, %484 : vector<1x32xf32>
    %486 = arith.mulf %485, %308 : vector<1x32xf32>
    %cst_140 = arith.constant dense<0.000000e+00> : vector<1xf32>
    %487 = vector.multi_reduction <add>, %486, %cst_140 [1] : vector<1x32xf32> to vector<1xf32>
    %488 = vector.shape_cast %487 : vector<1xf32> to vector<1x1xf32>
    %489 = vector.extract_strided_slice %292 {offsets = [5, 0], sizes = [1, 32], strides = [1, 1]} : vector<8x32xf32> to vector<1x32xf32>
    %cst_141 = arith.constant dense<0.000000e+00> : vector<1x32xf32>
    %490 = tpu.matmul %485, %297, %cst_141 {dimension_numbers = #tpu.dot_dimension_numbers<[1], [0], [0], [1], [0, 0, 1, 1], [], []>} : vector<1x32xf32>, vector<32x32xf32>, vector<1x32xf32> -> vector<1x32xf32>
    %491 = arith.addf %489, %490 : vector<1x32xf32>
    %492 = arith.negf %491 : vector<1x32xf32>
    %493 = math.exp %492 : vector<1x32xf32>
    %cst_142 = arith.constant 1.000000e+00 : f32
    %494 = vector.broadcast %cst_142 : f32 to vector<1x32xf32>
    %495 = arith.addf %494, %493 : vector<1x32xf32>
    %496 = arith.divf %494, %495 : vector<1x32xf32>
    %497 = vector.extract_strided_slice %293 {offsets = [5, 0], sizes = [1, 32], strides = [1, 1]} : vector<8x32xf32> to vector<1x32xf32>
    %cst_143 = arith.constant dense<0.000000e+00> : vector<1x32xf32>
    %498 = tpu.matmul %485, %299, %cst_143 {dimension_numbers = #tpu.dot_dimension_numbers<[1], [0], [0], [1], [0, 0, 1, 1], [], []>} : vector<1x32xf32>, vector<32x32xf32>, vector<1x32xf32> -> vector<1x32xf32>
    %499 = arith.addf %497, %498 : vector<1x32xf32>
    %500 = arith.negf %499 : vector<1x32xf32>
    %501 = math.exp %500 : vector<1x32xf32>
    %cst_144 = arith.constant 1.000000e+00 : f32
    %502 = vector.broadcast %cst_144 : f32 to vector<1x32xf32>
    %503 = arith.addf %502, %501 : vector<1x32xf32>
    %504 = arith.divf %502, %503 : vector<1x32xf32>
    %505 = vector.extract_strided_slice %294 {offsets = [5, 0], sizes = [1, 32], strides = [1, 1]} : vector<8x32xf32> to vector<1x32xf32>
    %cst_145 = arith.constant dense<0.000000e+00> : vector<1x32xf32>
    %506 = tpu.matmul %485, %301, %cst_145 {dimension_numbers = #tpu.dot_dimension_numbers<[1], [0], [0], [1], [0, 0, 1, 1], [], []>} : vector<1x32xf32>, vector<32x32xf32>, vector<1x32xf32> -> vector<1x32xf32>
    %507 = arith.addf %505, %506 : vector<1x32xf32>
    %508 = math.tanh %507 : vector<1x32xf32>
    %509 = vector.extract_strided_slice %295 {offsets = [5, 0], sizes = [1, 32], strides = [1, 1]} : vector<8x32xf32> to vector<1x32xf32>
    %cst_146 = arith.constant dense<0.000000e+00> : vector<1x32xf32>
    %510 = tpu.matmul %485, %303, %cst_146 {dimension_numbers = #tpu.dot_dimension_numbers<[1], [0], [0], [1], [0, 0, 1, 1], [], []>} : vector<1x32xf32>, vector<32x32xf32>, vector<1x32xf32> -> vector<1x32xf32>
    %511 = arith.addf %509, %510 : vector<1x32xf32>
    %512 = arith.negf %511 : vector<1x32xf32>
    %513 = math.exp %512 : vector<1x32xf32>
    %cst_147 = arith.constant 1.000000e+00 : f32
    %514 = vector.broadcast %cst_147 : f32 to vector<1x32xf32>
    %515 = arith.addf %514, %513 : vector<1x32xf32>
    %516 = arith.divf %514, %515 : vector<1x32xf32>
    %517 = arith.mulf %504, %483 : vector<1x32xf32>
    %518 = arith.mulf %496, %508 : vector<1x32xf32>
    %519 = arith.addf %517, %518 : vector<1x32xf32>
    %520 = math.tanh %519 : vector<1x32xf32>
    %521 = arith.mulf %516, %520 : vector<1x32xf32>
    %522 = arith.mulf %521, %308 : vector<1x32xf32>
    %cst_148 = arith.constant dense<0.000000e+00> : vector<1xf32>
    %523 = vector.multi_reduction <add>, %522, %cst_148 [1] : vector<1x32xf32> to vector<1xf32>
    %524 = vector.shape_cast %523 : vector<1xf32> to vector<1x1xf32>
    %525 = vector.extract_strided_slice %292 {offsets = [6, 0], sizes = [1, 32], strides = [1, 1]} : vector<8x32xf32> to vector<1x32xf32>
    %cst_149 = arith.constant dense<0.000000e+00> : vector<1x32xf32>
    %526 = tpu.matmul %521, %297, %cst_149 {dimension_numbers = #tpu.dot_dimension_numbers<[1], [0], [0], [1], [0, 0, 1, 1], [], []>} : vector<1x32xf32>, vector<32x32xf32>, vector<1x32xf32> -> vector<1x32xf32>
    %527 = arith.addf %525, %526 : vector<1x32xf32>
    %528 = arith.negf %527 : vector<1x32xf32>
    %529 = math.exp %528 : vector<1x32xf32>
    %cst_150 = arith.constant 1.000000e+00 : f32
    %530 = vector.broadcast %cst_150 : f32 to vector<1x32xf32>
    %531 = arith.addf %530, %529 : vector<1x32xf32>
    %532 = arith.divf %530, %531 : vector<1x32xf32>
    %533 = vector.extract_strided_slice %293 {offsets = [6, 0], sizes = [1, 32], strides = [1, 1]} : vector<8x32xf32> to vector<1x32xf32>
    %cst_151 = arith.constant dense<0.000000e+00> : vector<1x32xf32>
    %534 = tpu.matmul %521, %299, %cst_151 {dimension_numbers = #tpu.dot_dimension_numbers<[1], [0], [0], [1], [0, 0, 1, 1], [], []>} : vector<1x32xf32>, vector<32x32xf32>, vector<1x32xf32> -> vector<1x32xf32>
    %535 = arith.addf %533, %534 : vector<1x32xf32>
    %536 = arith.negf %535 : vector<1x32xf32>
    %537 = math.exp %536 : vector<1x32xf32>
    %cst_152 = arith.constant 1.000000e+00 : f32
    %538 = vector.broadcast %cst_152 : f32 to vector<1x32xf32>
    %539 = arith.addf %538, %537 : vector<1x32xf32>
    %540 = arith.divf %538, %539 : vector<1x32xf32>
    %541 = vector.extract_strided_slice %294 {offsets = [6, 0], sizes = [1, 32], strides = [1, 1]} : vector<8x32xf32> to vector<1x32xf32>
    %cst_153 = arith.constant dense<0.000000e+00> : vector<1x32xf32>
    %542 = tpu.matmul %521, %301, %cst_153 {dimension_numbers = #tpu.dot_dimension_numbers<[1], [0], [0], [1], [0, 0, 1, 1], [], []>} : vector<1x32xf32>, vector<32x32xf32>, vector<1x32xf32> -> vector<1x32xf32>
    %543 = arith.addf %541, %542 : vector<1x32xf32>
    %544 = math.tanh %543 : vector<1x32xf32>
    %545 = vector.extract_strided_slice %295 {offsets = [6, 0], sizes = [1, 32], strides = [1, 1]} : vector<8x32xf32> to vector<1x32xf32>
    %cst_154 = arith.constant dense<0.000000e+00> : vector<1x32xf32>
    %546 = tpu.matmul %521, %303, %cst_154 {dimension_numbers = #tpu.dot_dimension_numbers<[1], [0], [0], [1], [0, 0, 1, 1], [], []>} : vector<1x32xf32>, vector<32x32xf32>, vector<1x32xf32> -> vector<1x32xf32>
    %547 = arith.addf %545, %546 : vector<1x32xf32>
    %548 = arith.negf %547 : vector<1x32xf32>
    %549 = math.exp %548 : vector<1x32xf32>
    %cst_155 = arith.constant 1.000000e+00 : f32
    %550 = vector.broadcast %cst_155 : f32 to vector<1x32xf32>
    %551 = arith.addf %550, %549 : vector<1x32xf32>
    %552 = arith.divf %550, %551 : vector<1x32xf32>
    %553 = arith.mulf %540, %519 : vector<1x32xf32>
    %554 = arith.mulf %532, %544 : vector<1x32xf32>
    %555 = arith.addf %553, %554 : vector<1x32xf32>
    %556 = math.tanh %555 : vector<1x32xf32>
    %557 = arith.mulf %552, %556 : vector<1x32xf32>
    %558 = arith.mulf %557, %308 : vector<1x32xf32>
    %cst_156 = arith.constant dense<0.000000e+00> : vector<1xf32>
    %559 = vector.multi_reduction <add>, %558, %cst_156 [1] : vector<1x32xf32> to vector<1xf32>
    %560 = vector.shape_cast %559 : vector<1xf32> to vector<1x1xf32>
    %561 = vector.extract_strided_slice %292 {offsets = [7, 0], sizes = [1, 32], strides = [1, 1]} : vector<8x32xf32> to vector<1x32xf32>
    %cst_157 = arith.constant dense<0.000000e+00> : vector<1x32xf32>
    %562 = tpu.matmul %557, %297, %cst_157 {dimension_numbers = #tpu.dot_dimension_numbers<[1], [0], [0], [1], [0, 0, 1, 1], [], []>} : vector<1x32xf32>, vector<32x32xf32>, vector<1x32xf32> -> vector<1x32xf32>
    %563 = arith.addf %561, %562 : vector<1x32xf32>
    %564 = arith.negf %563 : vector<1x32xf32>
    %565 = math.exp %564 : vector<1x32xf32>
    %cst_158 = arith.constant 1.000000e+00 : f32
    %566 = vector.broadcast %cst_158 : f32 to vector<1x32xf32>
    %567 = arith.addf %566, %565 : vector<1x32xf32>
    %568 = arith.divf %566, %567 : vector<1x32xf32>
    %569 = vector.extract_strided_slice %293 {offsets = [7, 0], sizes = [1, 32], strides = [1, 1]} : vector<8x32xf32> to vector<1x32xf32>
    %cst_159 = arith.constant dense<0.000000e+00> : vector<1x32xf32>
    %570 = tpu.matmul %557, %299, %cst_159 {dimension_numbers = #tpu.dot_dimension_numbers<[1], [0], [0], [1], [0, 0, 1, 1], [], []>} : vector<1x32xf32>, vector<32x32xf32>, vector<1x32xf32> -> vector<1x32xf32>
    %571 = arith.addf %569, %570 : vector<1x32xf32>
    %572 = arith.negf %571 : vector<1x32xf32>
    %573 = math.exp %572 : vector<1x32xf32>
    %cst_160 = arith.constant 1.000000e+00 : f32
    %574 = vector.broadcast %cst_160 : f32 to vector<1x32xf32>
    %575 = arith.addf %574, %573 : vector<1x32xf32>
    %576 = arith.divf %574, %575 : vector<1x32xf32>
    %577 = vector.extract_strided_slice %294 {offsets = [7, 0], sizes = [1, 32], strides = [1, 1]} : vector<8x32xf32> to vector<1x32xf32>
    %cst_161 = arith.constant dense<0.000000e+00> : vector<1x32xf32>
    %578 = tpu.matmul %557, %301, %cst_161 {dimension_numbers = #tpu.dot_dimension_numbers<[1], [0], [0], [1], [0, 0, 1, 1], [], []>} : vector<1x32xf32>, vector<32x32xf32>, vector<1x32xf32> -> vector<1x32xf32>
    %579 = arith.addf %577, %578 : vector<1x32xf32>
    %580 = math.tanh %579 : vector<1x32xf32>
    %581 = vector.extract_strided_slice %295 {offsets = [7, 0], sizes = [1, 32], strides = [1, 1]} : vector<8x32xf32> to vector<1x32xf32>
    %cst_162 = arith.constant dense<0.000000e+00> : vector<1x32xf32>
    %582 = tpu.matmul %557, %303, %cst_162 {dimension_numbers = #tpu.dot_dimension_numbers<[1], [0], [0], [1], [0, 0, 1, 1], [], []>} : vector<1x32xf32>, vector<32x32xf32>, vector<1x32xf32> -> vector<1x32xf32>
    %583 = arith.addf %581, %582 : vector<1x32xf32>
    %584 = arith.negf %583 : vector<1x32xf32>
    %585 = math.exp %584 : vector<1x32xf32>
    %cst_163 = arith.constant 1.000000e+00 : f32
    %586 = vector.broadcast %cst_163 : f32 to vector<1x32xf32>
    %587 = arith.addf %586, %585 : vector<1x32xf32>
    %588 = arith.divf %586, %587 : vector<1x32xf32>
    %589 = arith.mulf %576, %555 : vector<1x32xf32>
    %590 = arith.mulf %568, %580 : vector<1x32xf32>
    %591 = arith.addf %589, %590 : vector<1x32xf32>
    %592 = math.tanh %591 : vector<1x32xf32>
    %593 = arith.mulf %588, %592 : vector<1x32xf32>
    %594 = arith.mulf %593, %308 : vector<1x32xf32>
    %cst_164 = arith.constant dense<0.000000e+00> : vector<1xf32>
    %595 = vector.multi_reduction <add>, %594, %cst_164 [1] : vector<1x32xf32> to vector<1xf32>
    %596 = vector.shape_cast %595 : vector<1xf32> to vector<1x1xf32>
    %597 = tpu.concatenate %344, %380, %416, %452, %488, %524, %560, %596 in 1 : vector<1x1xf32>, vector<1x1xf32>, vector<1x1xf32>, vector<1x1xf32>, vector<1x1xf32>, vector<1x1xf32>, vector<1x1xf32>, vector<1x1xf32> -> vector<1x8xf32>
    %c0_165 = arith.constant 0 : index
    %c0_166 = arith.constant 0 : index
    %598 = vector.load %arg10[%c0_165, %c0_166] : memref<1x1xf32, #tpu.memory_space<vmem>>, vector<1x1xf32>
    %599 = vector.broadcast %598 : vector<1x1xf32> to vector<1x8xf32>
    %600 = arith.addf %597, %599 : vector<1x8xf32>
    %c0_167 = arith.constant 0 : index
    %c0_168 = arith.constant 0 : index
    %601 = vector.load %arg11[%c0_167, %c0_168] : memref<1x8xf32, #tpu.memory_space<vmem>>, vector<1x8xf32>
    tpu.vector_store %arg11[%c0_167, %c0_168], %600 {strides = array<i32>} : memref<1x8xf32, #tpu.memory_space<vmem>>, vector<1x8xf32>,
    return
  }
}

</mosaic_0001>

<bundles_post_ra>
// kernel: tpu_custom_call.1
= control target key start
LH: loop header
LB: loop body
LE: loop exit
PB: predicated region body
PF: predicated region fallthrough
CT: control target
= control target key end

     0   :  { %s4673_s0 = inlined_call_operand.vmem [shape: f32[8,4], index: 0, kind: input, shape index: {}]   ;;  %s4674_s1 = inlined_call_operand.vmem [shape: f32[4,128], index: 1, kind: input, shape index: {}]   ;;  %s4675_s2 = inlined_call_operand.hbm [shape: f32[4,32,32], index: 2, kind: input, shape index: {}]   ;;  %s4676_s3 = inlined_call_operand.vmem [shape: f32[1,128], index: 3, kind: input, shape index: {}]   ;;  %s4677_s4 = inlined_call_operand.hbm [shape: f32[32,128], index: 4, kind: input, shape index: {}]   ;;  %s4678_s5 = inlined_call_operand.hbm [shape: f32[4,32,32], index: 5, kind: input, shape index: {}]   ;;  %s4679_s6 = inlined_call_operand.vmem [shape: f32[1,128], index: 6, kind: input, shape index: {}]   ;;  %s4680_s7 = inlined_call_operand.vmem [shape: f32[2,1,32], index: 7, kind: input, shape index: {}]   ;;  %s4681_s8 = inlined_call_operand.vmem [shape: f32[2,1,32], index: 8, kind: input, shape index: {}]   ;;  %s4682_s9 = inlined_call_operand.vmem [shape: f32[1,32], index: 9, kind: input, shape index: {}]   ;;  %s4683_s10 = inlined_call_operand.<no memory space> [shape: f32[1,1], index: 10, kind: input, shape index: {}]   ;;  %s4684_s11 = inlined_call_operand.hbm [shape: f32[1,8], index: 11, kind: output, shape index: {}]  }
   0x1   :  { %v16_v0 = vstv %s4683_s10 }
   0x2   :  { %17 = vst [vmem:[#allocation2] sm:$0x1] %v16_v0 }
   0x3   :  { %18 = vsyncpa [#allocation4], 0 }
   0x4   :  { %19 = vsyncpa [#allocation7], 0 }
   0x5   :  { %20 = vsyncpa [#allocation5], 0  ;;  %s44_s21 = sshll.u32 %s4677_s4, 4  ;;  %s3837_s22 = smov [#allocation6]   ;;  %s45_s21 = int_to_ptr.hbm [resolvable:$true] %s44_s21 }
   0x6   :  { %s46_s23 = sshll.u32 %s3837_s22, 4  ;;  %s29_s26 = sshll.u32 %s4675_s2, 4  ;;  %s47_s23 = int_to_ptr.vmem [resolvable:$true] %s46_s23  ;;  %s30_s26 = int_to_ptr.hbm [resolvable:$true] %s29_s26 }
   0x7   :  { %s3838_s27 = smov 128   ;;  %s3839_s28 = smov 8  }
   0x8   :  { %52 = dma.hbm_to_vmem [thread:$0]  %s45_s21, 512, %s47_s23, [#allocation7], %s3838_s27, %s3838_s27, %s3839_s28  }
   0x9   :  { %s3840_s10 = smov [#allocation3]   ;;  %s57_s13 = sshll.u32 %s4678_s5, 4  ;;  %s58_s13 = int_to_ptr.hbm [resolvable:$true] %s57_s13 }
   0xa   :  { %s31_s29 = sshll.u32 %s3840_s10, 4  ;;  %s3841_s4 = smov [#allocation8]   ;;  %s32_s29 = int_to_ptr.vmem [resolvable:$true] %s31_s29 }
   0xb   :  { %37 = dma.hbm_to_vmem [thread:$0]  %s30_s26, 2048, %s32_s29, [#allocation4], %s3838_s27, %s3838_s27, %s3839_s28  }
   0xc   :  { %s59_s14 = sshll.u32 %s3841_s4, 4  ;;  %s60_s14 = int_to_ptr.vmem [resolvable:$true] %s59_s14 }
   0xd   :  { %65 = dma.hbm_to_vmem [thread:$0]  %s58_s13, 2048, %s60_s14, [#allocation7], %s3838_s27, %s3838_s27, %s3839_s28  }
   0xe   :  { %3831 = dma.done.wait [#allocation4], 2048  }
   0xf   :  { %3832 = vsyncadd [#allocation4], 4294965248 }
  0x10   :  { %3833 = dma.done.wait [#allocation7], 2560  }
  0x11   :  { %3834 = vsyncadd [#allocation7], 4294964736  ;;  %v3919_v1 = vld [vmem:[#allocation3 + $0x38] sm:$0xff]  ;;  %v3923_v3 = vld [vmem:[#allocation3 + $0x30] sm:$0xff]  ;;  %vm98_vm0 = vcmask 1043456   ;;  %vm94_vm1 = vcmask 31744  }
  0x12   :  { %v3921_v2 = vld [vmem:[#allocation3 + $0x58] sm:$0xff]  ;;  %199 = vmatpush.msra.mxu2 %v3919_v1  ;;  %v3927_v4 = vld [vmem:[#allocation3 + $0x50] sm:$0xff]  ;;  %v3929_v5 = vld [vmem:[#allocation3 + $0x28] sm:$0xff]  ;;  %vm143_vm2 = vcmask 261120   ;;  %s3302_s30 = sshll.u32 %s4684_s11, 4  ;;  %s3303_s30 = int_to_ptr.hbm [resolvable:$true] %s3302_s30 }
  0x13   :  { %243 = vmatpush.msra.mxu3 %v3921_v2  ;;  %v3931_v6 = vld [vmem:[#allocation3 + $0x48] sm:$0xff]  ;;  %v3933_v7 = vld [vmem:[#allocation3 + $0x20] sm:$0xff]  ;;  %v3937_v8 = vld [vmem:[#allocation3 + $0x18] sm:$0xff] }
  0x14   :  { %200 = vmatpush.msra.mxu2 %v3923_v3  ;;  %v3939_v9 = vld [vmem:[#allocation3 + $0x10] sm:$0xff]  ;;  %v89_v10 = vld [vmem:[%s4674_s1] sm:$0xf]  ;;  %159 = vmatpush.msra.mxu1 %v3937_v8  ;;  %v3957_v14 = vld [vmem:[#allocation3 + $0x8] sm:$0xff]  ;;  %s3843_s1 = smov 32  }
  0x15   :  { %244 = vmatpush.msra.mxu3 %v3927_v4  ;;  %v3944_v11 = vld [vmem:[#allocation3 + $0x40] sm:$0xff]  ;;  %v141_v12 = vld [vmem:[%s4680_s7] sm:$0x1]  ;;  %3313 = vmatpush.msk.msra.mxu0 %vm98_vm0, %v89_v10  ;;  %v4002_v20 = vld [vmem:[#allocation3 + $0x70] sm:$0xff] }
  0x16   :  { %v88_v13 = vld [vmem:[%s4673_s0] sm:$0xff]  ;;  %201 = vmatpush.msra.mxu2 %v3929_v5  ;;  %160 = vmatpush.msra.mxu1 %v3939_v9  ;;  %s3842_s0 = smov 64   ;;  %v4005_v21 = vld [vmem:[#allocation3 + $0x68] sm:$0xff] }
  0x17   :  { %245 = vmatpush.msra.mxu3 %v3931_v6  ;;  %3314 = vmatmul.msk.f32.vlgmr.msra.gmra.mxu0 %vm94_vm1, %v88_v13  ;;  %v3964_v15 = vld [vmem:[#allocation3] sm:$0xff]  ;;  %v3442_v18 = vld [vmem:[%s4681_s8] ss:$0 sm:$0xff] }
  0x18   :  { %202 = vmatpush.msra.mxu2 %v3933_v7  ;;  %161 = vmatpush.msra.mxu1 %v3957_v14  ;;  %v3999_v19 = vld [vmem:[#allocation3 + $0x78] sm:$0xff]  ;;  %v4008_v22 = vld [vmem:[#allocation3 + $0x60] sm:$0xff] }
  0x19   :  { %246 = vmatpush.msra.mxu3 %v3944_v11  ;;  %3317 = vmatmul.msk.f32.vlgmr.msra.gmra.mxu2 %vm143_vm2, %v141_v12  ;;  %v3443_v23 = vld [vmem:[%s4676_s3] ss:$0 sm:$0xff]  ;;  %s3844_s3 = smov 96  }
  0x1a   :  { %3319 = vmatmul.msk.f32.vlgmr.msra.gmra.mxu3 %vm143_vm2, %v141_v12  ;;  %383 = vmatpush.msrb.mxu2 %v3919_v1 }
  0x1b   :  { %428 = vmatpush.msrb.mxu3 %v3921_v2  ;;  %162 = vmatpush.msra.mxu1 %v3964_v15 }
  0x1c   :  { %3315 = vmatmul.msk.f32.vlgmr.msra.gmra.mxu1 %vm143_vm2, %v141_v12  ;;  %384 = vmatpush.msrb.mxu2 %v3923_v3 }
  0x1d   :  { %429 = vmatpush.msrb.mxu3 %v3927_v4  ;;  %340 = vmatpush.msrb.mxu1 %v3937_v8 }
  0x1e   :  { %385 = vmatpush.msrb.mxu2 %v3929_v5  ;;  %269 = vmatpush.msrb.mxu0 %v3999_v19 }
  0x1f   :  { %430 = vmatpush.msrb.mxu3 %v3931_v6  ;;  %341 = vmatpush.msrb.mxu1 %v3939_v9 }
  0x20   :  { %386 = vmatpush.msrb.mxu2 %v3933_v7  ;;  %270 = vmatpush.msrb.mxu0 %v4002_v20 }
  0x21   :  { %431 = vmatpush.msrb.mxu3 %v3944_v11  ;;  %342 = vmatpush.msrb.mxu1 %v3957_v14 }
  0x22   :  { %569 = vmatpush.msra.mxu2 %v3919_v1  ;;  %271 = vmatpush.msrb.mxu0 %v4005_v21 }
  0x23   :  { %614 = vmatpush.msra.mxu3 %v3921_v2  ;;  %343 = vmatpush.msrb.mxu1 %v3964_v15 }
  0x24   :  { %570 = vmatpush.msra.mxu2 %v3923_v3  ;;  %272 = vmatpush.msrb.mxu0 %v4008_v22 }
  0x25   :  { %615 = vmatpush.msra.mxu3 %v3927_v4  ;;  %526 = vmatpush.msra.mxu1 %v3937_v8 }
  0x26   :  { %571 = vmatpush.msra.mxu2 %v3929_v5  ;;  %3320 = vmatmul.msk.f32.vlgmr.msrb.gmra.mxu0 %vm143_vm2, %v141_v12 }
  0x27   :  { %616 = vmatpush.msra.mxu3 %v3931_v6  ;;  %527 = vmatpush.msra.mxu1 %v3939_v9 }
  0x28   :  { %572 = vmatpush.msra.mxu2 %v3933_v7  ;;  %455 = vmatpush.msra.mxu0 %v3999_v19 }
  0x29   :  { %617 = vmatpush.msra.mxu3 %v3944_v11  ;;  %528 = vmatpush.msra.mxu1 %v3957_v14 }
  0x2a   :  { %456 = vmatpush.msra.mxu0 %v4002_v20 }
  0x2b   :  { %529 = vmatpush.msra.mxu1 %v3964_v15 }
  0x2c   :  { %457 = vmatpush.msra.mxu0 %v4005_v21 }
  0x2e   :  { %458 = vmatpush.msra.mxu0 %v4008_v22 }
  0x30   :  { %641 = vmatpush.msrb.mxu0 %v3999_v19 }
  0x32   :  { %642 = vmatpush.msrb.mxu0 %v4002_v20 }
  0x34   :  { %643 = vmatpush.msrb.mxu0 %v4005_v21 }
  0x36   :  { %644 = vmatpush.msrb.mxu0 %v4008_v22 }
  0x94   :  { %v119_v24 = vpop.f32.mrf.mxu0 }
  0x95   :  { %v4023_v25 = vadd.f32 %v3443_v23, %v119_v24 }
  0x99   :  { %v164_v29 = vpop.f32.mrf.mxu1 }
  0x9a   :  { %v167_v30 = vadd.f32 %v164_v29, %v4023_v25 }
  0x9c   :  { %v204_v16 = vpop.f32.mrf.mxu2  ;;  %v3316_v31 = vmul.f32 -1.442695, %v167_v30 }
  0x9d   :  { %v248_v17 = vpop.f32.mrf.mxu3  ;;  %208 = vrot.lane.b32.xlu1 %v204_v16, %s3843_s1 }
  0x9e   :  { %252 = vrot.lane.b32.xlu0 %v248_v17, %s3842_s0 }
  0xa3   :  { %v274_v46 = vpop.f32.mrf.mxu0 }
  0xa5   :  { %303 = vrot.lane.b32.xlu1 %v3442_v18, %s3843_s1 }
 0x10f   :  { %v209_v47 = vpop.permute.xlu1 %208 }
 0x110   :  { %v253_v26 = vpop.permute.xlu0 %252  ;;  %v211_v48 = vadd.f32 %v209_v47, %v4023_v25 }
 0x111   :  { %v255_v27 = vadd.f32 %v253_v26, %v4023_v25 }
 0x112   :  { %v3318_v49 = vmul.f32 -1.442695, %v211_v48 }
 0x113   :  { %3447 = vtanh.f32 %v255_v27 }
 0x114   :  { %3449 = vpow2.f32 %v3316_v31 }
 0x117   :  { %v304_v61 = vpop.permute.xlu1 %303 }
 0x119   :  { %v3448_v28 = vpop.eup %3447 }
 0x11a   :  { %308 = vrot.lane.b32.xlu0 %v3448_v28, %s3842_s0  ;;  %v3450_v32 = vpop.eup %3449 }
 0x11b   :  { %v171_v33 = vadd.f32 1.0, %v3450_v32 }
 0x11d   :  { %3451 = vrcp.f32 %v171_v33  ;;  %vm177_vm3 = vweird.f32 %v171_v33  ;;  %v183_v38 = vand.u32 2147483648, %v171_v33  ;;  %v181_v40 = vand.u32 2147483647, %v171_v33 }
 0x11e   :  { %3453 = vpow2.f32 %v3318_v49 }
 0x11f   :  { %v184_v41 = vor.u32 1.1754944e-38, %v183_v38  ;;  %vm182_vm6 = vcmp.eq.f32.partialorder %v181_v40, 8.507059e+37 }
 0x123   :  { %v3452_v34 = vpop.eup %3451 }
 0x124   :  { %v173_v35 = vmul.f32 %v3452_v34, %v171_v33  ;;  %vm178_vm4 = vweird.f32 %v3452_v34  ;;  %v3454_v50 = vpop.eup %3453 }
 0x125   :  { %vm179_vm5 = vmor %vm177_vm3, %vm178_vm4  ;;  %v215_v51 = vadd.f32 1.0, %v3454_v50 }
 0x126   :  { %v174_v36 = vsub.f32 1.0, %v173_v35 }
 0x127   :  { %3455 = vrcp.f32 %v215_v51  ;;  %v227_v57 = vand.u32 2147483648, %v215_v51  ;;  %vm221_vm8 = vweird.f32 %v215_v51  ;;  %v225_v58 = vand.u32 2147483647, %v215_v51 }
 0x128   :  { %v175_v37 = vmul.f32 %v3452_v34, %v174_v36 }
 0x129   :  { %v228_v60 = vor.u32 1.1754944e-38, %v227_v57  ;;  %vm226_vm10 = vcmp.eq.f32.partialorder %v225_v58, 8.507059e+37 }
 0x12a   :  { %v176_v39 = vadd.f32 %v3452_v34, %v175_v37 }
 0x12c   :  { %v180_v42 = vsel %vm179_vm5, %v3452_v34, %v176_v39 }
 0x12d   :  { %v185_v44 = vsel %vm182_vm6, %v184_v41, %v180_v42  ;;  %v3456_v52 = vpop.eup %3455 }
 0x12e   :  { %v217_v53 = vmul.f32 %v3456_v52, %v215_v51  ;;  %vm222_vm7 = vweird.f32 %v3456_v52 }
 0x12f   :  { %vm223_vm9 = vmor %vm221_vm8, %vm222_vm7 }
 0x130   :  { %v218_v54 = vsub.f32 1.0, %v217_v53 }
 0x132   :  { %v219_v55 = vmul.f32 %v3456_v52, %v218_v54 }
 0x134   :  { %v220_v56 = vadd.f32 %v3456_v52, %v219_v55 }
 0x136   :  { %v224_v59 = vsel %vm223_vm9, %v3456_v52, %v220_v56 }
 0x137   :  { %v229_v62 = vsel %vm226_vm10, %v228_v60, %v224_v59 }
 0x138   :  { %v306_v63 = vmul.f32 %v304_v61, %v229_v62 }
 0x18c   :  { %v309_v43 = vpop.permute.xlu0 %308 }
 0x18d   :  { %v311_v45 = vmul.f32 %v309_v43, %v185_v44 }
 0x18f   :  { %313 = vrot.lane.b32.xlu2 %v311_v45, %s3843_s1 }
 0x197   :  { %278 = vrot.lane.b32.xlu2 %v274_v46, %s3844_s3 }
 0x1e9   :  { %v314_v0 = vpop.permute.xlu2 %313 }
 0x1ea   :  { %v4031_v10 = vadd.f32 %v314_v0, %v306_v63 }
 0x1ec   :  { %3457 = vtanh.f32 %v4031_v10 }
 0x1f1   :  { %v279_v13 = vpop.permute.xlu2 %278 }
 0x1f2   :  { %v3458_v12 = vpop.eup %3457  ;;  %v281_v16 = vadd.f32 %v279_v13, %v4023_v25 }
 0x1f3   :  { %319 = vrot.lane.b32.xlu0 %v3458_v12, %s3842_s0 }
 0x1f4   :  { %v3321_v17 = vmul.f32 -1.442695, %v281_v16 }
 0x1f6   :  { %3459 = vpow2.f32 %v3321_v17 }
 0x1fc   :  { %v3460_v18 = vpop.eup %3459 }
 0x1fd   :  { %v285_v23 = vadd.f32 1.0, %v3460_v18 }
 0x1ff   :  { %3461 = vrcp.f32 %v285_v23  ;;  %v297_v30 = vand.u32 2147483648, %v285_v23  ;;  %vm291_vm12 = vweird.f32 %v285_v23  ;;  %v295_v31 = vand.u32 2147483647, %v285_v23 }
 0x201   :  { %v298_v33 = vor.u32 1.1754944e-38, %v297_v30  ;;  %vm296_vm14 = vcmp.eq.f32.partialorder %v295_v31, 8.507059e+37 }
 0x205   :  { %v3462_v24 = vpop.eup %3461 }
 0x206   :  { %v287_v26 = vmul.f32 %v3462_v24, %v285_v23  ;;  %vm292_vm11 = vweird.f32 %v3462_v24 }
 0x207   :  { %vm293_vm13 = vmor %vm291_vm12, %vm292_vm11 }
 0x208   :  { %v288_v27 = vsub.f32 1.0, %v287_v26 }
 0x20a   :  { %v289_v28 = vmul.f32 %v3462_v24, %v288_v27 }
 0x20c   :  { %v290_v29 = vadd.f32 %v3462_v24, %v289_v28 }
 0x20e   :  { %v294_v32 = vsel %vm293_vm13, %v3462_v24, %v290_v29 }
 0x20f   :  { %v299_v35 = vsel %vm296_vm14, %v298_v33, %v294_v32 }
 0x265   :  { %v320_v34 = vpop.permute.xlu0 %319 }
 0x266   :  { %v4036_v36 = vmul.f32 %v320_v34, %v299_v35  ;;  %v489_v34 = vrot.slane %v4031_v10, 7 }
 0x268   :  { %324 = vrot.lane.b32.xlu1 %v4036_v36, %s3843_s1 }
 0x2da   :  { %v325_v37 = vpop.permute.xlu1 %324 }
 0x2db   :  { %3322 = vmatmul.msk.f32.vlgmr.msrb.gmra.mxu1 %vm143_vm2, %v325_v37  ;;  %3324 = vmatmul.msk.f32.vlgmr.msrb.gmra.mxu2 %vm143_vm2, %v325_v37 }
 0x2dc   :  { %3326 = vmatmul.msk.f32.vlgmr.msrb.gmra.mxu3 %vm143_vm2, %v325_v37  ;;  %3327 = vmatmul.msk.f32.vlgmr.msra.gmra.mxu0 %vm143_vm2, %v325_v37 }
 0x2dd   :  { %800 = vmatpush.msrb.mxu3 %v3921_v2  ;;  %712 = vmatpush.msrb.mxu1 %v3937_v8 }
 0x2de   :  { %755 = vmatpush.msrb.mxu2 %v3919_v1  ;;  %827 = vmatpush.msra.mxu0 %v3999_v19 }
 0x2df   :  { %801 = vmatpush.msrb.mxu3 %v3927_v4  ;;  %713 = vmatpush.msrb.mxu1 %v3939_v9 }
 0x2e0   :  { %756 = vmatpush.msrb.mxu2 %v3923_v3  ;;  %828 = vmatpush.msra.mxu0 %v4002_v20 }
 0x2e1   :  { %802 = vmatpush.msrb.mxu3 %v3931_v6  ;;  %714 = vmatpush.msrb.mxu1 %v3957_v14 }
 0x2e2   :  { %757 = vmatpush.msrb.mxu2 %v3929_v5  ;;  %829 = vmatpush.msra.mxu0 %v4005_v21 }
 0x2e3   :  { %803 = vmatpush.msrb.mxu3 %v3944_v11  ;;  %715 = vmatpush.msrb.mxu1 %v3964_v15 }
 0x2e4   :  { %758 = vmatpush.msrb.mxu2 %v3933_v7  ;;  %830 = vmatpush.msra.mxu0 %v4008_v22 }
 0x358   :  { %v345_v47 = vpop.f32.mrf.mxu1 }
 0x359   :  { %v460_v45 = vpop.f32.mrf.mxu0  ;;  %v349_v48 = vrot.slane %v345_v47, 7 }
 0x35a   :  { %v464_v46 = vrot.slane %v460_v45, 7 }
 0x35b   :  { %v351_v49 = vadd.f32 %v349_v48, %v4023_v25 }
 0x35d   :  { %v3323_v50 = vmul.f32 -1.442695, %v351_v49 }
 0x35e   :  { %v388_v38 = vpop.f32.mrf.mxu2 }
 0x35f   :  { %v392_v39 = vrot.slane %v388_v38, 7  ;;  %v433_v40 = vpop.f32.mrf.mxu3 }
 0x360   :  { %v437_v41 = vrot.slane %v433_v40, 7 }
 0x361   :  { %393 = vrot.lane.b32.xlu1 %v392_v39, %s3843_s1 }
 0x362   :  { %438 = vrot.lane.b32.xlu2 %v437_v41, %s3842_s0 }
 0x3bc   :  { %v439_v42 = vpop.permute.xlu2 %438 }
 0x3bd   :  { %v441_v43 = vadd.f32 %v439_v42, %v4023_v25 }
 0x3bf   :  { %3463 = vtanh.f32 %v441_v43 }
 0x3c0   :  { %3465 = vpow2.f32 %v3323_v50 }
 0x3c5   :  { %v3464_v44 = vpop.eup %3463 }
 0x3c6   :  { %493 = vrot.lane.b32.xlu0 %v3464_v44, %s3842_s0  ;;  %v3466_v51 = vpop.eup %3465 }
 0x3c7   :  { %v355_v52 = vadd.f32 1.0, %v3466_v51 }
 0x3c9   :  { %3467 = vrcp.f32 %v355_v52  ;;  %v367_v58 = vand.u32 2147483648, %v355_v52  ;;  %vm361_vm3 = vweird.f32 %v355_v52  ;;  %v365_v59 = vand.u32 2147483647, %v355_v52 }
 0x3cb   :  { %v368_v61 = vor.u32 1.1754944e-38, %v367_v58  ;;  %vm366_vm5 = vcmp.eq.f32.partialorder %v365_v59, 8.507059e+37 }
 0x3ce   :  { %465 = vrot.lane.b32.xlu0 %v464_v46, %s3844_s3 }
 0x3cf   :  { %v3468_v53 = vpop.eup %3467 }
 0x3d0   :  { %v357_v54 = vmul.f32 %v3468_v53, %v355_v52  ;;  %vm362_vm15 = vweird.f32 %v3468_v53 }
 0x3d1   :  { %vm363_vm4 = vmor %vm361_vm3, %vm362_vm15 }
 0x3d2   :  { %v358_v55 = vsub.f32 1.0, %v357_v54 }
 0x3d3   :  { %v394_v12 = vpop.permute.xlu1 %393 }
 0x3d4   :  { %v359_v56 = vmul.f32 %v3468_v53, %v358_v55  ;;  %v396_v13 = vadd.f32 %v394_v12, %v4023_v25 }
 0x3d6   :  { %v360_v57 = vadd.f32 %v3468_v53, %v359_v56  ;;  %v3325_v16 = vmul.f32 -1.442695, %v396_v13 }
 0x3d8   :  { %v364_v60 = vsel %vm363_vm4, %v3468_v53, %v360_v57  ;;  %3469 = vpow2.f32 %v3325_v16 }
 0x3d9   :  { %v369_v63 = vsel %vm366_vm5, %v368_v61, %v364_v60 }
 0x3de   :  { %v3470_v17 = vpop.eup %3469 }
 0x3df   :  { %v400_v18 = vadd.f32 1.0, %v3470_v17 }
 0x3e1   :  { %3471 = vrcp.f32 %v400_v18  ;;  %v412_v29 = vand.u32 2147483648, %v400_v18  ;;  %vm406_vm7 = vweird.f32 %v400_v18  ;;  %v410_v30 = vand.u32 2147483647, %v400_v18 }
 0x3e3   :  { %v413_v32 = vor.u32 1.1754944e-38, %v412_v29  ;;  %vm411_vm9 = vcmp.eq.f32.partialorder %v410_v30, 8.507059e+37 }
 0x3e7   :  { %v3472_v23 = vpop.eup %3471 }
 0x3e8   :  { %v402_v24 = vmul.f32 %v3472_v23, %v400_v18  ;;  %vm407_vm6 = vweird.f32 %v3472_v23 }
 0x3e9   :  { %vm408_vm8 = vmor %vm406_vm7, %vm407_vm6 }
 0x3ea   :  { %v403_v26 = vsub.f32 1.0, %v402_v24 }
 0x3ec   :  { %v404_v27 = vmul.f32 %v3472_v23, %v403_v26 }
 0x3ee   :  { %v405_v28 = vadd.f32 %v3472_v23, %v404_v27 }
 0x3f0   :  { %v409_v31 = vsel %vm408_vm8, %v3472_v23, %v405_v28 }
 0x3f1   :  { %v414_v33 = vsel %vm411_vm9, %v413_v32, %v409_v31 }
 0x3f2   :  { %v491_v35 = vmul.f32 %v489_v34, %v414_v33 }
 0x438   :  { %v494_v62 = vpop.permute.xlu0 %493 }
 0x439   :  { %v496_v0 = vmul.f32 %v494_v62, %v369_v63 }
 0x43b   :  { %498 = vrot.lane.b32.xlu2 %v496_v0, %s3843_s1 }
 0x440   :  { %v466_v40 = vpop.permute.xlu0 %465 }
 0x441   :  { %v468_v41 = vadd.f32 %v466_v40, %v4023_v25 }
 0x443   :  { %v3328_v42 = vmul.f32 -1.442695, %v468_v41 }
 0x495   :  { %v499_v37 = vpop.permute.xlu2 %498 }
 0x496   :  { %v4069_v38 = vadd.f32 %v499_v37, %v491_v35 }
 0x498   :  { %3473 = vtanh.f32 %v4069_v38 }
 0x499   :  { %3475 = vpow2.f32 %v3328_v42 }
 0x49e   :  { %v3474_v39 = vpop.eup %3473 }
 0x49f   :  { %504 = vrot.lane.b32.xlu1 %v3474_v39, %s3842_s0  ;;  %v3476_v43 = vpop.eup %3475 }
 0x4a0   :  { %v472_v44 = vadd.f32 1.0, %v3476_v43 }
 0x4a2   :  { %3477 = vrcp.f32 %v472_v44  ;;  %v484_v49 = vand.u32 2147483648, %v472_v44  ;;  %vm478_vm11 = vweird.f32 %v472_v44  ;;  %v482_v50 = vand.u32 2147483647, %v472_v44 }
 0x4a4   :  { %v485_v52 = vor.u32 1.1754944e-38, %v484_v49  ;;  %vm483_vm13 = vcmp.eq.f32.partialorder %v482_v50, 8.507059e+37 }
 0x4a8   :  { %v3478_v45 = vpop.eup %3477 }
 0x4a9   :  { %v474_v46 = vmul.f32 %v3478_v45, %v472_v44  ;;  %vm479_vm10 = vweird.f32 %v3478_v45 }
 0x4aa   :  { %vm480_vm12 = vmor %vm478_vm11, %vm479_vm10 }
 0x4ab   :  { %v475_v10 = vsub.f32 1.0, %v474_v46 }
 0x4ad   :  { %v476_v47 = vmul.f32 %v3478_v45, %v475_v10 }
 0x4af   :  { %v477_v48 = vadd.f32 %v3478_v45, %v476_v47 }
 0x4b1   :  { %v481_v51 = vsel %vm480_vm12, %v3478_v45, %v477_v48  ;;  %vm1624_vm12 = vcmask 1040384  }
 0x4b2   :  { %v486_v53 = vsel %vm483_vm13, %v485_v52, %v481_v51 }
 0x511   :  { %v505_v54 = vpop.permute.xlu1 %504 }
 0x512   :  { %v4074_v55 = vmul.f32 %v505_v54, %v486_v53 }
 0x514   :  { %v509_v56 = vrot.slane %v4074_v55, 1 }
 0x516   :  { %510 = vrot.lane.b32.xlu2 %v509_v56, %s3843_s1  ;;  %v675_v56 = vrot.slane %v4069_v38, 7 }
 0x570   :  { %v511_v57 = vpop.permute.xlu2 %510 }
 0x571   :  { %3329 = vmatmul.msk.f32.vlgmr.msra.gmra.mxu1 %vm143_vm2, %v511_v57  ;;  %3331 = vmatmul.msk.f32.vlgmr.msra.gmra.mxu2 %vm143_vm2, %v511_v57 }
 0x572   :  { %3333 = vmatmul.msk.f32.vlgmr.msra.gmra.mxu3 %vm143_vm2, %v511_v57  ;;  %3334 = vmatmul.msk.f32.vlgmr.msrb.gmra.mxu0 %vm143_vm2, %v511_v57 }
 0x573   :  { %986 = vmatpush.msra.mxu3 %v3921_v2  ;;  %898 = vmatpush.msra.mxu1 %v3937_v8 }
 0x574   :  { %941 = vmatpush.msra.mxu2 %v3919_v1  ;;  %1013 = vmatpush.msrb.mxu0 %v3999_v19 }
 0x575   :  { %987 = vmatpush.msra.mxu3 %v3927_v4  ;;  %899 = vmatpush.msra.mxu1 %v3939_v9 }
 0x576   :  { %942 = vmatpush.msra.mxu2 %v3923_v3  ;;  %1014 = vmatpush.msrb.mxu0 %v4002_v20 }
 0x577   :  { %988 = vmatpush.msra.mxu3 %v3931_v6  ;;  %900 = vmatpush.msra.mxu1 %v3957_v14 }
 0x578   :  { %943 = vmatpush.msra.mxu2 %v3929_v5  ;;  %1015 = vmatpush.msrb.mxu0 %v4005_v21 }
 0x579   :  { %989 = vmatpush.msra.mxu3 %v3944_v11  ;;  %901 = vmatpush.msra.mxu1 %v3964_v15 }
 0x57a   :  { %944 = vmatpush.msra.mxu2 %v3933_v7  ;;  %1016 = vmatpush.msrb.mxu0 %v4008_v22 }
 0x5ee   :  { %v531_v16 = vpop.f32.mrf.mxu1 }
 0x5ef   :  { %v646_v12 = vpop.f32.mrf.mxu0  ;;  %v535_v17 = vrot.slane %v531_v16, 6 }
 0x5f0   :  { %v650_v13 = vrot.slane %v646_v12, 6 }
 0x5f1   :  { %v537_v18 = vadd.f32 %v535_v17, %v4023_v25 }
 0x5f3   :  { %v3330_v23 = vmul.f32 -1.442695, %v537_v18 }
 0x5f4   :  { %v574_v58 = vpop.f32.mrf.mxu2 }
 0x5f5   :  { %v578_v59 = vrot.slane %v574_v58, 6  ;;  %v619_v60 = vpop.f32.mrf.mxu3 }
 0x5f6   :  { %v623_v61 = vrot.slane %v619_v60, 6 }
 0x5f7   :  { %579 = vrot.lane.b32.xlu2 %v578_v59, %s3843_s1 }
 0x5f8   :  { %624 = vrot.lane.b32.xlu0 %v623_v61, %s3842_s0 }
 0x651   :  { %v580_v41 = vpop.permute.xlu2 %579 }
 0x652   :  { %v582_v42 = vadd.f32 %v580_v41, %v4023_v25 }
 0x654   :  { %v3332_v43 = vmul.f32 -1.442695, %v582_v42 }
 0x66a   :  { %v625_v62 = vpop.permute.xlu0 %624 }
 0x66b   :  { %v627_v63 = vadd.f32 %v625_v62, %v4023_v25 }
 0x66d   :  { %3479 = vtanh.f32 %v627_v63 }
 0x66e   :  { %3481 = vpow2.f32 %v3330_v23 }
 0x673   :  { %v3480_v0 = vpop.eup %3479 }
 0x674   :  { %679 = vrot.lane.b32.xlu1 %v3480_v0, %s3842_s0  ;;  %v3482_v24 = vpop.eup %3481 }
 0x675   :  { %v541_v26 = vadd.f32 1.0, %v3482_v24 }
 0x677   :  { %3483 = vrcp.f32 %v541_v26  ;;  %v553_v32 = vand.u32 2147483648, %v541_v26  ;;  %vm547_vm15 = vweird.f32 %v541_v26  ;;  %v551_v33 = vand.u32 2147483647, %v541_v26 }
 0x678   :  { %3485 = vpow2.f32 %v3332_v43 }
 0x679   :  { %v554_v35 = vor.u32 1.1754944e-38, %v553_v32  ;;  %vm552_vm4 = vcmp.eq.f32.partialorder %v551_v33, 8.507059e+37 }
 0x67c   :  { %651 = vrot.lane.b32.xlu1 %v650_v13, %s3844_s3 }
 0x67d   :  { %v3484_v27 = vpop.eup %3483 }
 0x67e   :  { %v543_v28 = vmul.f32 %v3484_v27, %v541_v26  ;;  %vm548_vm14 = vweird.f32 %v3484_v27  ;;  %v3486_v44 = vpop.eup %3485 }
 0x67f   :  { %vm549_vm3 = vmor %vm547_vm15, %vm548_vm14  ;;  %v586_v45 = vadd.f32 1.0, %v3486_v44  ;;  %vm1626_vm14 = vcmask 1041408  }
 0x680   :  { %v544_v29 = vsub.f32 1.0, %v543_v28 }
 0x681   :  { %3487 = vrcp.f32 %v586_v45  ;;  %v598_v50 = vand.u32 2147483648, %v586_v45  ;;  %vm592_vm6 = vweird.f32 %v586_v45  ;;  %v596_v51 = vand.u32 2147483647, %v586_v45 }
 0x682   :  { %v545_v30 = vmul.f32 %v3484_v27, %v544_v29 }
 0x683   :  { %v599_v53 = vor.u32 1.1754944e-38, %v598_v50  ;;  %vm597_vm8 = vcmp.eq.f32.partialorder %v596_v51, 8.507059e+37 }
 0x684   :  { %v546_v31 = vadd.f32 %v3484_v27, %v545_v30 }
 0x686   :  { %v550_v34 = vsel %vm549_vm3, %v3484_v27, %v546_v31  ;;  %v1625_v31 = vsel %vm1624_vm12, %v4036_v36, %v4074_v55 }
 0x687   :  { %v555_v39 = vsel %vm552_vm4, %v554_v35, %v550_v34  ;;  %v3488_v46 = vpop.eup %3487 }
 0x688   :  { %v588_v10 = vmul.f32 %v3488_v46, %v586_v45  ;;  %vm593_vm5 = vweird.f32 %v3488_v46 }
 0x689   :  { %vm594_vm7 = vmor %vm592_vm6, %vm593_vm5 }
 0x68a   :  { %v589_v47 = vsub.f32 1.0, %v588_v10 }
 0x68c   :  { %v590_v48 = vmul.f32 %v3488_v46, %v589_v47 }
 0x68e   :  { %v591_v49 = vadd.f32 %v3488_v46, %v590_v48 }
 0x690   :  { %v595_v52 = vsel %vm594_vm7, %v3488_v46, %v591_v49 }
 0x691   :  { %v600_v54 = vsel %vm597_vm8, %v599_v53, %v595_v52 }
 0x692   :  { %v677_v57 = vmul.f32 %v675_v56, %v600_v54 }
 0x6e6   :  { %v680_v37 = vpop.permute.xlu1 %679 }
 0x6e7   :  { %v682_v40 = vmul.f32 %v680_v37, %v555_v39 }
 0x6e9   :  { %684 = vrot.lane.b32.xlu0 %v682_v40, %s3843_s1 }
 0x6ee   :  { %v652_v61 = vpop.permute.xlu1 %651 }
 0x6ef   :  { %v654_v62 = vadd.f32 %v652_v61, %v4023_v25 }
 0x6f1   :  { %v3335_v63 = vmul.f32 -1.442695, %v654_v62 }
 0x75b   :  { %v685_v58 = vpop.permute.xlu0 %684 }
 0x75c   :  { %v4107_v59 = vadd.f32 %v685_v58, %v677_v57 }
 0x75e   :  { %3489 = vtanh.f32 %v4107_v59 }
 0x75f   :  { %3491 = vpow2.f32 %v3335_v63 }
 0x764   :  { %v3490_v60 = vpop.eup %3489 }
 0x765   :  { %690 = vrot.lane.b32.xlu2 %v3490_v60, %s3842_s0  ;;  %v3492_v0 = vpop.eup %3491 }
 0x766   :  { %v658_v12 = vadd.f32 1.0, %v3492_v0 }
 0x768   :  { %3493 = vrcp.f32 %v658_v12  ;;  %v670_v23 = vand.u32 2147483648, %v658_v12  ;;  %vm664_vm10 = vweird.f32 %v658_v12  ;;  %v668_v24 = vand.u32 2147483647, %v658_v12 }
 0x76a   :  { %v671_v27 = vor.u32 1.1754944e-38, %v670_v23  ;;  %vm669_vm13 = vcmp.eq.f32.partialorder %v668_v24, 8.507059e+37 }
 0x76e   :  { %v3494_v13 = vpop.eup %3493 }
 0x76f   :  { %v660_v16 = vmul.f32 %v3494_v13, %v658_v12  ;;  %vm665_vm9 = vweird.f32 %v3494_v13 }
 0x770   :  { %vm666_vm11 = vmor %vm664_vm10, %vm665_vm9 }
 0x771   :  { %v661_v38 = vsub.f32 1.0, %v660_v16 }
 0x773   :  { %v662_v17 = vmul.f32 %v3494_v13, %v661_v38  ;;  %v861_v38 = vrot.slane %v4107_v59, 7 }
 0x775   :  { %v663_v18 = vadd.f32 %v3494_v13, %v662_v17 }
 0x777   :  { %v667_v26 = vsel %vm666_vm11, %v3494_v13, %v663_v18 }
 0x778   :  { %v672_v28 = vsel %vm669_vm13, %v671_v27, %v667_v26 }
 0x7bf   :  { %v691_v29 = vpop.permute.xlu2 %690 }
 0x7c0   :  { %v693_v30 = vmul.f32 %v691_v29, %v672_v28 }
 0x7c2   :  { %v695_v32 = vrot.slane %v693_v30, 2  ;;  %v4114_v33 = vsel %vm1626_vm14, %v1625_v31, %v693_v30  ;;  %vm1628_vm14 = vcmask 1042432  }
 0x7c4   :  { %696 = vrot.lane.b32.xlu0 %v695_v32, %s3843_s1 }
 0x836   :  { %v697_v34 = vpop.permute.xlu0 %696 }
 0x837   :  { %3336 = vmatmul.msk.f32.vlgmr.msrb.gmra.mxu1 %vm143_vm2, %v697_v34  ;;  %3338 = vmatmul.msk.f32.vlgmr.msrb.gmra.mxu2 %vm143_vm2, %v697_v34 }
 0x838   :  { %3340 = vmatmul.msk.f32.vlgmr.msrb.gmra.mxu3 %vm143_vm2, %v697_v34  ;;  %3341 = vmatmul.msk.f32.vlgmr.msra.gmra.mxu0 %vm143_vm2, %v697_v34 }
 0x839   :  { %1172 = vmatpush.msrb.mxu3 %v3921_v2  ;;  %1084 = vmatpush.msrb.mxu1 %v3937_v8 }
 0x83a   :  { %1127 = vmatpush.msrb.mxu2 %v3919_v1  ;;  %1199 = vmatpush.msra.mxu0 %v3999_v19 }
 0x83b   :  { %1173 = vmatpush.msrb.mxu3 %v3927_v4  ;;  %1085 = vmatpush.msrb.mxu1 %v3939_v9 }
 0x83c   :  { %1128 = vmatpush.msrb.mxu2 %v3923_v3  ;;  %1200 = vmatpush.msra.mxu0 %v4002_v20 }
 0x83d   :  { %1174 = vmatpush.msrb.mxu3 %v3931_v6  ;;  %1086 = vmatpush.msrb.mxu1 %v3957_v14 }
 0x83e   :  { %1129 = vmatpush.msrb.mxu2 %v3929_v5  ;;  %1201 = vmatpush.msra.mxu0 %v4005_v21 }
 0x83f   :  { %1175 = vmatpush.msrb.mxu3 %v3944_v11  ;;  %1087 = vmatpush.msrb.mxu1 %v3964_v15 }
 0x840   :  { %1130 = vmatpush.msrb.mxu2 %v3933_v7  ;;  %1202 = vmatpush.msra.mxu0 %v4008_v22 }
 0x8b4   :  { %v717_v7 = vpop.f32.mrf.mxu1 }
 0x8b5   :  { %v832_v9 = vpop.f32.mrf.mxu0  ;;  %v721_v36 = vrot.slane %v717_v7, 5 }
 0x8b6   :  { %v836_v11 = vrot.slane %v832_v9, 5 }
 0x8b7   :  { %v723_v55 = vadd.f32 %v721_v36, %v4023_v25 }
 0x8b9   :  { %v3337_v35 = vmul.f32 -1.442695, %v723_v55  ;;  %v4159_v55 = vld [vmem:[#allocation3 + $0x58] sm:$0xff] }
 0x8ba   :  { %v760_v1 = vpop.f32.mrf.mxu2 }
 0x8bb   :  { %v764_v2 = vrot.slane %v760_v1, 5  ;;  %v805_v3 = vpop.f32.mrf.mxu3 }
 0x8bc   :  { %v809_v4 = vrot.slane %v805_v3, 5 }
 0x8bd   :  { %765 = vrot.lane.b32.xlu0 %v764_v2, %s3843_s1 }
 0x8be   :  { %810 = vrot.lane.b32.xlu1 %v809_v4, %s3842_s0 }
 0x92f   :  { %v766_v51 = vpop.permute.xlu0 %765 }
 0x930   :  { %v811_v6 = vpop.permute.xlu1 %810  ;;  %v768_v52 = vadd.f32 %v766_v51, %v4023_v25 }
 0x931   :  { %v813_v5 = vadd.f32 %v811_v6, %v4023_v25 }
 0x932   :  { %v3339_v53 = vmul.f32 -1.442695, %v768_v52 }
 0x933   :  { %3495 = vtanh.f32 %v813_v5 }
 0x934   :  { %3497 = vpow2.f32 %v3337_v35  ;;  %v4162_v35 = vld [vmem:[#allocation3 + $0x18] sm:$0xff] }
 0x939   :  { %v3496_v8 = vpop.eup %3495 }
 0x93a   :  { %865 = vrot.lane.b32.xlu2 %v3496_v8, %s3842_s0  ;;  %v3498_v37 = vpop.eup %3497 }
 0x93b   :  { %v727_v39 = vadd.f32 1.0, %v3498_v37  ;;  %v4169_v37 = vld [vmem:[#allocation3 + $0x50] sm:$0xff] }
 0x93d   :  { %3499 = vrcp.f32 %v727_v39  ;;  %v739_v45 = vand.u32 2147483648, %v727_v39  ;;  %vm733_vm3 = vweird.f32 %v727_v39  ;;  %v737_v46 = vand.u32 2147483647, %v727_v39 }
 0x93e   :  { %3501 = vpow2.f32 %v3339_v53 }
 0x93f   :  { %v740_v47 = vor.u32 1.1754944e-38, %v739_v45  ;;  %vm738_vm5 = vcmp.eq.f32.partialorder %v737_v46, 8.507059e+37 }
 0x942   :  { %837 = vrot.lane.b32.xlu2 %v836_v11, %s3844_s3 }
 0x943   :  { %v3500_v40 = vpop.eup %3499 }
 0x944   :  { %v729_v41 = vmul.f32 %v3500_v40, %v727_v39  ;;  %vm734_vm15 = vweird.f32 %v3500_v40  ;;  %v3502_v54 = vpop.eup %3501  ;;  %v4172_v39 = vld [vmem:[#allocation3 + $0x10] sm:$0xff] }
 0x945   :  { %vm735_vm4 = vmor %vm733_vm3, %vm734_vm15  ;;  %v772_v56 = vadd.f32 1.0, %v3502_v54 }
 0x946   :  { %v730_v42 = vsub.f32 1.0, %v729_v41  ;;  %v4179_v41 = vld [vmem:[#allocation3 + $0x48] sm:$0xff] }
 0x947   :  { %3503 = vrcp.f32 %v772_v56  ;;  %v784_v63 = vand.u32 2147483648, %v772_v56  ;;  %vm778_vm7 = vweird.f32 %v772_v56  ;;  %v782_v0 = vand.u32 2147483647, %v772_v56 }
 0x948   :  { %v731_v43 = vmul.f32 %v3500_v40, %v730_v42  ;;  %v4187_v42 = vld [vmem:[#allocation3 + $0x40] sm:$0xff] }
 0x949   :  { %v785_v13 = vor.u32 1.1754944e-38, %v784_v63  ;;  %vm783_vm9 = vcmp.eq.f32.partialorder %v782_v0, 8.507059e+37 }
 0x94a   :  { %v732_v44 = vadd.f32 %v3500_v40, %v731_v43  ;;  %v4191_v43 = vld [vmem:[#allocation3 + $0x20] sm:$0xff] }
 0x94c   :  { %v736_v10 = vsel %vm735_vm4, %v3500_v40, %v732_v44  ;;  %v4175_v40 = vld [vmem:[#allocation3 + $0x30] sm:$0xff] }
 0x94d   :  { %v741_v49 = vsel %vm738_vm5, %v740_v47, %v736_v10  ;;  %v3504_v57 = vpop.eup %3503 }
 0x94e   :  { %v774_v58 = vmul.f32 %v3504_v57, %v772_v56  ;;  %vm779_vm6 = vweird.f32 %v3504_v57 }
 0x94f   :  { %vm780_vm8 = vmor %vm778_vm7, %vm779_vm6 }
 0x950   :  { %v775_v60 = vsub.f32 1.0, %v774_v58 }
 0x952   :  { %v776_v61 = vmul.f32 %v3504_v57, %v775_v60 }
 0x954   :  { %v777_v62 = vadd.f32 %v3504_v57, %v776_v61 }
 0x956   :  { %v781_v12 = vsel %vm780_vm8, %v3504_v57, %v777_v62 }
 0x957   :  { %v786_v16 = vsel %vm783_vm9, %v785_v13, %v781_v12 }
 0x958   :  { %v863_v17 = vmul.f32 %v861_v38, %v786_v16 }
 0x994   :  { %v866_v48 = vpop.permute.xlu2 %865 }
 0x995   :  { %v868_v50 = vmul.f32 %v866_v48, %v741_v49 }
 0x997   :  { %870 = vrot.lane.b32.xlu1 %v868_v50, %s3843_s1 }
 0x99c   :  { %v838_v26 = vpop.permute.xlu2 %837 }
 0x99d   :  { %v840_v27 = vadd.f32 %v838_v26, %v4023_v25 }
 0x99f   :  { %v3342_v28 = vmul.f32 -1.442695, %v840_v27 }
 0xa09   :  { %v871_v18 = vpop.permute.xlu1 %870 }
 0xa0a   :  { %v4146_v23 = vadd.f32 %v871_v18, %v863_v17 }
 0xa0c   :  { %3505 = vtanh.f32 %v4146_v23 }
 0xa0d   :  { %3507 = vpow2.f32 %v3342_v28 }
 0xa12   :  { %v3506_v24 = vpop.eup %3505 }
 0xa13   :  { %876 = vrot.lane.b32.xlu0 %v3506_v24, %s3842_s0  ;;  %v3508_v29 = vpop.eup %3507 }
 0xa14   :  { %v844_v30 = vadd.f32 1.0, %v3508_v29 }
 0xa16   :  { %3509 = vrcp.f32 %v844_v30  ;;  %v856_v2 = vand.u32 2147483648, %v844_v30  ;;  %vm850_vm11 = vweird.f32 %v844_v30  ;;  %v854_v3 = vand.u32 2147483647, %v844_v30 }
 0xa18   :  { %v857_v6 = vor.u32 1.1754944e-38, %v856_v2  ;;  %vm855_vm13 = vcmp.eq.f32.partialorder %v854_v3, 8.507059e+37  ;;  %v1047_v2 = vrot.slane %v4146_v23, 7 }
 0xa1c   :  { %v3510_v31 = vpop.eup %3509 }
 0xa1d   :  { %v846_v32 = vmul.f32 %v3510_v31, %v844_v30  ;;  %vm851_vm10 = vweird.f32 %v3510_v31 }
 0xa1e   :  { %vm852_vm12 = vmor %vm850_vm11, %vm851_vm10 }
 0xa1f   :  { %v847_v59 = vsub.f32 1.0, %v846_v32 }
 0xa21   :  { %v848_v34 = vmul.f32 %v3510_v31, %v847_v59 }
 0xa23   :  { %v849_v1 = vadd.f32 %v3510_v31, %v848_v34 }
 0xa25   :  { %v853_v4 = vsel %vm852_vm12, %v3510_v31, %v849_v1 }
 0xa26   :  { %v858_v5 = vsel %vm855_vm13, %v857_v6, %v853_v4 }
 0xa85   :  { %v877_v8 = vpop.permute.xlu0 %876 }
 0xa86   :  { %v879_v9 = vmul.f32 %v877_v8, %v858_v5 }
 0xa88   :  { %v881_v11 = vrot.slane %v879_v9, 3  ;;  %v4152_v7 = vsel %vm1628_vm14, %v4114_v33, %v879_v9  ;;  %v4165_v33 = vld [vmem:[#allocation3 + $0x38] sm:$0xff] }
 0xa8a   :  { %882 = vrot.lane.b32.xlu1 %v881_v11, %s3843_s1 }
 0xafc   :  { %v883_v36 = vpop.permute.xlu1 %882 }
 0xafd   :  { %3343 = vmatmul.msk.f32.vlgmr.msra.gmra.mxu1 %vm143_vm2, %v883_v36  ;;  %3345 = vmatmul.msk.f32.vlgmr.msra.gmra.mxu2 %vm143_vm2, %v883_v36 }
 0xafe   :  { %3347 = vmatmul.msk.f32.vlgmr.msra.gmra.mxu3 %vm143_vm2, %v883_v36  ;;  %3348 = vmatmul.msk.f32.vlgmr.msrb.gmra.mxu0 %vm143_vm2, %v883_v36 }
 0xaff   :  { %1358 = vmatpush.msra.mxu3 %v4159_v55  ;;  %1270 = vmatpush.msra.mxu1 %v4162_v35 }
 0xb00   :  { %1313 = vmatpush.msra.mxu2 %v4165_v33  ;;  %1385 = vmatpush.msrb.mxu0 %v3999_v19  ;;  %v4183_v19 = vld [vmem:[#allocation3 + $0x28] sm:$0xff] }
 0xb01   :  { %1359 = vmatpush.msra.mxu3 %v4169_v37  ;;  %1271 = vmatpush.msra.mxu1 %v4172_v39 }
 0xb02   :  { %1314 = vmatpush.msra.mxu2 %v4175_v40  ;;  %1386 = vmatpush.msrb.mxu0 %v4002_v20 }
 0xb03   :  { %1360 = vmatpush.msra.mxu3 %v4179_v41  ;;  %1272 = vmatpush.msra.mxu1 %v3957_v14 }
 0xb04   :  { %1315 = vmatpush.msra.mxu2 %v4183_v19  ;;  %1387 = vmatpush.msrb.mxu0 %v4005_v21 }
 0xb05   :  { %1361 = vmatpush.msra.mxu3 %v4187_v42  ;;  %1273 = vmatpush.msra.mxu1 %v3964_v15 }
 0xb06   :  { %1316 = vmatpush.msra.mxu2 %v4191_v43  ;;  %1388 = vmatpush.msrb.mxu0 %v4008_v22 }
 0xb7a   :  { %v903_v22 = vpop.f32.mrf.mxu1 }
 0xb7b   :  { %v1018_v15 = vpop.f32.mrf.mxu0  ;;  %v907_v48 = vrot.slane %v903_v22, 4 }
 0xb7c   :  { %v1022_v47 = vrot.slane %v1018_v15, 4 }
 0xb7d   :  { %v909_v49 = vadd.f32 %v907_v48, %v4023_v25 }
 0xb7f   :  { %v3344_v50 = vmul.f32 -1.442695, %v909_v49 }
 0xb80   :  { %v946_v20 = vpop.f32.mrf.mxu2 }
 0xb81   :  { %v950_v14 = vrot.slane %v946_v20, 4  ;;  %v991_v44 = vpop.f32.mrf.mxu3 }
 0xb82   :  { %v995_v45 = vrot.slane %v991_v44, 4 }
 0xb83   :  { %951 = vrot.lane.b32.xlu1 %v950_v14, %s3843_s1 }
 0xb84   :  { %996 = vrot.lane.b32.xlu2 %v995_v45, %s3842_s0 }
 0xbde   :  { %v997_v21 = vpop.permute.xlu2 %996 }
 0xbdf   :  { %v999_v46 = vadd.f32 %v997_v21, %v4023_v25 }
 0xbe1   :  { %3511 = vtanh.f32 %v999_v46 }
 0xbe2   :  { %3513 = vpow2.f32 %v3344_v50 }
 0xbe7   :  { %v3512_v10 = vpop.eup %3511 }
 0xbe8   :  { %1051 = vrot.lane.b32.xlu0 %v3512_v10, %s3842_s0  ;;  %v3514_v51 = vpop.eup %3513 }
 0xbe9   :  { %v913_v52 = vadd.f32 1.0, %v3514_v51 }
 0xbeb   :  { %3515 = vrcp.f32 %v913_v52  ;;  %v925_v60 = vand.u32 2147483648, %v913_v52  ;;  %vm919_vm3 = vweird.f32 %v913_v52  ;;  %v923_v61 = vand.u32 2147483647, %v913_v52 }
 0xbed   :  { %v926_v63 = vor.u32 1.1754944e-38, %v925_v60  ;;  %vm924_vm5 = vcmp.eq.f32.partialorder %v923_v61, 8.507059e+37 }
 0xbf0   :  { %1023 = vrot.lane.b32.xlu0 %v1022_v47, %s3844_s3 }
 0xbf1   :  { %v3516_v53 = vpop.eup %3515 }
 0xbf2   :  { %v915_v54 = vmul.f32 %v3516_v53, %v913_v52  ;;  %vm920_vm15 = vweird.f32 %v3516_v53 }
 0xbf3   :  { %vm921_vm4 = vmor %vm919_vm3, %vm920_vm15 }
 0xbf4   :  { %v916_v56 = vsub.f32 1.0, %v915_v54  ;;  %v3715_v54 = vld [vmem:[#allocation3 + $0x8] sm:$0xff] }
 0xbf5   :  { %v952_v16 = vpop.permute.xlu1 %951 }
 0xbf6   :  { %v917_v57 = vmul.f32 %v3516_v53, %v916_v56  ;;  %v954_v38 = vadd.f32 %v952_v16, %v4023_v25 }
 0xbf8   :  { %v918_v58 = vadd.f32 %v3516_v53, %v917_v57  ;;  %v3346_v17 = vmul.f32 -1.442695, %v954_v38 }
 0xbfa   :  { %v922_v62 = vsel %vm921_vm4, %v3516_v53, %v918_v58  ;;  %3517 = vpow2.f32 %v3346_v17  ;;  %v3713_v53 = vld [vmem:[#allocation3 + $0x78] sm:$0xff] }
 0xbfb   :  { %v927_v12 = vsel %vm924_vm5, %v926_v63, %v922_v62 }
 0xc00   :  { %v3518_v18 = vpop.eup %3517 }
 0xc01   :  { %v958_v24 = vadd.f32 1.0, %v3518_v18 }
 0xc03   :  { %3519 = vrcp.f32 %v958_v24  ;;  %v970_v31 = vand.u32 2147483648, %v958_v24  ;;  %vm964_vm7 = vweird.f32 %v958_v24  ;;  %v968_v32 = vand.u32 2147483647, %v958_v24 }
 0xc05   :  { %v971_v34 = vor.u32 1.1754944e-38, %v970_v31  ;;  %vm969_vm9 = vcmp.eq.f32.partialorder %v968_v32, 8.507059e+37 }
 0xc09   :  { %v3520_v26 = vpop.eup %3519 }
 0xc0a   :  { %v960_v27 = vmul.f32 %v3520_v26, %v958_v24  ;;  %vm965_vm6 = vweird.f32 %v3520_v26 }
 0xc0b   :  { %vm966_vm8 = vmor %vm964_vm7, %vm965_vm6 }
 0xc0c   :  { %v961_v28 = vsub.f32 1.0, %v960_v27 }
 0xc0e   :  { %v962_v29 = vmul.f32 %v3520_v26, %v961_v28 }
 0xc10   :  { %v963_v30 = vadd.f32 %v3520_v26, %v962_v29 }
 0xc12   :  { %v967_v59 = vsel %vm966_vm8, %v3520_v26, %v963_v30 }
 0xc13   :  { %v972_v1 = vsel %vm969_vm9, %v971_v34, %v967_v59 }
 0xc14   :  { %v1049_v3 = vmul.f32 %v1047_v2, %v972_v1 }
 0xc5a   :  { %v1052_v0 = vpop.permute.xlu0 %1051 }
 0xc5b   :  { %v1054_v13 = vmul.f32 %v1052_v0, %v927_v12 }
 0xc5d   :  { %1056 = vrot.lane.b32.xlu2 %v1054_v13, %s3843_s1 }
 0xc62   :  { %v1024_v8 = vpop.permute.xlu0 %1023 }
 0xc63   :  { %v1026_v9 = vadd.f32 %v1024_v8, %v4023_v25 }
 0xc65   :  { %v3349_v11 = vmul.f32 -1.442695, %v1026_v9 }
 0xcb7   :  { %v1057_v4 = vpop.permute.xlu2 %1056 }
 0xcb8   :  { %v4204_v6 = vadd.f32 %v1057_v4, %v1049_v3 }
 0xcba   :  { %3521 = vtanh.f32 %v4204_v6 }
 0xcbb   :  { %3523 = vpow2.f32 %v3349_v11 }
 0xcc0   :  { %v3522_v5 = vpop.eup %3521 }
 0xcc1   :  { %1062 = vrot.lane.b32.xlu1 %v3522_v5, %s3842_s0  ;;  %v3524_v36 = vpop.eup %3523 }
 0xcc2   :  { %v1030_v20 = vadd.f32 1.0, %v3524_v36 }
 0xcc4   :  { %3525 = vrcp.f32 %v1030_v20  ;;  %v1042_v46 = vand.u32 2147483648, %v1030_v20  ;;  %vm1036_vm11 = vweird.f32 %v1030_v20  ;;  %v1040_v10 = vand.u32 2147483647, %v1030_v20 }
 0xcc6   :  { %v1043_v47 = vor.u32 1.1754944e-38, %v1042_v46  ;;  %vm1041_vm13 = vcmp.eq.f32.partialorder %v1040_v10, 8.507059e+37 }
 0xcca   :  { %v3526_v14 = vpop.eup %3525 }
 0xccb   :  { %v1032_v44 = vmul.f32 %v3526_v14, %v1030_v20  ;;  %vm1037_vm10 = vweird.f32 %v3526_v14 }
 0xccc   :  { %vm1038_vm12 = vmor %vm1036_vm11, %vm1037_vm10 }
 0xccd   :  { %v1033_v23 = vsub.f32 1.0, %v1032_v44  ;;  %v1233_v44 = vrot.slane %v4204_v6, 7 }
 0xccf   :  { %v1034_v45 = vmul.f32 %v3526_v14, %v1033_v23 }
 0xcd1   :  { %v1035_v21 = vadd.f32 %v3526_v14, %v1034_v45 }
 0xcd3   :  { %v1039_v15 = vsel %vm1038_vm12, %v3526_v14, %v1035_v21  ;;  %vm1631_vm12 = vcmask 1044480  }
 0xcd4   :  { %v1044_v22 = vsel %vm1041_vm13, %v1043_v47, %v1039_v15 }
 0xd33   :  { %v1063_v48 = vpop.permute.xlu1 %1062 }
 0xd34   :  { %v1065_v49 = vmul.f32 %v1063_v48, %v1044_v22 }
 0xd36   :  { %v1067_v50 = vrot.slane %v1065_v49, 4  ;;  %v4211_v51 = vsel %vm98_vm0, %v4152_v7, %v1065_v49  ;;  %v3714_v7 = vld [vmem:[#allocation3 + $0x70] sm:$0xff] }
 0xd38   :  { %1068 = vrot.lane.b32.xlu2 %v1067_v50, %s3843_s1 }
 0xd92   :  { %v1069_v52 = vpop.permute.xlu2 %1068 }
 0xd93   :  { %3350 = vmatmul.msk.f32.vlgmr.msrb.gmra.mxu1 %vm143_vm2, %v1069_v52  ;;  %3352 = vmatmul.msk.f32.vlgmr.msrb.gmra.mxu2 %vm143_vm2, %v1069_v52 }
 0xd94   :  { %3354 = vmatmul.msk.f32.vlgmr.msrb.gmra.mxu3 %vm143_vm2, %v1069_v52  ;;  %3355 = vmatmul.msk.f32.vlgmr.msra.gmra.mxu0 %vm143_vm2, %v1069_v52 }
 0xd95   :  { %1544 = vmatpush.msrb.mxu3 %v4159_v55  ;;  %1456 = vmatpush.msrb.mxu1 %v4162_v35  ;;  %v3716_v55 = vld [vmem:[#allocation3 + $0x68] sm:$0xff]  ;;  %v3717_v35 = vld [vmem:[#allocation3] sm:$0xff] }
 0xd96   :  { %1499 = vmatpush.msrb.mxu2 %v4165_v33  ;;  %1571 = vmatpush.msra.mxu0 %v3713_v53  ;;  %v3718_v33 = vld [vmem:[#allocation3 + $0x60] sm:$0xff] }
 0xd97   :  { %1545 = vmatpush.msrb.mxu3 %v4169_v37  ;;  %1457 = vmatpush.msrb.mxu1 %v4172_v39 }
 0xd98   :  { %1500 = vmatpush.msrb.mxu2 %v4175_v40  ;;  %1572 = vmatpush.msra.mxu0 %v3714_v7 }
 0xd99   :  { %1546 = vmatpush.msrb.mxu3 %v4179_v41  ;;  %1458 = vmatpush.msrb.mxu1 %v3715_v54 }
 0xd9a   :  { %1501 = vmatpush.msrb.mxu2 %v4183_v19  ;;  %1573 = vmatpush.msra.mxu0 %v3716_v55 }
 0xd9b   :  { %1547 = vmatpush.msrb.mxu3 %v4187_v42  ;;  %1459 = vmatpush.msrb.mxu1 %v3717_v35 }
 0xd9c   :  { %1502 = vmatpush.msrb.mxu2 %v4191_v43  ;;  %1574 = vmatpush.msra.mxu0 %v3718_v33 }
 0xe10   :  { %v1089_v43 = vpop.f32.mrf.mxu1 }
 0xe11   :  { %v1204_v42 = vpop.f32.mrf.mxu0  ;;  %v1093_v60 = vrot.slane %v1089_v43, 3 }
 0xe12   :  { %v1208_v58 = vrot.slane %v1204_v42, 3 }
 0xe13   :  { %v1095_v61 = vadd.f32 %v1093_v60, %v4023_v25 }
 0xe15   :  { %v3351_v62 = vmul.f32 -1.442695, %v1095_v61 }
 0xe16   :  { %v1132_v37 = vpop.f32.mrf.mxu2 }
 0xe17   :  { %v1136_v39 = vrot.slane %v1132_v37, 3  ;;  %v1177_v40 = vpop.f32.mrf.mxu3 }
 0xe18   :  { %v1181_v56 = vrot.slane %v1177_v40, 3 }
 0xe19   :  { %1137 = vrot.lane.b32.xlu2 %v1136_v39, %s3843_s1 }
 0xe1a   :  { %1182 = vrot.lane.b32.xlu0 %v1181_v56, %s3842_s0 }
 0xe73   :  { %v1138_v31 = vpop.permute.xlu2 %1137 }
 0xe74   :  { %v1140_v32 = vadd.f32 %v1138_v31, %v4023_v25 }
 0xe76   :  { %v3353_v59 = vmul.f32 -1.442695, %v1140_v32 }
 0xe8c   :  { %v1183_v41 = vpop.permute.xlu0 %1182 }
 0xe8d   :  { %v1185_v19 = vadd.f32 %v1183_v41, %v4023_v25 }
 0xe8f   :  { %3527 = vtanh.f32 %v1185_v19 }
 0xe90   :  { %3529 = vpow2.f32 %v3351_v62 }
 0xe95   :  { %v3528_v57 = vpop.eup %3527 }
 0xe96   :  { %1237 = vrot.lane.b32.xlu1 %v3528_v57, %s3842_s0  ;;  %v3530_v63 = vpop.eup %3529 }
 0xe97   :  { %v1099_v0 = vadd.f32 1.0, %v3530_v63 }
 0xe99   :  { %3531 = vrcp.f32 %v1099_v0  ;;  %v1111_v18 = vand.u32 2147483648, %v1099_v0  ;;  %vm1105_vm14 = vweird.f32 %v1099_v0  ;;  %v1109_v24 = vand.u32 2147483647, %v1099_v0 }
 0xe9a   :  { %3533 = vpow2.f32 %v3353_v59 }
 0xe9b   :  { %v1112_v27 = vor.u32 1.1754944e-38, %v1111_v18  ;;  %vm1110_vm3 = vcmp.eq.f32.partialorder %v1109_v24, 8.507059e+37 }
 0xe9e   :  { %1209 = vrot.lane.b32.xlu1 %v1208_v58, %s3844_s3 }
 0xe9f   :  { %v3532_v12 = vpop.eup %3531 }
 0xea0   :  { %v1101_v13 = vmul.f32 %v3532_v12, %v1099_v0  ;;  %vm1106_vm0 = vweird.f32 %v3532_v12  ;;  %v3534_v34 = vpop.eup %3533 }
 0xea1   :  { %vm1107_vm15 = vmor %vm1105_vm14, %vm1106_vm0  ;;  %v1144_v1 = vadd.f32 1.0, %v3534_v34 }
 0xea2   :  { %v1102_v16 = vsub.f32 1.0, %v1101_v13 }
 0xea3   :  { %3535 = vrcp.f32 %v1144_v1  ;;  %v1156_v9 = vand.u32 2147483648, %v1144_v1  ;;  %vm1150_vm5 = vweird.f32 %v1144_v1  ;;  %v1154_v11 = vand.u32 2147483647, %v1144_v1 }
 0xea4   :  { %v1103_v38 = vmul.f32 %v3532_v12, %v1102_v16 }
 0xea5   :  { %v1157_v20 = vor.u32 1.1754944e-38, %v1156_v9  ;;  %vm1155_vm7 = vcmp.eq.f32.partialorder %v1154_v11, 8.507059e+37 }
 0xea6   :  { %v1104_v17 = vadd.f32 %v3532_v12, %v1103_v38 }
 0xea8   :  { %v1108_v26 = vsel %vm1107_vm15, %v3532_v12, %v1104_v17 }
 0xea9   :  { %v1113_v29 = vsel %vm1110_vm3, %v1112_v27, %v1108_v26  ;;  %v3536_v2 = vpop.eup %3535 }
 0xeaa   :  { %v1146_v3 = vmul.f32 %v3536_v2, %v1144_v1  ;;  %vm1151_vm4 = vweird.f32 %v3536_v2 }
 0xeab   :  { %vm1152_vm6 = vmor %vm1150_vm5, %vm1151_vm4 }
 0xeac   :  { %v1147_v4 = vsub.f32 1.0, %v1146_v3 }
 0xeae   :  { %v1148_v5 = vmul.f32 %v3536_v2, %v1147_v4 }
 0xeb0   :  { %v1149_v8 = vadd.f32 %v3536_v2, %v1148_v5 }
 0xeb2   :  { %v1153_v36 = vsel %vm1152_vm6, %v3536_v2, %v1149_v8 }
 0xeb3   :  { %v1158_v14 = vsel %vm1155_vm7, %v1157_v20, %v1153_v36 }
 0xeb4   :  { %v1235_v23 = vmul.f32 %v1233_v44, %v1158_v14 }
 0xf08   :  { %v1238_v28 = vpop.permute.xlu1 %1237 }
 0xf09   :  { %v1240_v30 = vmul.f32 %v1238_v28, %v1113_v29 }
 0xf0b   :  { %1242 = vrot.lane.b32.xlu0 %v1240_v30, %s3843_s1 }
 0xf10   :  { %v1210_v10 = vpop.permute.xlu1 %1209 }
 0xf11   :  { %v1212_v15 = vadd.f32 %v1210_v10, %v4023_v25 }
 0xf13   :  { %v3356_v47 = vmul.f32 -1.442695, %v1212_v15 }
 0xf7d   :  { %v1243_v45 = vpop.permute.xlu0 %1242 }
 0xf7e   :  { %v4237_v21 = vadd.f32 %v1243_v45, %v1235_v23 }
 0xf80   :  { %3537 = vtanh.f32 %v4237_v21  ;;  %v1419_v10 = vrot.slane %v4237_v21, 7 }
 0xf81   :  { %3539 = vpow2.f32 %v3356_v47 }
 0xf86   :  { %v3538_v46 = vpop.eup %3537 }
 0xf87   :  { %1248 = vrot.lane.b32.xlu2 %v3538_v46, %s3842_s0  ;;  %v3540_v22 = vpop.eup %3539 }
 0xf88   :  { %v1216_v48 = vadd.f32 1.0, %v3540_v22 }
 0xf8a   :  { %3541 = vrcp.f32 %v1216_v48  ;;  %v1228_v7 = vand.u32 2147483648, %v1216_v48  ;;  %vm1222_vm9 = vweird.f32 %v1216_v48  ;;  %v1226_v54 = vand.u32 2147483647, %v1216_v48 }
 0xf8c   :  { %v1229_v35 = vor.u32 1.1754944e-38, %v1228_v7  ;;  %vm1227_vm11 = vcmp.eq.f32.partialorder %v1226_v54, 8.507059e+37 }
 0xf90   :  { %v3542_v49 = vpop.eup %3541 }
 0xf91   :  { %v1218_v50 = vmul.f32 %v3542_v49, %v1216_v48  ;;  %vm1223_vm8 = vweird.f32 %v3542_v49 }
 0xf92   :  { %vm1224_vm10 = vmor %vm1222_vm9, %vm1223_vm8 }
 0xf93   :  { %v1219_v6 = vsub.f32 1.0, %v1218_v50 }
 0xf95   :  { %v1220_v52 = vmul.f32 %v3542_v49, %v1219_v6 }
 0xf97   :  { %v1221_v53 = vadd.f32 %v3542_v49, %v1220_v52 }
 0xf99   :  { %v1225_v55 = vsel %vm1224_vm10, %v3542_v49, %v1221_v53 }
 0xf9a   :  { %v1230_v33 = vsel %vm1227_vm11, %v1229_v35, %v1225_v55  ;;  %vm1633_vm11 = vcmask 1045504  }
 0xfe1   :  { %v1249_v37 = vpop.permute.xlu2 %1248 }
 0xfe2   :  { %v1251_v39 = vmul.f32 %v1249_v37, %v1230_v33 }
 0xfe4   :  { %v1253_v40 = vrot.slane %v1251_v39, 5  ;;  %v4243_v56 = vsel %vm1631_vm12, %v4211_v51, %v1251_v39 }
 0xfe6   :  { %1254 = vrot.lane.b32.xlu0 %v1253_v40, %s3843_s1 }
0x1058   :  { %v1255_v41 = vpop.permute.xlu0 %1254 }
0x1059   :  { %3357 = vmatmul.msk.f32.vlgmr.msra.gmra.mxu1 %vm143_vm2, %v1255_v41  ;;  %3359 = vmatmul.msk.f32.vlgmr.msra.gmra.mxu2 %vm143_vm2, %v1255_v41 }
0x105a   :  { %3361 = vmatmul.msk.f32.vlgmr.msra.gmra.mxu3 %vm143_vm2, %v1255_v41  ;;  %3362 = vmatmul.msk.f32.vlgmr.msrb.gmra.mxu0 %vm143_vm2, %v1255_v41 }
0x10d6   :  { %v1275_v63 = vpop.f32.mrf.mxu1 }
0x10d7   :  { %v1390_v61 = vpop.f32.mrf.mxu0  ;;  %v1279_v0 = vrot.slane %v1275_v63, 2 }
0x10d8   :  { %v1394_v62 = vrot.slane %v1390_v61, 2 }
0x10d9   :  { %v1281_v12 = vadd.f32 %v1279_v0, %v4023_v25 }
0x10db   :  { %v3358_v13 = vmul.f32 -1.442695, %v1281_v12 }
0x10dc   :  { %v1318_v19 = vpop.f32.mrf.mxu2 }
0x10dd   :  { %v1322_v57 = vrot.slane %v1318_v19, 2  ;;  %v1363_v42 = vpop.f32.mrf.mxu3 }
0x10de   :  { %v1367_v58 = vrot.slane %v1363_v42, 2 }
0x10df   :  { %1323 = vrot.lane.b32.xlu0 %v1322_v57, %s3843_s1 }
0x10e0   :  { %1368 = vrot.lane.b32.xlu1 %v1367_v58, %s3842_s0 }
0x1151   :  { %v1324_v1 = vpop.permute.xlu0 %1323 }
0x1152   :  { %v1369_v51 = vpop.permute.xlu1 %1368  ;;  %v1326_v2 = vadd.f32 %v1324_v1, %v4023_v25 }
0x1153   :  { %v1371_v43 = vadd.f32 %v1369_v51, %v4023_v25 }
0x1154   :  { %v3360_v3 = vmul.f32 -1.442695, %v1326_v2 }
0x1155   :  { %3543 = vtanh.f32 %v1371_v43 }
0x1156   :  { %3545 = vpow2.f32 %v3358_v13 }
0x115b   :  { %v3544_v60 = vpop.eup %3543 }
0x115c   :  { %1423 = vrot.lane.b32.xlu2 %v3544_v60, %s3842_s0  ;;  %v3546_v16 = vpop.eup %3545 }
0x115d   :  { %v1285_v38 = vadd.f32 1.0, %v3546_v16 }
0x115f   :  { %3547 = vrcp.f32 %v1285_v38  ;;  %v1297_v28 = vand.u32 2147483648, %v1285_v38  ;;  %vm1291_vm0 = vweird.f32 %v1285_v38  ;;  %v1295_v29 = vand.u32 2147483647, %v1285_v38 }
0x1160   :  { %3549 = vpow2.f32 %v3360_v3 }
0x1161   :  { %v1298_v31 = vor.u32 1.1754944e-38, %v1297_v28  ;;  %vm1296_vm15 = vcmp.eq.f32.partialorder %v1295_v29, 8.507059e+37 }
0x1164   :  { %1395 = vrot.lane.b32.xlu2 %v1394_v62, %s3844_s3 }
0x1165   :  { %v3548_v17 = vpop.eup %3547 }
0x1166   :  { %v1287_v18 = vmul.f32 %v3548_v17, %v1285_v38  ;;  %vm1292_vm13 = vweird.f32 %v3548_v17  ;;  %v3550_v4 = vpop.eup %3549 }
0x1167   :  { %vm1293_vm14 = vmor %vm1291_vm0, %vm1292_vm13  ;;  %v1330_v5 = vadd.f32 1.0, %v3550_v4 }
0x1168   :  { %v1288_v24 = vsub.f32 1.0, %v1287_v18 }
0x1169   :  { %3551 = vrcp.f32 %v1330_v5  ;;  %v1342_v14 = vand.u32 2147483648, %v1330_v5  ;;  %vm1336_vm4 = vweird.f32 %v1330_v5  ;;  %v1340_v44 = vand.u32 2147483647, %v1330_v5 }
0x116a   :  { %v1289_v26 = vmul.f32 %v3548_v17, %v1288_v24 }
0x116b   :  { %v1343_v45 = vor.u32 1.1754944e-38, %v1342_v14  ;;  %vm1341_vm6 = vcmp.eq.f32.partialorder %v1340_v44, 8.507059e+37  ;;  %v4280_v44 = vld [vmem:[#allocation8 + $0x58] sm:$0xff] }
0x116c   :  { %v1290_v27 = vadd.f32 %v3548_v17, %v1289_v26  ;;  %1793 = vmatpush.msrb.mxu0 %v4280_v44 }
0x116e   :  { %v1294_v30 = vsel %vm1293_vm14, %v3548_v17, %v1290_v27 }
0x116f   :  { %v1299_v59 = vsel %vm1296_vm15, %v1298_v31, %v1294_v30  ;;  %v3552_v8 = vpop.eup %3551 }
0x1170   :  { %v1332_v9 = vmul.f32 %v3552_v8, %v1330_v5  ;;  %vm1337_vm3 = vweird.f32 %v3552_v8 }
0x1171   :  { %vm1338_vm5 = vmor %vm1336_vm4, %vm1337_vm3 }
0x1172   :  { %v1333_v11 = vsub.f32 1.0, %v1332_v9 }
0x1174   :  { %v1334_v36 = vmul.f32 %v3552_v8, %v1333_v11 }
0x1176   :  { %v1335_v20 = vadd.f32 %v3552_v8, %v1334_v36 }
0x1178   :  { %v1339_v23 = vsel %vm1338_vm5, %v3552_v8, %v1335_v20 }
0x1179   :  { %v1344_v46 = vsel %vm1341_vm6, %v1343_v45, %v1339_v23  ;;  %v4282_v23 = vld [vmem:[#allocation8 + $0x50] sm:$0xff]  ;;  %v4285_v45 = vld [vmem:[#allocation8 + $0x38] sm:$0xff] }
0x117a   :  { %v1421_v15 = vmul.f32 %v1419_v10, %v1344_v46  ;;  %v4287_v46 = vld [vmem:[#allocation8 + $0x48] sm:$0xff]  ;;  %1749 = vmatpush.msra.mxu3 %v4285_v45  ;;  %v4290_v10 = vld [vmem:[#allocation8 + $0x30] sm:$0xff]  ;;  %1794 = vmatpush.msrb.mxu0 %v4282_v23 }
0x117c   :  { %1750 = vmatpush.msra.mxu3 %v4290_v10  ;;  %1795 = vmatpush.msrb.mxu0 %v4287_v46 }
0x11b6   :  { %v1424_v32 = vpop.permute.xlu2 %1423 }
0x11b7   :  { %v1426_v34 = vmul.f32 %v1424_v32, %v1299_v59 }
0x11b9   :  { %1428 = vrot.lane.b32.xlu1 %v1426_v34, %s3843_s1 }
0x11be   :  { %v1396_v49 = vpop.permute.xlu2 %1395 }
0x11bf   :  { %v1398_v50 = vadd.f32 %v1396_v49, %v4023_v25  ;;  %v4302_v49 = vld [vmem:[%s4680_s7 + $0x1] sm:$0x1] }
0x11c1   :  { %v3363_v6 = vmul.f32 -1.442695, %v1398_v50  ;;  %v4304_v50 = vld [vmem:[#allocation8 + $0x20] sm:$0xff] }
0x122b   :  { %v1429_v47 = vpop.permute.xlu1 %1428 }
0x122c   :  { %v4259_v22 = vadd.f32 %v1429_v47, %v1421_v15  ;;  %v4293_v47 = vld [vmem:[#allocation8 + $0x28] sm:$0xff] }
0x122d   :  { %1751 = vmatpush.msra.mxu3 %v4293_v47 }
0x122e   :  { %3553 = vtanh.f32 %v4259_v22 }
0x122f   :  { %3555 = vpow2.f32 %v3363_v6  ;;  %1752 = vmatpush.msra.mxu3 %v4304_v50 }
0x1234   :  { %v3554_v48 = vpop.eup %3553 }
0x1235   :  { %1434 = vrot.lane.b32.xlu0 %v3554_v48, %s3842_s0  ;;  %v3556_v52 = vpop.eup %3555  ;;  %v4295_v48 = vld [vmem:[#allocation8 + $0x40] sm:$0xff] }
0x1236   :  { %v1402_v53 = vadd.f32 1.0, %v3556_v52  ;;  %1796 = vmatpush.msrb.mxu0 %v4295_v48 }
0x1238   :  { %3557 = vrcp.f32 %v1402_v53  ;;  %v1414_v33 = vand.u32 2147483648, %v1402_v53  ;;  %vm1408_vm8 = vweird.f32 %v1402_v53  ;;  %v1412_v37 = vand.u32 2147483647, %v1402_v53 }
0x123a   :  { %v1415_v40 = vor.u32 1.1754944e-38, %v1414_v33  ;;  %vm1413_vm10 = vcmp.eq.f32.partialorder %v1412_v37, 8.507059e+37 }
0x123e   :  { %v3558_v7 = vpop.eup %3557 }
0x123f   :  { %v1404_v54 = vmul.f32 %v3558_v7, %v1402_v53  ;;  %vm1409_vm7 = vweird.f32 %v3558_v7 }
0x1240   :  { %vm1410_vm9 = vmor %vm1408_vm8, %vm1409_vm7 }
0x1241   :  { %v1405_v21 = vsub.f32 1.0, %v1404_v54 }
0x1243   :  { %v1406_v55 = vmul.f32 %v3558_v7, %v1405_v21 }
0x1245   :  { %v1407_v35 = vadd.f32 %v3558_v7, %v1406_v55 }
0x1247   :  { %v1411_v39 = vsel %vm1410_vm9, %v3558_v7, %v1407_v35  ;;  %v1605_v35 = vrot.slane %v4259_v22, 7 }
0x1248   :  { %v1416_v41 = vsel %vm1413_vm10, %v1415_v40, %v1411_v39  ;;  %vm1635_vm10 = vcmask 1046528  }
0x12a7   :  { %v1435_v19 = vpop.permute.xlu0 %1434 }
0x12a8   :  { %v1437_v57 = vmul.f32 %v1435_v19, %v1416_v41 }
0x12aa   :  { %v1439_v42 = vrot.slane %v1437_v57, 6  ;;  %v4265_v58 = vsel %vm1633_vm11, %v4243_v56, %v1437_v57 }
0x12ac   :  { %1440 = vrot.lane.b32.xlu1 %v1439_v42, %s3843_s1 }
0x131e   :  { %v1441_v51 = vpop.permute.xlu1 %1440 }
0x131f   :  { %3364 = vmatmul.msk.f32.vlgmr.msrb.gmra.mxu1 %vm143_vm2, %v1441_v51  ;;  %3366 = vmatmul.msk.f32.vlgmr.msrb.gmra.mxu2 %vm143_vm2, %v1441_v51 }
0x1320   :  { %3368 = vmatmul.msk.f32.vlgmr.msrb.gmra.mxu3 %vm143_vm2, %v1441_v51  ;;  %3369 = vmatmul.msk.f32.vlgmr.msra.gmra.mxu0 %vm143_vm2, %v1441_v51  ;;  %v4332_v51 = vld [vmem:[#allocation8 + $0x18] sm:$0xff] }
0x1321   :  { %1992 = vmatpush.msra.mxu0 %v4280_v44  ;;  %1947 = vmatpush.msrb.mxu3 %v4285_v45 }
0x1322   :  { %1709 = vmatpush.msra.mxu2 %v4332_v51 }
0x1323   :  { %1993 = vmatpush.msra.mxu0 %v4282_v23  ;;  %1948 = vmatpush.msrb.mxu3 %v4290_v10 }
0x1325   :  { %1994 = vmatpush.msra.mxu0 %v4287_v46  ;;  %1949 = vmatpush.msrb.mxu3 %v4293_v47 }
0x1327   :  { %1995 = vmatpush.msra.mxu0 %v4295_v48  ;;  %1950 = vmatpush.msrb.mxu3 %v4304_v50 }
0x1328   :  { %3378 = vmatmul.msk.f32.vlgmr.msrb.gmra.mxu0 %vm143_vm2, %v4302_v49  ;;  %3376 = vmatmul.msk.f32.vlgmr.msra.gmra.mxu3 %vm143_vm2, %v4302_v49 }
0x1329   :  { %2187 = vmatpush.msrb.mxu0 %v4280_v44  ;;  %2142 = vmatpush.msra.mxu3 %v4285_v45 }
0x132b   :  { %2188 = vmatpush.msrb.mxu0 %v4282_v23  ;;  %2143 = vmatpush.msra.mxu3 %v4290_v10 }
0x132d   :  { %2189 = vmatpush.msrb.mxu0 %v4287_v46  ;;  %2144 = vmatpush.msra.mxu3 %v4293_v47 }
0x132f   :  { %2190 = vmatpush.msrb.mxu0 %v4295_v48  ;;  %2145 = vmatpush.msra.mxu3 %v4304_v50 }
0x139c   :  { %v1461_v16 = vpop.f32.mrf.mxu1 }
0x139d   :  { %v1576_v12 = vpop.f32.mrf.mxu0  ;;  %v1465_v38 = vrot.slane %v1461_v16, 1 }
0x139e   :  { %v1580_v13 = vrot.slane %v1576_v12, 1 }
0x139f   :  { %v1467_v17 = vadd.f32 %v1465_v38, %v4023_v25 }
0x13a1   :  { %v3365_v18 = vmul.f32 -1.442695, %v1467_v17 }
0x13a2   :  { %v1504_v43 = vpop.f32.mrf.mxu2 }
0x13a3   :  { %v1508_v60 = vrot.slane %v1504_v43, 1  ;;  %v1549_v61 = vpop.f32.mrf.mxu3  ;;  %v4334_v43 = vld [vmem:[#allocation8 + $0x10] sm:$0xff] }
0x13a4   :  { %v1553_v62 = vrot.slane %v1549_v61, 1  ;;  %v1639_v61 = vld [vmem:[#allocation6 + $0x10] sm:$0xff]  ;;  %1710 = vmatpush.msra.mxu2 %v4334_v43 }
0x13a5   :  { %1509 = vrot.lane.b32.xlu1 %v1508_v60, %s3843_s1  ;;  %v1640_v60 = vld [vmem:[#allocation6 + $0x18] sm:$0xff] }
0x13a6   :  { %1554 = vrot.lane.b32.xlu2 %v1553_v62, %s3842_s0  ;;  %1662 = vmatpush.msra.mxu1 %v1640_v60  ;;  %v4337_v62 = vld [vmem:[#allocation8 + $0x8] sm:$0xff] }
0x13a7   :  { %1711 = vmatpush.msra.mxu2 %v4337_v62 }
0x13a8   :  { %1663 = vmatpush.msra.mxu1 %v1639_v61 }
0x1400   :  { %v1555_v56 = vpop.permute.xlu2 %1554 }
0x1401   :  { %v1557_v63 = vadd.f32 %v1555_v56, %v4023_v25  ;;  %v1638_v56 = vld [vmem:[#allocation6 + $0x8] sm:$0xff] }
0x1402   :  { %1664 = vmatpush.msra.mxu1 %v1638_v56 }
0x1403   :  { %3559 = vtanh.f32 %v1557_v63  ;;  %v1637_v63 = vld [vmem:[#allocation6] sm:$0xff] }
0x1404   :  { %3561 = vpow2.f32 %v3365_v18  ;;  %1665 = vmatpush.msra.mxu1 %v1637_v63 }
0x1409   :  { %v3560_v0 = vpop.eup %3559 }
0x140a   :  { %1609 = vrot.lane.b32.xlu0 %v3560_v0, %s3842_s0  ;;  %v3562_v24 = vpop.eup %3561 }
0x140b   :  { %v1471_v26 = vadd.f32 1.0, %v3562_v24 }
0x140d   :  { %3563 = vrcp.f32 %v1471_v26  ;;  %v1483_v32 = vand.u32 2147483648, %v1471_v26  ;;  %vm1477_vm13 = vweird.f32 %v1471_v26  ;;  %v1481_v59 = vand.u32 2147483647, %v1471_v26 }
0x140f   :  { %v1484_v1 = vor.u32 1.1754944e-38, %v1483_v32  ;;  %vm1482_vm14 = vcmp.eq.f32.partialorder %v1481_v59, 8.507059e+37  ;;  %v4358_v32 = vld [vmem:[#allocation8 + $0x70] sm:$0xff]  ;;  %v4361_v59 = vld [vmem:[#allocation8 + $0x68] sm:$0xff] }
0x1412   :  { %1581 = vrot.lane.b32.xlu0 %v1580_v13, %s3844_s3 }
0x1413   :  { %v3564_v27 = vpop.eup %3563 }
0x1414   :  { %v1473_v28 = vmul.f32 %v3564_v27, %v1471_v26  ;;  %vm1478_vm12 = vweird.f32 %v3564_v27 }
0x1415   :  { %vm1479_vm0 = vmor %vm1477_vm13, %vm1478_vm12 }
0x1416   :  { %v1474_v29 = vsub.f32 1.0, %v1473_v28 }
0x1417   :  { %v1510_v5 = vpop.permute.xlu1 %1509 }
0x1418   :  { %v1475_v30 = vmul.f32 %v3564_v27, %v1474_v29  ;;  %v1512_v8 = vadd.f32 %v1510_v5, %v4023_v25 }
0x141a   :  { %v1476_v31 = vadd.f32 %v3564_v27, %v1475_v30  ;;  %v3367_v9 = vmul.f32 -1.442695, %v1512_v8 }
0x141c   :  { %v1480_v34 = vsel %vm1479_vm0, %v3564_v27, %v1476_v31  ;;  %3565 = vpow2.f32 %v3367_v9  ;;  %v4356_v31 = vld [vmem:[#allocation8 + $0x78] sm:$0xff] }
0x141d   :  { %v1485_v3 = vsel %vm1482_vm14, %v1484_v1, %v1480_v34  ;;  %1819 = vmatpush.msrb.mxu1 %v4356_v31  ;;  %v4364_v34 = vld [vmem:[#allocation8 + $0x60] sm:$0xff]  ;;  %v1798_v1 = vpop.f32.mrf.mxu0 }
0x141e   :  { %1802 = vrot.lane.b32.xlu0 %v1798_v1, %s3842_s0 }
0x141f   :  { %1820 = vmatpush.msrb.mxu1 %v4358_v32 }
0x1421   :  { %1821 = vmatpush.msrb.mxu1 %v4361_v59 }
0x1422   :  { %v3566_v11 = vpop.eup %3565 }
0x1423   :  { %v1516_v36 = vadd.f32 1.0, %v3566_v11  ;;  %1822 = vmatpush.msrb.mxu1 %v4364_v34 }
0x1425   :  { %3567 = vrcp.f32 %v1516_v36  ;;  %v1528_v53 = vand.u32 2147483648, %v1516_v36  ;;  %vm1522_vm3 = vweird.f32 %v1516_v36  ;;  %v1526_v7 = vand.u32 2147483647, %v1516_v36 }
0x1427   :  { %v1529_v21 = vor.u32 1.1754944e-38, %v1528_v53  ;;  %vm1527_vm5 = vcmp.eq.f32.partialorder %v1526_v7, 8.507059e+37 }
0x142b   :  { %v3568_v20 = vpop.eup %3567 }
0x142c   :  { %v1518_v14 = vmul.f32 %v3568_v20, %v1516_v36  ;;  %vm1523_vm15 = vweird.f32 %v3568_v20 }
0x142d   :  { %vm1524_vm4 = vmor %vm1522_vm3, %vm1523_vm15 }
0x142e   :  { %v1519_v15 = vsub.f32 1.0, %v1518_v14 }
0x1430   :  { %v1520_v6 = vmul.f32 %v3568_v20, %v1519_v15 }
0x1432   :  { %v1521_v52 = vadd.f32 %v3568_v20, %v1520_v6 }
0x1434   :  { %v1525_v54 = vsel %vm1524_vm4, %v3568_v20, %v1521_v52 }
0x1435   :  { %v1530_v55 = vsel %vm1527_vm5, %v1529_v21, %v1525_v54 }
0x1436   :  { %v1607_v33 = vmul.f32 %v1605_v35, %v1530_v55 }
0x147c   :  { %v1610_v2 = vpop.permute.xlu0 %1609 }
0x147d   :  { %v1612_v4 = vmul.f32 %v1610_v2, %v1485_v3  ;;  %v3444_v2 = vld [vmem:[%s4681_s8 + $0x1] ss:$0 sm:$0xff] }
0x147e   :  { %1853 = vrot.lane.b32.xlu0 %v3444_v2, %s3843_s1 }
0x147f   :  { %1614 = vrot.lane.b32.xlu2 %v1612_v4, %s3843_s1  ;;  %v3445_v4 = vld [vmem:[%s4679_s6] ss:$0 sm:$0xff] }
0x1484   :  { %v1582_v41 = vpop.permute.xlu0 %1581 }
0x1485   :  { %v1584_v22 = vadd.f32 %v1582_v41, %v4023_v25  ;;  %v4340_v25 = vld [vmem:[#allocation8] sm:$0xff] }
0x1486   :  { %1712 = vmatpush.msra.mxu2 %v4340_v25 }
0x1487   :  { %v3370_v19 = vmul.f32 -1.442695, %v1584_v22  ;;  %3374 = vmatmul.msk.f32.vlgmr.msra.gmra.mxu2 %vm143_vm2, %v4302_v49 }
0x1488   :  { %1904 = vmatpush.msrb.mxu2 %v4332_v51 }
0x148a   :  { %1905 = vmatpush.msrb.mxu2 %v4334_v43 }
0x148c   :  { %1906 = vmatpush.msrb.mxu2 %v4337_v62 }
0x148e   :  { %1907 = vmatpush.msrb.mxu2 %v4340_v25 }
0x1490   :  { %2099 = vmatpush.msra.mxu2 %v4332_v51  ;;  %v1803_v8 = vpop.permute.xlu0 %1802 }
0x1492   :  { %2100 = vmatpush.msra.mxu2 %v4334_v43 }
0x1494   :  { %2101 = vmatpush.msra.mxu2 %v4337_v62 }
0x1496   :  { %2102 = vmatpush.msra.mxu2 %v4340_v25 }
0x14d9   :  { %v1615_v37 = vpop.permute.xlu2 %1614 }
0x14da   :  { %v1617_v39 = vadd.f32 %v1615_v37, %v1607_v33 }
0x14dc   :  { %3569 = vtanh.f32 %v1617_v39 }
0x14dd   :  { %3571 = vpow2.f32 %v3370_v19 }
0x14e2   :  { %v3570_v40 = vpop.eup %3569 }
0x14e3   :  { %1620 = vrot.lane.b32.xlu1 %v3570_v40, %s3842_s0  ;;  %v3572_v57 = vpop.eup %3571 }
0x14e4   :  { %v1588_v42 = vadd.f32 1.0, %v3572_v57 }
0x14e6   :  { %3573 = vrcp.f32 %v1588_v42  ;;  %v1600_v17 = vand.u32 2147483648, %v1588_v42  ;;  %vm1594_vm7 = vweird.f32 %v1588_v42  ;;  %v1598_v18 = vand.u32 2147483647, %v1588_v42 }
0x14e8   :  { %v1601_v26 = vor.u32 1.1754944e-38, %v1600_v17  ;;  %vm1599_vm9 = vcmp.eq.f32.partialorder %v1598_v18, 8.507059e+37 }
0x14ec   :  { %v3574_v0 = vpop.eup %3573 }
0x14ed   :  { %v1590_v12 = vmul.f32 %v3574_v0, %v1588_v42  ;;  %vm1595_vm6 = vweird.f32 %v3574_v0 }
0x14ee   :  { %vm1596_vm8 = vmor %vm1594_vm7, %vm1595_vm6 }
0x14ef   :  { %v1591_v13 = vsub.f32 1.0, %v1590_v12 }
0x14f1   :  { %v1592_v16 = vmul.f32 %v3574_v0, %v1591_v13 }
0x14f3   :  { %v1593_v38 = vadd.f32 %v3574_v0, %v1592_v16 }
0x14f5   :  { %v1597_v24 = vsel %vm1596_vm8, %v3574_v0, %v1593_v38 }
0x14f6   :  { %v1602_v27 = vsel %vm1599_vm9, %v1601_v26, %v1597_v24  ;;  %v1854_v24 = vpop.permute.xlu0 %1853 }
0x150a   :  { %v1714_v14 = vpop.f32.mrf.mxu2 }
0x1555   :  { %v1621_v28 = vpop.permute.xlu1 %1620 }
0x1556   :  { %v1623_v29 = vmul.f32 %v1621_v28, %v1602_v27 }
0x1558   :  { %v1636_v30 = vsel %vm1635_vm10, %v4265_v58, %v1623_v29  ;;  %v1754_v58 = vpop.f32.mrf.mxu3 }
0x1559   :  { %1646 = vrot.lane.b32.xlu2 %v1636_v30, %s3843_s1 }
0x1561   :  { %1758 = vrot.lane.b32.xlu2 %v1754_v58, %s3843_s1 }
0x15b3   :  { %v1647_v3 = vpop.permute.xlu2 %1646 }
0x15b4   :  { %3371 = vmatmul.msk.f32.vlgmr.msra.gmra.mxu1 %vm143_vm2, %v1647_v3 }
0x15b5   :  { %2019 = vmatpush.msra.mxu1 %v4356_v31 }
0x15b7   :  { %2020 = vmatpush.msra.mxu1 %v4358_v32 }
0x15b9   :  { %2021 = vmatpush.msra.mxu1 %v4361_v59 }
0x15bb   :  { %2022 = vmatpush.msra.mxu1 %v4364_v34  ;;  %v1759_v19 = vpop.permute.xlu2 %1758 }
0x15bc   :  { %3379 = vmatmul.msk.f32.vlgmr.msrb.gmra.mxu1 %vm143_vm2, %v4302_v49 }
0x15bd   :  { %2214 = vmatpush.msrb.mxu1 %v4356_v31 }
0x15bf   :  { %2215 = vmatpush.msrb.mxu1 %v4358_v32 }
0x15c1   :  { %2216 = vmatpush.msrb.mxu1 %v4361_v59 }
0x15c3   :  { %2217 = vmatpush.msrb.mxu1 %v4364_v34 }
0x1631   :  { %v1667_v5 = vpop.f32.mrf.mxu1 }
0x1632   :  { %v4388_v9 = vadd.f32 %v3445_v4, %v1667_v5 }
0x1634   :  { %v1805_v11 = vadd.f32 %v1803_v8, %v4388_v9  ;;  %v1717_v15 = vadd.f32 %v1714_v14, %v4388_v9  ;;  %v1761_v57 = vadd.f32 %v1759_v19, %v4388_v9 }
0x1636   :  { %3575 = vtanh.f32 %v1805_v11  ;;  %v3375_v49 = vmul.f32 -1.442695, %v1717_v15  ;;  %v3377_v42 = vmul.f32 -1.442695, %v1761_v57 }
0x1638   :  { %3577 = vpow2.f32 %v3375_v49 }
0x1639   :  { %v1824_v36 = vpop.f32.mrf.mxu1 }
0x163a   :  { %1828 = vrot.lane.b32.xlu2 %v1824_v36, %s3844_s3 }
0x163c   :  { %v3576_v20 = vpop.eup %3575 }
0x163d   :  { %1858 = vrot.lane.b32.xlu1 %v3576_v20, %s3842_s0 }
0x163e   :  { %v3578_v6 = vpop.eup %3577 }
0x163f   :  { %v1721_v52 = vadd.f32 1.0, %v3578_v6 }
0x1641   :  { %3579 = vrcp.f32 %v1721_v52  ;;  %v1733_v35 = vand.u32 2147483648, %v1721_v52  ;;  %vm1727_vm12 = vweird.f32 %v1721_v52  ;;  %v1731_v33 = vand.u32 2147483647, %v1721_v52 }
0x1642   :  { %3581 = vpow2.f32 %v3377_v42 }
0x1643   :  { %v1734_v39 = vor.u32 1.1754944e-38, %v1733_v35  ;;  %vm1732_vm0 = vcmp.eq.f32.partialorder %v1731_v33, 8.507059e+37 }
0x1647   :  { %v3580_v53 = vpop.eup %3579 }
0x1648   :  { %v1723_v7 = vmul.f32 %v3580_v53, %v1721_v52  ;;  %vm1728_vm11 = vweird.f32 %v3580_v53  ;;  %v3582_v60 = vpop.eup %3581 }
0x1649   :  { %vm1729_vm13 = vmor %vm1727_vm12, %vm1728_vm11  ;;  %v1765_v61 = vadd.f32 1.0, %v3582_v60 }
0x164a   :  { %v1724_v54 = vsub.f32 1.0, %v1723_v7 }
0x164b   :  { %3583 = vrcp.f32 %v1765_v61  ;;  %v1777_v16 = vand.u32 2147483648, %v1765_v61  ;;  %vm1771_vm15 = vweird.f32 %v1765_v61  ;;  %v1775_v38 = vand.u32 2147483647, %v1765_v61 }
0x164c   :  { %v1725_v21 = vmul.f32 %v3580_v53, %v1724_v54 }
0x164d   :  { %v1778_v18 = vor.u32 1.1754944e-38, %v1777_v16  ;;  %vm1776_vm4 = vcmp.eq.f32.partialorder %v1775_v38, 8.507059e+37 }
0x164e   :  { %v1726_v55 = vadd.f32 %v3580_v53, %v1725_v21 }
0x1650   :  { %v1730_v37 = vsel %vm1729_vm13, %v3580_v53, %v1726_v55 }
0x1651   :  { %v1735_v41 = vsel %vm1732_vm0, %v1734_v39, %v1730_v37  ;;  %v3584_v56 = vpop.eup %3583 }
0x1652   :  { %v1767_v63 = vmul.f32 %v3584_v56, %v1765_v61  ;;  %vm1772_vm14 = vweird.f32 %v3584_v56 }
0x1653   :  { %vm1773_vm3 = vmor %vm1771_vm15, %vm1772_vm14 }
0x1654   :  { %v1768_v0 = vsub.f32 1.0, %v1767_v63 }
0x1656   :  { %v1769_v12 = vmul.f32 %v3584_v56, %v1768_v0 }
0x1658   :  { %v1770_v13 = vadd.f32 %v3584_v56, %v1769_v12 }
0x165a   :  { %v1774_v17 = vsel %vm1773_vm3, %v3584_v56, %v1770_v13 }
0x165b   :  { %v1779_v26 = vsel %vm1776_vm4, %v1778_v18, %v1774_v17 }
0x165c   :  { %v1856_v27 = vmul.f32 %v1854_v24, %v1779_v26 }
0x1694   :  { %v1829_v1 = vpop.permute.xlu2 %1828 }
0x1695   :  { %v1831_v58 = vadd.f32 %v1829_v1, %v4388_v9 }
0x1697   :  { %v3380_v2 = vmul.f32 -1.442695, %v1831_v58 }
0x16af   :  { %v1859_v40 = vpop.permute.xlu1 %1858 }
0x16b0   :  { %v1861_v22 = vmul.f32 %v1859_v40, %v1735_v41 }
0x16b2   :  { %1863 = vrot.lane.b32.xlu1 %v1861_v22, %s3843_s1 }
0x1724   :  { %v1864_v28 = vpop.permute.xlu1 %1863 }
0x1725   :  { %v4396_v29 = vadd.f32 %v1864_v28, %v1856_v27 }
0x1727   :  { %3585 = vtanh.f32 %v4396_v29 }
0x1728   :  { %3587 = vpow2.f32 %v3380_v2 }
0x172d   :  { %v3586_v30 = vpop.eup %3585 }
0x172e   :  { %1869 = vrot.lane.b32.xlu0 %v3586_v30, %s3842_s0  ;;  %v3588_v3 = vpop.eup %3587 }
0x172f   :  { %v1835_v4 = vadd.f32 1.0, %v3588_v3 }
0x1731   :  { %3589 = vrcp.f32 %v1835_v4  ;;  %v1847_v14 = vand.u32 2147483648, %v1835_v4  ;;  %vm1841_vm6 = vweird.f32 %v1835_v4  ;;  %v1845_v15 = vand.u32 2147483647, %v1835_v4 }
0x1733   :  { %v1848_v6 = vor.u32 1.1754944e-38, %v1847_v14  ;;  %vm1846_vm8 = vcmp.eq.f32.partialorder %v1845_v15, 8.507059e+37 }
0x1737   :  { %v3590_v5 = vpop.eup %3589 }
0x1738   :  { %v1837_v8 = vmul.f32 %v3590_v5, %v1835_v4  ;;  %vm1842_vm5 = vweird.f32 %v3590_v5 }
0x1739   :  { %vm1843_vm7 = vmor %vm1841_vm6, %vm1842_vm5 }
0x173a   :  { %v1838_v11 = vsub.f32 1.0, %v1837_v8 }
0x173c   :  { %v1839_v36 = vmul.f32 %v3590_v5, %v1838_v11 }
0x173e   :  { %v1840_v20 = vadd.f32 %v3590_v5, %v1839_v36 }
0x1740   :  { %v1844_v49 = vsel %vm1843_vm7, %v3590_v5, %v1840_v20 }
0x1741   :  { %v1849_v53 = vsel %vm1846_vm8, %v1848_v6, %v1844_v49 }
0x17a0   :  { %v1870_v52 = vpop.permute.xlu0 %1869 }
0x17a1   :  { %v4401_v7 = vmul.f32 %v1870_v52, %v1849_v53  ;;  %v2053_v52 = vrot.slane %v4396_v29, 7 }
0x17a3   :  { %1888 = vrot.lane.b32.xlu1 %v4401_v7, %s3843_s1 }
0x1815   :  { %v1889_v54 = vpop.permute.xlu1 %1888 }
0x1816   :  { %3381 = vmatmul.msk.f32.vlgmr.msrb.gmra.mxu2 %vm143_vm2, %v1889_v54  ;;  %3383 = vmatmul.msk.f32.vlgmr.msrb.gmra.mxu3 %vm143_vm2, %v1889_v54 }
0x1817   :  { %3385 = vmatmul.msk.f32.vlgmr.msra.gmra.mxu0 %vm143_vm2, %v1889_v54  ;;  %3386 = vmatmul.msk.f32.vlgmr.msra.gmra.mxu1 %vm143_vm2, %v1889_v54 }
0x1818   :  { %2382 = vmatpush.msra.mxu0 %v4280_v44  ;;  %2294 = vmatpush.msrb.mxu2 %v4332_v51 }
0x1819   :  { %2337 = vmatpush.msrb.mxu3 %v4285_v45  ;;  %2409 = vmatpush.msra.mxu1 %v4356_v31 }
0x181a   :  { %2383 = vmatpush.msra.mxu0 %v4282_v23  ;;  %2295 = vmatpush.msrb.mxu2 %v4334_v43 }
0x181b   :  { %2338 = vmatpush.msrb.mxu3 %v4290_v10  ;;  %2410 = vmatpush.msra.mxu1 %v4358_v32 }
0x181c   :  { %2384 = vmatpush.msra.mxu0 %v4287_v46  ;;  %2296 = vmatpush.msrb.mxu2 %v4337_v62 }
0x181d   :  { %2339 = vmatpush.msrb.mxu3 %v4293_v47  ;;  %2411 = vmatpush.msra.mxu1 %v4361_v59 }
0x181e   :  { %2385 = vmatpush.msra.mxu0 %v4295_v48  ;;  %2297 = vmatpush.msrb.mxu2 %v4340_v25 }
0x181f   :  { %2340 = vmatpush.msrb.mxu3 %v4304_v50  ;;  %2412 = vmatpush.msra.mxu1 %v4364_v34 }
0x1894   :  { %v1997_v21 = vpop.f32.mrf.mxu0  ;;  %v2024_v41 = vpop.f32.mrf.mxu1 }
0x1895   :  { %v2001_v55 = vrot.slane %v1997_v21, 7  ;;  %v2028_v22 = vrot.slane %v2024_v41, 7 }
0x1897   :  { %2002 = vrot.lane.b32.xlu2 %v2001_v55, %s3842_s0 }
0x1899   :  { %v1952_v35 = vpop.f32.mrf.mxu3  ;;  %v1909_v19 = vpop.f32.mrf.mxu2 }
0x189a   :  { %v1956_v33 = vrot.slane %v1952_v35, 7  ;;  %v1913_v57 = vrot.slane %v1909_v19, 7 }
0x189c   :  { %1957 = vrot.lane.b32.xlu1 %v1956_v33, %s3843_s1  ;;  %v1915_v42 = vadd.f32 %v1913_v57, %v4388_v9 }
0x189e   :  { %v3382_v60 = vmul.f32 -1.442695, %v1915_v42 }
0x18f1   :  { %v2003_v37 = vpop.permute.xlu2 %2002 }
0x18f2   :  { %v2005_v39 = vadd.f32 %v2003_v37, %v4388_v9 }
0x18f4   :  { %3591 = vtanh.f32 %v2005_v39 }
0x18f5   :  { %3593 = vpow2.f32 %v3382_v60 }
0x18fa   :  { %v3592_v40 = vpop.eup %3591 }
0x18fb   :  { %2057 = vrot.lane.b32.xlu0 %v3592_v40, %s3842_s0  ;;  %v3594_v61 = vpop.eup %3593 }
0x18fc   :  { %v1919_v56 = vadd.f32 1.0, %v3594_v61 }
0x18fe   :  { %3595 = vrcp.f32 %v1919_v56  ;;  %v1931_v38 = vand.u32 2147483648, %v1919_v56  ;;  %vm1925_vm10 = vweird.f32 %v1919_v56  ;;  %v1929_v17 = vand.u32 2147483647, %v1919_v56 }
0x1900   :  { %v1932_v24 = vor.u32 1.1754944e-38, %v1931_v38  ;;  %vm1930_vm12 = vcmp.eq.f32.partialorder %v1929_v17, 8.507059e+37 }
0x1903   :  { %2029 = vrot.lane.b32.xlu0 %v2028_v22, %s3844_s3 }
0x1904   :  { %v3596_v63 = vpop.eup %3595 }
0x1905   :  { %v1921_v0 = vmul.f32 %v3596_v63, %v1919_v56  ;;  %vm1926_vm9 = vweird.f32 %v3596_v63 }
0x1906   :  { %vm1927_vm11 = vmor %vm1925_vm10, %vm1926_vm9 }
0x1907   :  { %v1922_v12 = vsub.f32 1.0, %v1921_v0 }
0x1909   :  { %v1923_v13 = vmul.f32 %v3596_v63, %v1922_v12 }
0x190b   :  { %v1924_v16 = vadd.f32 %v3596_v63, %v1923_v13 }
0x190d   :  { %v1928_v18 = vsel %vm1927_vm11, %v3596_v63, %v1924_v16 }
0x190e   :  { %v1933_v27 = vsel %vm1930_vm12, %v1932_v24, %v1928_v18  ;;  %v1958_v30 = vpop.permute.xlu1 %1957 }
0x190f   :  { %v1960_v1 = vadd.f32 %v1958_v30, %v4388_v9 }
0x1911   :  { %v3384_v58 = vmul.f32 -1.442695, %v1960_v1 }
0x1913   :  { %3597 = vpow2.f32 %v3384_v58 }
0x1919   :  { %v3598_v2 = vpop.eup %3597 }
0x191a   :  { %v1964_v3 = vadd.f32 1.0, %v3598_v2 }
0x191c   :  { %3599 = vrcp.f32 %v1964_v3  ;;  %v1976_v20 = vand.u32 2147483648, %v1964_v3  ;;  %vm1970_vm0 = vweird.f32 %v1964_v3  ;;  %v1974_v14 = vand.u32 2147483647, %v1964_v3 }
0x191e   :  { %v1977_v49 = vor.u32 1.1754944e-38, %v1976_v20  ;;  %vm1975_vm15 = vcmp.eq.f32.partialorder %v1974_v14, 8.507059e+37 }
0x1922   :  { %v3600_v4 = vpop.eup %3599 }
0x1923   :  { %v1966_v5 = vmul.f32 %v3600_v4, %v1964_v3  ;;  %vm1971_vm13 = vweird.f32 %v3600_v4 }
0x1924   :  { %vm1972_vm14 = vmor %vm1970_vm0, %vm1971_vm13 }
0x1925   :  { %v1967_v8 = vsub.f32 1.0, %v1966_v5 }
0x1927   :  { %v1968_v11 = vmul.f32 %v3600_v4, %v1967_v8 }
0x1929   :  { %v1969_v36 = vadd.f32 %v3600_v4, %v1968_v11 }
0x192b   :  { %v1973_v15 = vsel %vm1972_vm14, %v3600_v4, %v1969_v36 }
0x192c   :  { %v1978_v6 = vsel %vm1975_vm15, %v1977_v49, %v1973_v15 }
0x192d   :  { %v2055_v53 = vmul.f32 %v2053_v52, %v1978_v6 }
0x196d   :  { %v2058_v26 = vpop.permute.xlu0 %2057 }
0x196e   :  { %v2060_v28 = vmul.f32 %v2058_v26, %v1933_v27 }
0x1970   :  { %2062 = vrot.lane.b32.xlu2 %v2060_v28, %s3843_s1 }
0x1975   :  { %v2030_v35 = vpop.permute.xlu0 %2029 }
0x1976   :  { %v2032_v33 = vadd.f32 %v2030_v35, %v4388_v9 }
0x1978   :  { %v3387_v37 = vmul.f32 -1.442695, %v2032_v33 }
0x19ca   :  { %v2063_v54 = vpop.permute.xlu2 %2062 }
0x19cb   :  { %v4434_v21 = vadd.f32 %v2063_v54, %v2055_v53 }
0x19cd   :  { %3601 = vtanh.f32 %v4434_v21 }
0x19ce   :  { %3603 = vpow2.f32 %v3387_v37 }
0x19d3   :  { %v3602_v55 = vpop.eup %3601 }
0x19d4   :  { %2068 = vrot.lane.b32.xlu1 %v3602_v55, %s3842_s0  ;;  %v3604_v39 = vpop.eup %3603 }
0x19d5   :  { %v2036_v40 = vadd.f32 1.0, %v3604_v39 }
0x19d7   :  { %3605 = vrcp.f32 %v2036_v40  ;;  %v2048_v42 = vand.u32 2147483648, %v2036_v40  ;;  %vm2042_vm4 = vweird.f32 %v2036_v40  ;;  %v2046_v60 = vand.u32 2147483647, %v2036_v40 }
0x19d9   :  { %v2049_v56 = vor.u32 1.1754944e-38, %v2048_v42  ;;  %vm2047_vm6 = vcmp.eq.f32.partialorder %v2046_v60, 8.507059e+37 }
0x19dd   :  { %v3606_v41 = vpop.eup %3605 }
0x19de   :  { %v2038_v22 = vmul.f32 %v3606_v41, %v2036_v40  ;;  %vm2043_vm3 = vweird.f32 %v3606_v41 }
0x19df   :  { %vm2044_vm5 = vmor %vm2042_vm4, %vm2043_vm3 }
0x19e0   :  { %v2039_v29 = vsub.f32 1.0, %v2038_v22 }
0x19e2   :  { %v2040_v19 = vmul.f32 %v3606_v41, %v2039_v29 }
0x19e4   :  { %v2041_v57 = vadd.f32 %v3606_v41, %v2040_v19 }
0x19e6   :  { %v2045_v61 = vsel %vm2044_vm5, %v3606_v41, %v2041_v57 }
0x19e7   :  { %v2050_v63 = vsel %vm2047_vm6, %v2049_v56, %v2045_v61 }
0x1a46   :  { %v2069_v0 = vpop.permute.xlu1 %2068 }
0x1a47   :  { %v4439_v12 = vmul.f32 %v2069_v0, %v2050_v63 }
0x1a49   :  { %v2082_v13 = vrot.slane %v4439_v12, 1 }
0x1a4b   :  { %2083 = vrot.lane.b32.xlu2 %v2082_v13, %s3843_s1  ;;  %v2248_v13 = vrot.slane %v4434_v21, 7 }
0x1aa5   :  { %v2084_v16 = vpop.permute.xlu2 %2083 }
0x1aa6   :  { %3388 = vmatmul.msk.f32.vlgmr.msra.gmra.mxu2 %vm143_vm2, %v2084_v16  ;;  %3390 = vmatmul.msk.f32.vlgmr.msra.gmra.mxu3 %vm143_vm2, %v2084_v16 }
0x1aa7   :  { %3392 = vmatmul.msk.f32.vlgmr.msrb.gmra.mxu0 %vm143_vm2, %v2084_v16  ;;  %3393 = vmatmul.msk.f32.vlgmr.msrb.gmra.mxu1 %vm143_vm2, %v2084_v16 }
0x1aa8   :  { %2577 = vmatpush.msrb.mxu0 %v4280_v44  ;;  %2489 = vmatpush.msra.mxu2 %v4332_v51 }
0x1aa9   :  { %2532 = vmatpush.msra.mxu3 %v4285_v45  ;;  %2604 = vmatpush.msrb.mxu1 %v4356_v31 }
0x1aaa   :  { %2578 = vmatpush.msrb.mxu0 %v4282_v23  ;;  %2490 = vmatpush.msra.mxu2 %v4334_v43 }
0x1aab   :  { %2533 = vmatpush.msra.mxu3 %v4290_v10  ;;  %2605 = vmatpush.msrb.mxu1 %v4358_v32 }
0x1aac   :  { %2579 = vmatpush.msrb.mxu0 %v4287_v46  ;;  %2491 = vmatpush.msra.mxu2 %v4337_v62 }
0x1aad   :  { %2534 = vmatpush.msra.mxu3 %v4293_v47  ;;  %2606 = vmatpush.msrb.mxu1 %v4361_v59 }
0x1aae   :  { %2580 = vmatpush.msrb.mxu0 %v4295_v48  ;;  %2492 = vmatpush.msra.mxu2 %v4340_v25 }
0x1aaf   :  { %2535 = vmatpush.msra.mxu3 %v4304_v50  ;;  %2607 = vmatpush.msrb.mxu1 %v4364_v34 }
0x1b24   :  { %v2192_v38 = vpop.f32.mrf.mxu0  ;;  %v2219_v30 = vpop.f32.mrf.mxu1 }
0x1b25   :  { %v2196_v17 = vrot.slane %v2192_v38, 6  ;;  %v2223_v1 = vrot.slane %v2219_v30, 6 }
0x1b27   :  { %2197 = vrot.lane.b32.xlu0 %v2196_v17, %s3842_s0 }
0x1b29   :  { %v2147_v18 = vpop.f32.mrf.mxu3  ;;  %v2104_v58 = vpop.f32.mrf.mxu2 }
0x1b2a   :  { %v2151_v24 = vrot.slane %v2147_v18, 6  ;;  %v2108_v2 = vrot.slane %v2104_v58, 6 }
0x1b2c   :  { %2152 = vrot.lane.b32.xlu2 %v2151_v24, %s3843_s1  ;;  %v2110_v3 = vadd.f32 %v2108_v2, %v4388_v9 }
0x1b2e   :  { %v3389_v4 = vmul.f32 -1.442695, %v2110_v3 }
0x1b86   :  { %v2153_v33 = vpop.permute.xlu2 %2152 }
0x1b87   :  { %v2155_v37 = vadd.f32 %v2153_v33, %v4388_v9 }
0x1b89   :  { %v3391_v39 = vmul.f32 -1.442695, %v2155_v37 }
0x1b99   :  { %v2198_v26 = vpop.permute.xlu0 %2197 }
0x1b9a   :  { %v2200_v27 = vadd.f32 %v2198_v26, %v4388_v9 }
0x1b9c   :  { %3607 = vtanh.f32 %v2200_v27 }
0x1b9d   :  { %3609 = vpow2.f32 %v3389_v4 }
0x1ba2   :  { %v3608_v28 = vpop.eup %3607 }
0x1ba3   :  { %2252 = vrot.lane.b32.xlu1 %v3608_v28, %s3842_s0  ;;  %v3610_v5 = vpop.eup %3609 }
0x1ba4   :  { %v2114_v8 = vadd.f32 1.0, %v3610_v5 }
0x1ba6   :  { %3611 = vrcp.f32 %v2114_v8  ;;  %v2126_v49 = vand.u32 2147483648, %v2114_v8  ;;  %vm2120_vm8 = vweird.f32 %v2114_v8  ;;  %v2124_v6 = vand.u32 2147483647, %v2114_v8 }
0x1ba7   :  { %3613 = vpow2.f32 %v3391_v39 }
0x1ba8   :  { %v2127_v53 = vor.u32 1.1754944e-38, %v2126_v49  ;;  %vm2125_vm10 = vcmp.eq.f32.partialorder %v2124_v6, 8.507059e+37 }
0x1bab   :  { %2224 = vrot.lane.b32.xlu1 %v2223_v1, %s3844_s3 }
0x1bac   :  { %v3612_v11 = vpop.eup %3611 }
0x1bad   :  { %v2116_v36 = vmul.f32 %v3612_v11, %v2114_v8  ;;  %vm2121_vm7 = vweird.f32 %v3612_v11  ;;  %v3614_v40 = vpop.eup %3613 }
0x1bae   :  { %vm2122_vm9 = vmor %vm2120_vm8, %vm2121_vm7  ;;  %v2159_v41 = vadd.f32 1.0, %v3614_v40 }
0x1baf   :  { %v2117_v20 = vsub.f32 1.0, %v2116_v36 }
0x1bb0   :  { %3615 = vrcp.f32 %v2159_v41  ;;  %v2171_v60 = vand.u32 2147483648, %v2159_v41  ;;  %vm2165_vm12 = vweird.f32 %v2159_v41  ;;  %v2169_v61 = vand.u32 2147483647, %v2159_v41 }
0x1bb1   :  { %v2118_v14 = vmul.f32 %v3612_v11, %v2117_v20 }
0x1bb2   :  { %v2172_v63 = vor.u32 1.1754944e-38, %v2171_v60  ;;  %vm2170_vm0 = vcmp.eq.f32.partialorder %v2169_v61, 8.507059e+37 }
0x1bb3   :  { %v2119_v15 = vadd.f32 %v3612_v11, %v2118_v14 }
0x1bb5   :  { %v2123_v52 = vsel %vm2122_vm9, %v3612_v11, %v2119_v15 }
0x1bb6   :  { %v2128_v55 = vsel %vm2125_vm10, %v2127_v53, %v2123_v52  ;;  %v3616_v22 = vpop.eup %3615 }
0x1bb7   :  { %v2161_v29 = vmul.f32 %v3616_v22, %v2159_v41  ;;  %vm2166_vm11 = vweird.f32 %v3616_v22 }
0x1bb8   :  { %vm2167_vm13 = vmor %vm2165_vm12, %vm2166_vm11 }
0x1bb9   :  { %v2162_v19 = vsub.f32 1.0, %v2161_v29 }
0x1bbb   :  { %v2163_v57 = vmul.f32 %v3616_v22, %v2162_v19 }
0x1bbd   :  { %v2164_v42 = vadd.f32 %v3616_v22, %v2163_v57 }
0x1bbf   :  { %v2168_v56 = vsel %vm2167_vm13, %v3616_v22, %v2164_v42 }
0x1bc0   :  { %v2173_v0 = vsel %vm2170_vm0, %v2172_v63, %v2168_v56 }
0x1bc1   :  { %v2250_v16 = vmul.f32 %v2248_v13, %v2173_v0 }
0x1c15   :  { %v2253_v54 = vpop.permute.xlu1 %2252 }
0x1c16   :  { %v2255_v35 = vmul.f32 %v2253_v54, %v2128_v55 }
0x1c18   :  { %2257 = vrot.lane.b32.xlu0 %v2255_v35, %s3843_s1 }
0x1c1d   :  { %v2225_v24 = vpop.permute.xlu1 %2224 }
0x1c1e   :  { %v2227_v26 = vadd.f32 %v2225_v24, %v4388_v9 }
0x1c20   :  { %v3394_v27 = vmul.f32 -1.442695, %v2227_v26 }
0x1c8a   :  { %v2258_v38 = vpop.permute.xlu0 %2257 }
0x1c8b   :  { %v4472_v17 = vadd.f32 %v2258_v38, %v2250_v16 }
0x1c8d   :  { %3617 = vtanh.f32 %v4472_v17 }
0x1c8e   :  { %3619 = vpow2.f32 %v3394_v27 }
0x1c93   :  { %v3618_v18 = vpop.eup %3617 }
0x1c94   :  { %2263 = vrot.lane.b32.xlu2 %v3618_v18, %s3842_s0  ;;  %v3620_v28 = vpop.eup %3619 }
0x1c95   :  { %v2231_v30 = vadd.f32 1.0, %v3620_v28 }
0x1c97   :  { %3621 = vrcp.f32 %v2231_v30  ;;  %v2243_v4 = vand.u32 2147483648, %v2231_v30  ;;  %vm2237_vm15 = vweird.f32 %v2231_v30  ;;  %v2241_v5 = vand.u32 2147483647, %v2231_v30 }
0x1c99   :  { %v2244_v11 = vor.u32 1.1754944e-38, %v2243_v4  ;;  %vm2242_vm4 = vcmp.eq.f32.partialorder %v2241_v5, 8.507059e+37 }
0x1c9d   :  { %v3622_v1 = vpop.eup %3621 }
0x1c9e   :  { %v2233_v58 = vmul.f32 %v3622_v1, %v2231_v30  ;;  %vm2238_vm14 = vweird.f32 %v3622_v1 }
0x1c9f   :  { %vm2239_vm3 = vmor %vm2237_vm15, %vm2238_vm14 }
0x1ca0   :  { %v2234_v21 = vsub.f32 1.0, %v2233_v58 }
0x1ca2   :  { %v2235_v2 = vmul.f32 %v3622_v1, %v2234_v21 }
0x1ca4   :  { %v2236_v3 = vadd.f32 %v3622_v1, %v2235_v2 }
0x1ca6   :  { %v2240_v8 = vsel %vm2239_vm3, %v3622_v1, %v2236_v3  ;;  %v2443_v3 = vrot.slane %v4472_v17, 7 }
0x1ca7   :  { %v2245_v36 = vsel %vm2242_vm4, %v2244_v11, %v2240_v8 }
0x1cee   :  { %v2264_v20 = vpop.permute.xlu2 %2263 }
0x1cef   :  { %v4477_v14 = vmul.f32 %v2264_v20, %v2245_v36 }
0x1cf1   :  { %v2277_v15 = vrot.slane %v4477_v14, 2 }
0x1cf3   :  { %2278 = vrot.lane.b32.xlu0 %v2277_v15, %s3843_s1 }
0x1d65   :  { %v2279_v49 = vpop.permute.xlu0 %2278 }
0x1d66   :  { %3395 = vmatmul.msk.f32.vlgmr.msrb.gmra.mxu2 %vm143_vm2, %v2279_v49  ;;  %3397 = vmatmul.msk.f32.vlgmr.msrb.gmra.mxu3 %vm143_vm2, %v2279_v49 }
0x1d67   :  { %3399 = vmatmul.msk.f32.vlgmr.msra.gmra.mxu0 %vm143_vm2, %v2279_v49  ;;  %3400 = vmatmul.msk.f32.vlgmr.msra.gmra.mxu1 %vm143_vm2, %v2279_v49 }
0x1d68   :  { %2772 = vmatpush.msra.mxu0 %v4280_v44  ;;  %2684 = vmatpush.msrb.mxu2 %v4332_v51 }
0x1d69   :  { %2727 = vmatpush.msrb.mxu3 %v4285_v45  ;;  %2799 = vmatpush.msra.mxu1 %v4356_v31 }
0x1d6a   :  { %2773 = vmatpush.msra.mxu0 %v4282_v23  ;;  %2685 = vmatpush.msrb.mxu2 %v4334_v43 }
0x1d6b   :  { %2728 = vmatpush.msrb.mxu3 %v4290_v10  ;;  %2800 = vmatpush.msra.mxu1 %v4358_v32 }
0x1d6c   :  { %2774 = vmatpush.msra.mxu0 %v4287_v46  ;;  %2686 = vmatpush.msrb.mxu2 %v4337_v62 }
0x1d6d   :  { %2729 = vmatpush.msrb.mxu3 %v4293_v47  ;;  %2801 = vmatpush.msra.mxu1 %v4361_v59 }
0x1d6e   :  { %2775 = vmatpush.msra.mxu0 %v4295_v48  ;;  %2687 = vmatpush.msrb.mxu2 %v4340_v25 }
0x1d6f   :  { %2730 = vmatpush.msrb.mxu3 %v4304_v50  ;;  %2802 = vmatpush.msra.mxu1 %v4364_v34 }
0x1de4   :  { %v2387_v44 = vpop.f32.mrf.mxu0  ;;  %v2414_v48 = vpop.f32.mrf.mxu1 }
0x1de5   :  { %v2391_v23 = vrot.slane %v2387_v44, 5  ;;  %v2418_v52 = vrot.slane %v2414_v48, 5 }
0x1de7   :  { %2392 = vrot.lane.b32.xlu1 %v2391_v23, %s3842_s0 }
0x1de9   :  { %v2342_v45 = vpop.f32.mrf.mxu3  ;;  %v2299_v50 = vpop.f32.mrf.mxu2 }
0x1dea   :  { %v2346_v46 = vrot.slane %v2342_v45, 5  ;;  %v2303_v53 = vrot.slane %v2299_v50, 5 }
0x1dec   :  { %2347 = vrot.lane.b32.xlu0 %v2346_v46, %s3843_s1  ;;  %v2305_v54 = vadd.f32 %v2303_v53, %v4388_v9 }
0x1dee   :  { %v3396_v55 = vmul.f32 -1.442695, %v2305_v54 }
0x1e59   :  { %v2393_v10 = vpop.permute.xlu1 %2392 }
0x1e5a   :  { %v2395_v47 = vadd.f32 %v2393_v10, %v4388_v9 }
0x1e5c   :  { %3623 = vtanh.f32 %v2395_v47 }
0x1e5d   :  { %3625 = vpow2.f32 %v3396_v55 }
0x1e5e   :  { %v2348_v63 = vpop.permute.xlu0 %2347 }
0x1e5f   :  { %v2350_v0 = vadd.f32 %v2348_v63, %v4388_v9 }
0x1e61   :  { %v3398_v13 = vmul.f32 -1.442695, %v2350_v0 }
0x1e62   :  { %v3624_v6 = vpop.eup %3623 }
0x1e63   :  { %2447 = vrot.lane.b32.xlu2 %v3624_v6, %s3842_s0  ;;  %v3626_v35 = vpop.eup %3625 }
0x1e64   :  { %v2309_v33 = vadd.f32 1.0, %v3626_v35 }
0x1e66   :  { %3627 = vrcp.f32 %v2309_v33  ;;  %v2321_v29 = vand.u32 2147483648, %v2309_v33  ;;  %vm2315_vm6 = vweird.f32 %v2309_v33  ;;  %v2319_v19 = vand.u32 2147483647, %v2309_v33 }
0x1e67   :  { %3629 = vpow2.f32 %v3398_v13 }
0x1e68   :  { %v2322_v42 = vor.u32 1.1754944e-38, %v2321_v29  ;;  %vm2320_vm8 = vcmp.eq.f32.partialorder %v2319_v19, 8.507059e+37 }
0x1e6b   :  { %2419 = vrot.lane.b32.xlu2 %v2418_v52, %s3844_s3 }
0x1e6c   :  { %v3628_v37 = vpop.eup %3627 }
0x1e6d   :  { %v2311_v39 = vmul.f32 %v3628_v37, %v2309_v33  ;;  %vm2316_vm5 = vweird.f32 %v3628_v37  ;;  %v3630_v16 = vpop.eup %3629  ;;  %v4523_v33 = vld [vmem:[#allocation8 + $0x58] sm:$0xff] }
0x1e6e   :  { %vm2317_vm7 = vmor %vm2315_vm6, %vm2316_vm5  ;;  %v2354_v38 = vadd.f32 1.0, %v3630_v16 }
0x1e6f   :  { %v2312_v40 = vsub.f32 1.0, %v2311_v39  ;;  %v4531_v39 = vld [vmem:[#allocation8 + $0x50] sm:$0xff] }
0x1e70   :  { %3631 = vrcp.f32 %v2354_v38  ;;  %v2366_v30 = vand.u32 2147483648, %v2354_v38  ;;  %vm2360_vm10 = vweird.f32 %v2354_v38  ;;  %v2364_v1 = vand.u32 2147483647, %v2354_v38 }
0x1e71   :  { %v2313_v41 = vmul.f32 %v3628_v37, %v2312_v40  ;;  %v4535_v40 = vld [vmem:[#allocation8 + $0x30] sm:$0xff] }
0x1e72   :  { %v2367_v21 = vor.u32 1.1754944e-38, %v2366_v30  ;;  %vm2365_vm12 = vcmp.eq.f32.partialorder %v2364_v1, 8.507059e+37 }
0x1e73   :  { %v2314_v22 = vadd.f32 %v3628_v37, %v2313_v41  ;;  %v4539_v41 = vld [vmem:[#allocation8 + $0x48] sm:$0xff] }
0x1e75   :  { %v2318_v57 = vsel %vm2317_vm7, %v3628_v37, %v2314_v22  ;;  %v4527_v37 = vld [vmem:[#allocation8 + $0x38] sm:$0xff] }
0x1e76   :  { %v2323_v61 = vsel %vm2320_vm8, %v2322_v42, %v2318_v57  ;;  %v3632_v18 = vpop.eup %3631 }
0x1e77   :  { %v2356_v24 = vmul.f32 %v3632_v18, %v2354_v38  ;;  %vm2361_vm9 = vweird.f32 %v3632_v18 }
0x1e78   :  { %vm2362_vm11 = vmor %vm2360_vm10, %vm2361_vm9 }
0x1e79   :  { %v2357_v26 = vsub.f32 1.0, %v2356_v24 }
0x1e7b   :  { %v2358_v27 = vmul.f32 %v3632_v18, %v2357_v26 }
0x1e7d   :  { %v2359_v28 = vadd.f32 %v3632_v18, %v2358_v27 }
0x1e7f   :  { %v2363_v58 = vsel %vm2362_vm11, %v3632_v18, %v2359_v28 }
0x1e80   :  { %v2368_v2 = vsel %vm2365_vm12, %v2367_v21, %v2363_v58 }
0x1e81   :  { %v2445_v4 = vmul.f32 %v2443_v3, %v2368_v2 }
0x1ebd   :  { %v2448_v60 = vpop.permute.xlu2 %2447 }
0x1ebe   :  { %v2450_v56 = vmul.f32 %v2448_v60, %v2323_v61 }
0x1ec0   :  { %2452 = vrot.lane.b32.xlu1 %v2450_v56, %s3843_s1 }
0x1ec5   :  { %v2420_v36 = vpop.permute.xlu2 %2419 }
0x1ec6   :  { %v2422_v20 = vadd.f32 %v2420_v36, %v4388_v9 }
0x1ec8   :  { %v3401_v15 = vmul.f32 -1.442695, %v2422_v20 }
0x1f32   :  { %v2453_v5 = vpop.permute.xlu1 %2452 }
0x1f33   :  { %v4510_v8 = vadd.f32 %v2453_v5, %v2445_v4 }
0x1f35   :  { %3633 = vtanh.f32 %v4510_v8 }
0x1f36   :  { %3635 = vpow2.f32 %v3401_v15 }
0x1f3b   :  { %v3634_v11 = vpop.eup %3633 }
0x1f3c   :  { %2458 = vrot.lane.b32.xlu0 %v3634_v11, %s3842_s0  ;;  %v3636_v49 = vpop.eup %3635 }
0x1f3d   :  { %v2426_v44 = vadd.f32 1.0, %v3636_v49 }
0x1f3f   :  { %3637 = vrcp.f32 %v2426_v44  ;;  %v2438_v47 = vand.u32 2147483648, %v2426_v44  ;;  %vm2432_vm0 = vweird.f32 %v2426_v44  ;;  %v2436_v6 = vand.u32 2147483647, %v2426_v44 }
0x1f41   :  { %v2439_v52 = vor.u32 1.1754944e-38, %v2438_v47  ;;  %vm2437_vm15 = vcmp.eq.f32.partialorder %v2436_v6, 8.507059e+37  ;;  %v2638_v47 = vrot.slane %v4510_v8, 7 }
0x1f45   :  { %v3638_v23 = vpop.eup %3637 }
0x1f46   :  { %v2428_v45 = vmul.f32 %v3638_v23, %v2426_v44  ;;  %vm2433_vm13 = vweird.f32 %v3638_v23 }
0x1f47   :  { %vm2434_vm14 = vmor %vm2432_vm0, %vm2433_vm13 }
0x1f48   :  { %v2429_v17 = vsub.f32 1.0, %v2428_v45 }
0x1f4a   :  { %v2430_v46 = vmul.f32 %v3638_v23, %v2429_v17 }
0x1f4c   :  { %v2431_v10 = vadd.f32 %v3638_v23, %v2430_v46 }
0x1f4e   :  { %v2435_v48 = vsel %vm2434_vm14, %v3638_v23, %v2431_v10 }
0x1f4f   :  { %v2440_v50 = vsel %vm2437_vm15, %v2439_v52, %v2435_v48 }
0x1fae   :  { %v2459_v53 = vpop.permute.xlu0 %2458 }
0x1faf   :  { %v4515_v54 = vmul.f32 %v2459_v53, %v2440_v50 }
0x1fb1   :  { %v2472_v55 = vrot.slane %v4515_v54, 3 }
0x1fb3   :  { %2473 = vrot.lane.b32.xlu1 %v2472_v55, %s3843_s1 }
0x2025   :  { %v2474_v35 = vpop.permute.xlu1 %2473 }
0x2026   :  { %3402 = vmatmul.msk.f32.vlgmr.msra.gmra.mxu2 %vm143_vm2, %v2474_v35  ;;  %3404 = vmatmul.msk.f32.vlgmr.msra.gmra.mxu3 %vm143_vm2, %v2474_v35 }
0x2027   :  { %3406 = vmatmul.msk.f32.vlgmr.msrb.gmra.mxu0 %vm143_vm2, %v2474_v35  ;;  %3407 = vmatmul.msk.f32.vlgmr.msrb.gmra.mxu1 %vm143_vm2, %v2474_v35 }
0x2028   :  { %2967 = vmatpush.msrb.mxu0 %v4523_v33  ;;  %2879 = vmatpush.msra.mxu2 %v4332_v51  ;;  %v4543_v51 = vld [vmem:[#allocation8 + $0x28] sm:$0xff] }
0x2029   :  { %2922 = vmatpush.msra.mxu3 %v4527_v37  ;;  %2994 = vmatpush.msrb.mxu1 %v4356_v31  ;;  %v4547_v31 = vld [vmem:[#allocation8 + $0x40] sm:$0xff] }
0x202a   :  { %2968 = vmatpush.msrb.mxu0 %v4531_v39  ;;  %2880 = vmatpush.msra.mxu2 %v4334_v43  ;;  %v4551_v43 = vld [vmem:[#allocation8 + $0x20] sm:$0xff] }
0x202b   :  { %2923 = vmatpush.msra.mxu3 %v4535_v40  ;;  %2995 = vmatpush.msrb.mxu1 %v4358_v32 }
0x202c   :  { %2969 = vmatpush.msrb.mxu0 %v4539_v41  ;;  %2881 = vmatpush.msra.mxu2 %v4337_v62 }
0x202d   :  { %2924 = vmatpush.msra.mxu3 %v4543_v51  ;;  %2996 = vmatpush.msrb.mxu1 %v4361_v59 }
0x202e   :  { %2970 = vmatpush.msrb.mxu0 %v4547_v31  ;;  %2882 = vmatpush.msra.mxu2 %v4340_v25 }
0x202f   :  { %2925 = vmatpush.msra.mxu3 %v4551_v43  ;;  %2997 = vmatpush.msrb.mxu1 %v4364_v34 }
0x20a4   :  { %v2582_v32 = vpop.f32.mrf.mxu0  ;;  %v2609_v25 = vpop.f32.mrf.mxu1 }
0x20a5   :  { %v2586_v62 = vrot.slane %v2582_v32, 4  ;;  %v2613_v42 = vrot.slane %v2609_v25, 4 }
0x20a7   :  { %2587 = vrot.lane.b32.xlu2 %v2586_v62, %s3842_s0 }
0x20a9   :  { %v2537_v22 = vpop.f32.mrf.mxu3  ;;  %v2494_v34 = vpop.f32.mrf.mxu2 }
0x20aa   :  { %v2541_v29 = vrot.slane %v2537_v22, 4  ;;  %v2498_v60 = vrot.slane %v2494_v34, 4 }
0x20ac   :  { %2542 = vrot.lane.b32.xlu1 %v2541_v29, %s3843_s1  ;;  %v2500_v61 = vadd.f32 %v2498_v60, %v4388_v9 }
0x20ae   :  { %v3403_v56 = vmul.f32 -1.442695, %v2500_v61 }
0x2101   :  { %v2588_v59 = vpop.permute.xlu2 %2587 }
0x2102   :  { %v2590_v19 = vadd.f32 %v2588_v59, %v4388_v9 }
0x2104   :  { %3639 = vtanh.f32 %v2590_v19 }
0x2105   :  { %3641 = vpow2.f32 %v3403_v56 }
0x210a   :  { %v3640_v57 = vpop.eup %3639 }
0x210b   :  { %2642 = vrot.lane.b32.xlu0 %v3640_v57, %s3842_s0  ;;  %v3642_v63 = vpop.eup %3641 }
0x210c   :  { %v2504_v0 = vadd.f32 1.0, %v3642_v63 }
0x210e   :  { %3643 = vrcp.f32 %v2504_v0  ;;  %v2516_v26 = vand.u32 2147483648, %v2504_v0  ;;  %vm2510_vm4 = vweird.f32 %v2504_v0  ;;  %v2514_v27 = vand.u32 2147483647, %v2504_v0 }
0x2110   :  { %v2517_v30 = vor.u32 1.1754944e-38, %v2516_v26  ;;  %vm2515_vm6 = vcmp.eq.f32.partialorder %v2514_v27, 8.507059e+37 }
0x2113   :  { %2614 = vrot.lane.b32.xlu0 %v2613_v42, %s3844_s3 }
0x2114   :  { %v3644_v13 = vpop.eup %3643 }
0x2115   :  { %v2506_v16 = vmul.f32 %v3644_v13, %v2504_v0  ;;  %vm2511_vm3 = vweird.f32 %v3644_v13 }
0x2116   :  { %vm2512_vm5 = vmor %vm2510_vm4, %vm2511_vm3 }
0x2117   :  { %v2507_v38 = vsub.f32 1.0, %v2506_v16  ;;  %v3728_v16 = vld [vmem:[#allocation8 + $0x78] sm:$0xff] }
0x2119   :  { %v2508_v18 = vmul.f32 %v3644_v13, %v2507_v38  ;;  %v3729_v38 = vld [vmem:[#allocation8 + $0x10] sm:$0xff] }
0x211b   :  { %v2509_v24 = vadd.f32 %v3644_v13, %v2508_v18  ;;  %v3730_v18 = vld [vmem:[#allocation8 + $0x70] sm:$0xff] }
0x211d   :  { %v2513_v28 = vsel %vm2512_vm5, %v3644_v13, %v2509_v24  ;;  %v3727_v13 = vld [vmem:[#allocation8 + $0x18] sm:$0xff]  ;;  %v3731_v24 = vld [vmem:[#allocation8 + $0x8] sm:$0xff] }
0x211e   :  { %v2518_v58 = vsel %vm2515_vm6, %v2517_v30, %v2513_v28  ;;  %v2543_v2 = vpop.permute.xlu1 %2542 }
0x211f   :  { %v2545_v3 = vadd.f32 %v2543_v2, %v4388_v9 }
0x2121   :  { %v3405_v4 = vmul.f32 -1.442695, %v2545_v3 }
0x2123   :  { %3645 = vpow2.f32 %v3405_v4 }
0x2129   :  { %v3646_v5 = vpop.eup %3645 }
0x212a   :  { %v2549_v11 = vadd.f32 1.0, %v3646_v5 }
0x212c   :  { %3647 = vrcp.f32 %v2549_v11  ;;  %v2561_v23 = vand.u32 2147483648, %v2549_v11  ;;  %vm2555_vm8 = vweird.f32 %v2549_v11  ;;  %v2559_v45 = vand.u32 2147483647, %v2549_v11 }
0x212e   :  { %v2562_v46 = vor.u32 1.1754944e-38, %v2561_v23  ;;  %vm2560_vm10 = vcmp.eq.f32.partialorder %v2559_v45, 8.507059e+37 }
0x2132   :  { %v3648_v36 = vpop.eup %3647 }
0x2133   :  { %v2551_v20 = vmul.f32 %v3648_v36, %v2549_v11  ;;  %vm2556_vm7 = vweird.f32 %v3648_v36 }
0x2134   :  { %vm2557_vm9 = vmor %vm2555_vm8, %vm2556_vm7 }
0x2135   :  { %v2552_v15 = vsub.f32 1.0, %v2551_v20 }
0x2137   :  { %v2553_v49 = vmul.f32 %v3648_v36, %v2552_v15 }
0x2139   :  { %v2554_v44 = vadd.f32 %v3648_v36, %v2553_v49 }
0x213b   :  { %v2558_v17 = vsel %vm2557_vm9, %v3648_v36, %v2554_v44 }
0x213c   :  { %v2563_v10 = vsel %vm2560_vm10, %v2562_v46, %v2558_v17 }
0x213d   :  { %v2640_v6 = vmul.f32 %v2638_v47, %v2563_v10 }
0x217d   :  { %v2643_v1 = vpop.permute.xlu0 %2642 }
0x217e   :  { %v2645_v21 = vmul.f32 %v2643_v1, %v2518_v58 }
0x2180   :  { %2647 = vrot.lane.b32.xlu2 %v2645_v21, %s3843_s1 }
0x2185   :  { %v2615_v53 = vpop.permute.xlu0 %2614 }
0x2186   :  { %v2617_v55 = vadd.f32 %v2615_v53, %v4388_v9 }
0x2188   :  { %v3408_v35 = vmul.f32 -1.442695, %v2617_v55 }
0x21da   :  { %v2648_v48 = vpop.permute.xlu2 %2647 }
0x21db   :  { %v4564_v52 = vadd.f32 %v2648_v48, %v2640_v6 }
0x21dd   :  { %3649 = vtanh.f32 %v4564_v52 }
0x21de   :  { %3651 = vpow2.f32 %v3408_v35 }
0x21e3   :  { %v3650_v50 = vpop.eup %3649 }
0x21e4   :  { %2653 = vrot.lane.b32.xlu1 %v3650_v50, %s3842_s0  ;;  %v3652_v32 = vpop.eup %3651 }
0x21e5   :  { %v2621_v62 = vadd.f32 1.0, %v3652_v32 }
0x21e7   :  { %3653 = vrcp.f32 %v2621_v62  ;;  %v2633_v57 = vand.u32 2147483648, %v2621_v62  ;;  %vm2627_vm12 = vweird.f32 %v2621_v62  ;;  %v2631_v25 = vand.u32 2147483647, %v2621_v62 }
0x21e9   :  { %v2634_v34 = vor.u32 1.1754944e-38, %v2633_v57  ;;  %vm2632_vm0 = vcmp.eq.f32.partialorder %v2631_v25, 8.507059e+37  ;;  %v2833_v25 = vrot.slane %v4564_v52, 7 }
0x21ed   :  { %v3654_v22 = vpop.eup %3653 }
0x21ee   :  { %v2623_v29 = vmul.f32 %v3654_v22, %v2621_v62  ;;  %vm2628_vm11 = vweird.f32 %v3654_v22 }
0x21ef   :  { %vm2629_vm13 = vmor %vm2627_vm12, %vm2628_vm11 }
0x21f0   :  { %v2624_v8 = vsub.f32 1.0, %v2623_v29 }
0x21f2   :  { %v2625_v59 = vmul.f32 %v3654_v22, %v2624_v8 }
0x21f4   :  { %v2626_v19 = vadd.f32 %v3654_v22, %v2625_v59 }
0x21f6   :  { %v2630_v42 = vsel %vm2629_vm13, %v3654_v22, %v2626_v19 }
0x21f7   :  { %v2635_v60 = vsel %vm2632_vm0, %v2634_v34, %v2630_v42 }
0x2256   :  { %v2654_v61 = vpop.permute.xlu1 %2653 }
0x2257   :  { %v4569_v56 = vmul.f32 %v2654_v61, %v2635_v60 }
0x2259   :  { %v2667_v63 = vrot.slane %v4569_v56, 4 }
0x225b   :  { %2668 = vrot.lane.b32.xlu2 %v2667_v63, %s3843_s1 }
0x22b5   :  { %v2669_v0 = vpop.permute.xlu2 %2668 }
0x22b6   :  { %3409 = vmatmul.msk.f32.vlgmr.msrb.gmra.mxu2 %vm143_vm2, %v2669_v0  ;;  %3411 = vmatmul.msk.f32.vlgmr.msrb.gmra.mxu3 %vm143_vm2, %v2669_v0 }
0x22b7   :  { %3413 = vmatmul.msk.f32.vlgmr.msra.gmra.mxu0 %vm143_vm2, %v2669_v0  ;;  %3414 = vmatmul.msk.f32.vlgmr.msra.gmra.mxu1 %vm143_vm2, %v2669_v0 }
0x22b8   :  { %3162 = vmatpush.msra.mxu0 %v4523_v33  ;;  %3074 = vmatpush.msrb.mxu2 %v3727_v13  ;;  %v3732_v33 = vld [vmem:[#allocation8 + $0x68] sm:$0xff] }
0x22b9   :  { %3117 = vmatpush.msrb.mxu3 %v4527_v37  ;;  %3189 = vmatpush.msra.mxu1 %v3728_v16  ;;  %v3733_v37 = vld [vmem:[#allocation8] sm:$0xff] }
0x22ba   :  { %3163 = vmatpush.msra.mxu0 %v4531_v39  ;;  %3075 = vmatpush.msrb.mxu2 %v3729_v38  ;;  %v3734_v39 = vld [vmem:[#allocation8 + $0x60] sm:$0xff] }
0x22bb   :  { %3118 = vmatpush.msrb.mxu3 %v4535_v40  ;;  %3190 = vmatpush.msra.mxu1 %v3730_v18 }
0x22bc   :  { %3164 = vmatpush.msra.mxu0 %v4539_v41  ;;  %3076 = vmatpush.msrb.mxu2 %v3731_v24 }
0x22bd   :  { %3119 = vmatpush.msrb.mxu3 %v4543_v51  ;;  %3191 = vmatpush.msra.mxu1 %v3732_v33 }
0x22be   :  { %3165 = vmatpush.msra.mxu0 %v4547_v31  ;;  %3077 = vmatpush.msrb.mxu2 %v3733_v37 }
0x22bf   :  { %3120 = vmatpush.msrb.mxu3 %v4551_v43  ;;  %3192 = vmatpush.msra.mxu1 %v3734_v39 }
0x2334   :  { %v2777_v26 = vpop.f32.mrf.mxu0  ;;  %v2804_v31 = vpop.f32.mrf.mxu1 }
0x2335   :  { %v2781_v40 = vrot.slane %v2777_v26, 3  ;;  %v2808_v1 = vrot.slane %v2804_v31, 3 }
0x2337   :  { %2782 = vrot.lane.b32.xlu0 %v2781_v40, %s3842_s0 }
0x2339   :  { %v2732_v27 = vpop.f32.mrf.mxu3  ;;  %v2689_v43 = vpop.f32.mrf.mxu2 }
0x233a   :  { %v2736_v41 = vrot.slane %v2732_v27, 3  ;;  %v2693_v58 = vrot.slane %v2689_v43, 3 }
0x233c   :  { %2737 = vrot.lane.b32.xlu2 %v2736_v41, %s3843_s1  ;;  %v2695_v21 = vadd.f32 %v2693_v58, %v4388_v9 }
0x233e   :  { %v3410_v2 = vmul.f32 -1.442695, %v2695_v21 }
0x2396   :  { %v2738_v47 = vpop.permute.xlu2 %2737 }
0x2397   :  { %v2740_v6 = vadd.f32 %v2738_v47, %v4388_v9 }
0x2399   :  { %v3412_v48 = vmul.f32 -1.442695, %v2740_v6 }
0x23a9   :  { %v2783_v28 = vpop.permute.xlu0 %2782 }
0x23aa   :  { %v2785_v51 = vadd.f32 %v2783_v28, %v4388_v9 }
0x23ac   :  { %3655 = vtanh.f32 %v2785_v51 }
0x23ad   :  { %3657 = vpow2.f32 %v3410_v2 }
0x23b2   :  { %v3656_v30 = vpop.eup %3655 }
0x23b3   :  { %2837 = vrot.lane.b32.xlu1 %v3656_v30, %s3842_s0  ;;  %v3658_v3 = vpop.eup %3657 }
0x23b4   :  { %v2699_v4 = vadd.f32 1.0, %v3658_v3 }
0x23b6   :  { %3659 = vrcp.f32 %v2699_v4  ;;  %v2711_v49 = vand.u32 2147483648, %v2699_v4  ;;  %vm2705_vm15 = vweird.f32 %v2699_v4  ;;  %v2709_v44 = vand.u32 2147483647, %v2699_v4 }
0x23b7   :  { %3661 = vpow2.f32 %v3412_v48 }
0x23b8   :  { %v2712_v45 = vor.u32 1.1754944e-38, %v2711_v49  ;;  %vm2710_vm4 = vcmp.eq.f32.partialorder %v2709_v44, 8.507059e+37 }
0x23bb   :  { %2809 = vrot.lane.b32.xlu1 %v2808_v1, %s3844_s3 }
0x23bc   :  { %v3660_v5 = vpop.eup %3659 }
0x23bd   :  { %v2701_v11 = vmul.f32 %v3660_v5, %v2699_v4  ;;  %vm2706_vm14 = vweird.f32 %v3660_v5  ;;  %v3662_v50 = vpop.eup %3661 }
0x23be   :  { %vm2707_vm3 = vmor %vm2705_vm15, %vm2706_vm14  ;;  %v2744_v53 = vadd.f32 1.0, %v3662_v50 }
0x23bf   :  { %v2702_v36 = vsub.f32 1.0, %v2701_v11 }
0x23c0   :  { %3663 = vrcp.f32 %v2744_v53  ;;  %v2756_v29 = vand.u32 2147483648, %v2744_v53  ;;  %vm2750_vm6 = vweird.f32 %v2744_v53  ;;  %v2754_v8 = vand.u32 2147483647, %v2744_v53 }
0x23c1   :  { %v2703_v20 = vmul.f32 %v3660_v5, %v2702_v36 }
0x23c2   :  { %v2757_v19 = vor.u32 1.1754944e-38, %v2756_v29  ;;  %vm2755_vm8 = vcmp.eq.f32.partialorder %v2754_v8, 8.507059e+37 }
0x23c3   :  { %v2704_v15 = vadd.f32 %v3660_v5, %v2703_v20 }
0x23c5   :  { %v2708_v23 = vsel %vm2707_vm3, %v3660_v5, %v2704_v15 }
0x23c6   :  { %v2713_v46 = vsel %vm2710_vm4, %v2712_v45, %v2708_v23  ;;  %v3664_v55 = vpop.eup %3663 }
0x23c7   :  { %v2746_v35 = vmul.f32 %v3664_v55, %v2744_v53  ;;  %vm2751_vm5 = vweird.f32 %v3664_v55 }
0x23c8   :  { %vm2752_vm7 = vmor %vm2750_vm6, %vm2751_vm5 }
0x23c9   :  { %v2747_v32 = vsub.f32 1.0, %v2746_v35 }
0x23cb   :  { %v2748_v62 = vmul.f32 %v3664_v55, %v2747_v32 }
0x23cd   :  { %v2749_v22 = vadd.f32 %v3664_v55, %v2748_v62 }
0x23cf   :  { %v2753_v59 = vsel %vm2752_vm7, %v3664_v55, %v2749_v22 }
0x23d0   :  { %v2758_v57 = vsel %vm2755_vm8, %v2757_v19, %v2753_v59 }
0x23d1   :  { %v2835_v42 = vmul.f32 %v2833_v25, %v2758_v57 }
0x2425   :  { %v2838_v17 = vpop.permute.xlu1 %2837 }
0x2426   :  { %v2840_v10 = vmul.f32 %v2838_v17, %v2713_v46 }
0x2428   :  { %2842 = vrot.lane.b32.xlu0 %v2840_v10, %s3843_s1 }
0x242d   :  { %v2810_v63 = vpop.permute.xlu1 %2809 }
0x242e   :  { %v2812_v0 = vadd.f32 %v2810_v63, %v4388_v9 }
0x2430   :  { %v3415_v13 = vmul.f32 -1.442695, %v2812_v0 }
0x249a   :  { %v2843_v34 = vpop.permute.xlu0 %2842 }
0x249b   :  { %v4594_v60 = vadd.f32 %v2843_v34, %v2835_v42 }
0x249d   :  { %3665 = vtanh.f32 %v4594_v60 }
0x249e   :  { %3667 = vpow2.f32 %v3415_v13 }
0x24a3   :  { %v3666_v61 = vpop.eup %3665 }
0x24a4   :  { %2848 = vrot.lane.b32.xlu2 %v3666_v61, %s3842_s0  ;;  %v3668_v16 = vpop.eup %3667 }
0x24a5   :  { %v2816_v38 = vadd.f32 1.0, %v3668_v16 }
0x24a7   :  { %3669 = vrcp.f32 %v2816_v38  ;;  %v2828_v39 = vand.u32 2147483648, %v2816_v38  ;;  %vm2822_vm10 = vweird.f32 %v2816_v38  ;;  %v2826_v26 = vand.u32 2147483647, %v2816_v38 }
0x24a9   :  { %v2829_v27 = vor.u32 1.1754944e-38, %v2828_v39  ;;  %vm2827_vm12 = vcmp.eq.f32.partialorder %v2826_v26, 8.507059e+37 }
0x24ad   :  { %v3670_v18 = vpop.eup %3669 }
0x24ae   :  { %v2818_v24 = vmul.f32 %v3670_v18, %v2816_v38  ;;  %vm2823_vm9 = vweird.f32 %v3670_v18  ;;  %v3028_v38 = vrot.slane %v4594_v60, 7 }
0x24af   :  { %vm2824_vm11 = vmor %vm2822_vm10, %vm2823_vm9 }
0x24b0   :  { %v2819_v52 = vsub.f32 1.0, %v2818_v24 }
0x24b2   :  { %v2820_v33 = vmul.f32 %v3670_v18, %v2819_v52 }
0x24b4   :  { %v2821_v37 = vadd.f32 %v3670_v18, %v2820_v33 }
0x24b6   :  { %v2825_v40 = vsel %vm2824_vm11, %v3670_v18, %v2821_v37 }
0x24b7   :  { %v2830_v41 = vsel %vm2827_vm12, %v2829_v27, %v2825_v40 }
0x24fe   :  { %v2849_v28 = vpop.permute.xlu2 %2848 }
0x24ff   :  { %v4599_v51 = vmul.f32 %v2849_v28, %v2830_v41 }
0x2501   :  { %v2862_v30 = vrot.slane %v4599_v51, 5 }
0x2503   :  { %2863 = vrot.lane.b32.xlu0 %v2862_v30, %s3843_s1 }
0x2575   :  { %v2864_v31 = vpop.permute.xlu0 %2863 }
0x2576   :  { %3416 = vmatmul.msk.f32.vlgmr.msra.gmra.mxu2 %vm143_vm2, %v2864_v31  ;;  %3418 = vmatmul.msk.f32.vlgmr.msra.gmra.mxu3 %vm143_vm2, %v2864_v31 }
0x2577   :  { %3420 = vmatmul.msk.f32.vlgmr.msrb.gmra.mxu0 %vm143_vm2, %v2864_v31  ;;  %3421 = vmatmul.msk.f32.vlgmr.msrb.gmra.mxu1 %vm143_vm2, %v2864_v31 }
0x25f4   :  { %v2972_v1 = vpop.f32.mrf.mxu0  ;;  %v2999_v5 = vpop.f32.mrf.mxu1 }
0x25f5   :  { %v2976_v43 = vrot.slane %v2972_v1, 2  ;;  %v3003_v11 = vrot.slane %v2999_v5, 2 }
0x25f7   :  { %2977 = vrot.lane.b32.xlu1 %v2976_v43, %s3842_s0 }
0x25f9   :  { %v2927_v58 = vpop.f32.mrf.mxu3  ;;  %v2884_v36 = vpop.f32.mrf.mxu2 }
0x25fa   :  { %v2931_v21 = vrot.slane %v2927_v58, 2  ;;  %v2888_v20 = vrot.slane %v2884_v36, 2 }
0x25fc   :  { %2932 = vrot.lane.b32.xlu0 %v2931_v21, %s3843_s1  ;;  %v2890_v15 = vadd.f32 %v2888_v20, %v4388_v9 }
0x25fe   :  { %v3417_v49 = vmul.f32 -1.442695, %v2890_v15 }
0x2669   :  { %v2978_v2 = vpop.permute.xlu1 %2977 }
0x266a   :  { %v2980_v3 = vadd.f32 %v2978_v2, %v4388_v9 }
0x266c   :  { %3671 = vtanh.f32 %v2980_v3 }
0x266d   :  { %3673 = vpow2.f32 %v3417_v49 }
0x266e   :  { %v2933_v62 = vpop.permute.xlu0 %2932 }
0x266f   :  { %v2935_v22 = vadd.f32 %v2933_v62, %v4388_v9 }
0x2671   :  { %v3419_v29 = vmul.f32 -1.442695, %v2935_v22 }
0x2672   :  { %v3672_v4 = vpop.eup %3671 }
0x2673   :  { %3032 = vrot.lane.b32.xlu2 %v3672_v4, %s3842_s0  ;;  %v3674_v44 = vpop.eup %3673 }
0x2674   :  { %v2894_v23 = vadd.f32 1.0, %v3674_v44  ;;  %v3446_v44 = vld [vmem:[%s4682_s9] ss:$0 sm:$0xff]  ;;  %s3846_s9 = smov [#allocation9]  }
0x2675   :  { %s3300_s28 = sshll.u32 %s3846_s9, 4  ;;  %s3301_s28 = int_to_ptr.vmem [resolvable:$true] %s3300_s28 }
0x2676   :  { %3675 = vrcp.f32 %v2894_v23  ;;  %v2906_v6 = vand.u32 2147483648, %v2894_v23  ;;  %vm2900_vm0 = vweird.f32 %v2894_v23  ;;  %v2904_v48 = vand.u32 2147483647, %v2894_v23 }
0x2677   :  { %3677 = vpow2.f32 %v3419_v29 }
0x2678   :  { %v2907_v53 = vor.u32 1.1754944e-38, %v2906_v6  ;;  %vm2905_vm15 = vcmp.eq.f32.partialorder %v2904_v48, 8.507059e+37 }
0x267b   :  { %3004 = vrot.lane.b32.xlu2 %v3003_v11, %s3844_s3 }
0x267c   :  { %v3676_v45 = vpop.eup %3675 }
0x267d   :  { %v2896_v17 = vmul.f32 %v3676_v45, %v2894_v23  ;;  %vm2901_vm13 = vweird.f32 %v3676_v45  ;;  %v3678_v8 = vpop.eup %3677 }
0x267e   :  { %vm2902_vm14 = vmor %vm2900_vm0, %vm2901_vm13  ;;  %v2939_v59 = vadd.f32 1.0, %v3678_v8  ;;  %vm1883_vm0 = vcmask 253952  }
0x267f   :  { %v2897_v46 = vsub.f32 1.0, %v2896_v17 }
0x2680   :  { %3679 = vrcp.f32 %v2939_v59  ;;  %v2951_v61 = vand.u32 2147483648, %v2939_v59  ;;  %vm2945_vm4 = vweird.f32 %v2939_v59  ;;  %v2949_v63 = vand.u32 2147483647, %v2939_v59 }
0x2681   :  { %v2898_v10 = vmul.f32 %v3676_v45, %v2897_v46 }
0x2682   :  { %v2952_v13 = vor.u32 1.1754944e-38, %v2951_v61  ;;  %vm2950_vm6 = vcmp.eq.f32.partialorder %v2949_v63, 8.507059e+37 }
0x2683   :  { %v2899_v47 = vadd.f32 %v3676_v45, %v2898_v10 }
0x2685   :  { %v2903_v50 = vsel %vm2902_vm14, %v3676_v45, %v2899_v47  ;;  %vm2272_vm14 = vcmask 256002  }
0x2686   :  { %v2908_v35 = vsel %vm2905_vm15, %v2907_v53, %v2903_v50  ;;  %v3680_v19 = vpop.eup %3679  ;;  %vm2077_vm15 = vcmask 254977  }
0x2687   :  { %v2941_v57 = vmul.f32 %v3680_v19, %v2939_v59  ;;  %vm2946_vm3 = vweird.f32 %v3680_v19 }
0x2688   :  { %vm2947_vm5 = vmor %vm2945_vm4, %vm2946_vm3 }
0x2689   :  { %v2942_v25 = vsub.f32 1.0, %v2941_v57 }
0x268b   :  { %v2943_v42 = vmul.f32 %v3680_v19, %v2942_v25 }
0x268d   :  { %v2944_v34 = vadd.f32 %v3680_v19, %v2943_v42 }
0x268f   :  { %v2948_v0 = vsel %vm2947_vm5, %v3680_v19, %v2944_v34 }
0x2690   :  { %v2953_v16 = vsel %vm2950_vm6, %v2952_v13, %v2948_v0 }
0x2691   :  { %v3030_v18 = vmul.f32 %v3028_v38, %v2953_v16 }
0x26cd   :  { %v3033_v55 = vpop.permute.xlu2 %3032 }
0x26ce   :  { %v3035_v32 = vmul.f32 %v3033_v55, %v2908_v35 }
0x26d0   :  { %3037 = vrot.lane.b32.xlu1 %v3035_v32, %s3843_s1 }
0x26d5   :  { %v3005_v37 = vpop.permute.xlu2 %3004 }
0x26d6   :  { %v3007_v39 = vadd.f32 %v3005_v37, %v4388_v9 }
0x26d8   :  { %v3422_v26 = vmul.f32 -1.442695, %v3007_v39 }
0x2742   :  { %v3038_v24 = vpop.permute.xlu1 %3037 }
0x2743   :  { %v4616_v52 = vadd.f32 %v3038_v24, %v3030_v18 }
0x2745   :  { %3681 = vtanh.f32 %v4616_v52 }
0x2746   :  { %3683 = vpow2.f32 %v3422_v26 }
0x274b   :  { %v3682_v33 = vpop.eup %3681 }
0x274c   :  { %3043 = vrot.lane.b32.xlu0 %v3682_v33, %s3842_s0  ;;  %v3684_v40 = vpop.eup %3683 }
0x274d   :  { %v3011_v27 = vadd.f32 1.0, %v3684_v40 }
0x274f   :  { %3685 = vrcp.f32 %v3011_v27  ;;  %v3023_v1 = vand.u32 2147483648, %v3011_v27  ;;  %vm3017_vm8 = vweird.f32 %v3011_v27  ;;  %v3021_v43 = vand.u32 2147483647, %v3011_v27 }
0x2751   :  { %v3024_v21 = vor.u32 1.1754944e-38, %v3023_v1  ;;  %vm3022_vm10 = vcmp.eq.f32.partialorder %v3021_v43, 8.507059e+37 }
0x2755   :  { %v3686_v41 = vpop.eup %3685 }
0x2756   :  { %v3013_v28 = vmul.f32 %v3686_v41, %v3011_v27  ;;  %vm3018_vm7 = vweird.f32 %v3686_v41 }
0x2757   :  { %vm3019_vm9 = vmor %vm3017_vm8, %vm3018_vm7  ;;  %vm3272_vm7 = vcmask 7168   ;;  %vm2467_vm8 = vcmask 257027  }
0x2758   :  { %v3014_v60 = vsub.f32 1.0, %v3013_v28 }
0x275a   :  { %v3015_v30 = vmul.f32 %v3686_v41, %v3014_v60 }
0x275c   :  { %v3016_v31 = vadd.f32 %v3686_v41, %v3015_v30 }
0x275e   :  { %v3020_v58 = vsel %vm3019_vm9, %v3686_v41, %v3016_v31  ;;  %vm2662_vm9 = vcmask 258052  }
0x275f   :  { %v3025_v2 = vsel %vm3022_vm10, %v3024_v21, %v3020_v58 }
0x27be   :  { %v3044_v3 = vpop.permute.xlu0 %3043 }
0x27bf   :  { %v4621_v4 = vmul.f32 %v3044_v3, %v3025_v2 }
0x27c1   :  { %v3057_v5 = vrot.slane %v4621_v4, 6 }
0x27c3   :  { %3058 = vrot.lane.b32.xlu1 %v3057_v5, %s3843_s1 }
0x2835   :  { %v3059_v11 = vpop.permute.xlu1 %3058 }
0x2836   :  { %3423 = vmatmul.msk.f32.vlgmr.msrb.gmra.mxu2 %vm143_vm2, %v3059_v11  ;;  %3425 = vmatmul.msk.f32.vlgmr.msrb.gmra.mxu3 %vm143_vm2, %v3059_v11 }
0x2837   :  { %3427 = vmatmul.msk.f32.vlgmr.msra.gmra.mxu0 %vm143_vm2, %v3059_v11  ;;  %3428 = vmatmul.msk.f32.vlgmr.msra.gmra.mxu1 %vm143_vm2, %v3059_v11 }
0x28b4   :  { %v3167_v36 = vpop.f32.mrf.mxu0  ;;  %v3194_v6 = vpop.f32.mrf.mxu1 }
0x28b5   :  { %v3171_v20 = vrot.slane %v3167_v36, 1  ;;  %v3198_v48 = vrot.slane %v3194_v6, 1 }
0x28b7   :  { %3172 = vrot.lane.b32.xlu2 %v3171_v20, %s3842_s0 }
0x28b9   :  { %v3122_v15 = vpop.f32.mrf.mxu3  ;;  %v3079_v53 = vpop.f32.mrf.mxu2 }
0x28ba   :  { %v3126_v49 = vrot.slane %v3122_v15, 1  ;;  %v3083_v55 = vrot.slane %v3079_v53, 1 }
0x28bc   :  { %3127 = vrot.lane.b32.xlu1 %v3126_v49, %s3843_s1 }
0x28bf   :  { %1875 = vrot.lane.b32.xlu2 %v3446_v44, %s3844_s3 }
0x2911   :  { %v3173_v23 = vpop.permute.xlu2 %3172 }
0x2912   :  { %v3175_v45 = vadd.f32 %v3173_v23, %v4388_v9 }
0x2914   :  { %3687 = vtanh.f32 %v3175_v45 }
0x2919   :  { %v4637_v46 = vpop.permute.xlu2 %1875 }
0x291a   :  { %v3688_v17 = vpop.eup %3687  ;;  %v1878_v10 = vmul.f32 %v4637_v46, %v4401_v7  ;;  %v2072_v47 = vmul.f32 %v4439_v12, %v4637_v46  ;;  %v2267_v50 = vmul.f32 %v4477_v14, %v4637_v46  ;;  %v3085_v7 = vadd.f32 %v3083_v55, %v4388_v9 }
0x291b   :  { %3227 = vrot.lane.b32.xlu0 %v3688_v17, %s3842_s0  ;;  %v2462_v27 = vmul.f32 %v4515_v54, %v4637_v46  ;;  %v2657_v60 = vmul.f32 %v4569_v56, %v4637_v46  ;;  %v2852_v1 = vmul.f32 %v4599_v51, %v4637_v46  ;;  %v3223_v56 = vrot.slane %v4616_v52, 7 }
0x291c   :  { %v3424_v35 = vmul.f32 -1.442695, %v3085_v7  ;;  %v3047_v53 = vmul.f32 %v4621_v4, %v4637_v46 }
0x291e   :  { %3689 = vpow2.f32 %v3424_v35 }
0x2923   :  { %1880 = vrot.lane.b32.xlu0 %v1878_v10, %s3843_s1 }
0x2924   :  { %v3690_v32 = vpop.eup %3689 }
0x2925   :  { %v3089_v62 = vadd.f32 1.0, %v3690_v32 }
0x2927   :  { %3691 = vrcp.f32 %v3089_v62  ;;  %v3101_v19 = vand.u32 2147483648, %v3089_v62  ;;  %vm3095_vm11 = vweird.f32 %v3089_v62  ;;  %v3099_v14 = vand.u32 2147483647, %v3089_v62 }
0x2929   :  { %v3102_v25 = vor.u32 1.1754944e-38, %v3101_v19  ;;  %vm3100_vm13 = vcmp.eq.f32.partialorder %v3099_v14, 8.507059e+37 }
0x292b   :  { %2074 = vrot.lane.b32.xlu0 %v2072_v47, %s3843_s1 }
0x292d   :  { %v3692_v12 = vpop.eup %3691 }
0x292e   :  { %v3091_v22 = vmul.f32 %v3692_v12, %v3089_v62  ;;  %vm3096_vm2 = vweird.f32 %v3692_v12  ;;  %v3128_v24 = vpop.permute.xlu1 %3127 }
0x292f   :  { %vm3097_vm12 = vmor %vm3095_vm11, %vm3096_vm2  ;;  %v3130_v33 = vadd.f32 %v3128_v24, %v4388_v9 }
0x2930   :  { %v3092_v29 = vsub.f32 1.0, %v3091_v22 }
0x2931   :  { %v3426_v39 = vmul.f32 -1.442695, %v3130_v33 }
0x2932   :  { %v3093_v8 = vmul.f32 %v3692_v12, %v3092_v29 }
0x2933   :  { %3199 = vrot.lane.b32.xlu0 %v3198_v48, %s3844_s3  ;;  %3693 = vpow2.f32 %v3426_v39 }
0x2934   :  { %v3094_v59 = vadd.f32 %v3692_v12, %v3093_v8 }
0x2936   :  { %v3098_v57 = vsel %vm3097_vm12, %v3692_v12, %v3094_v59 }
0x2937   :  { %v3103_v34 = vsel %vm3100_vm13, %v3102_v25, %v3098_v57  ;;  %vm2857_vm13 = vcmask 259077   ;;  %v3845_v57 = vmov 0  }
0x2938   :  { %3440 = vset.pattern.permute.xlu1 %v3845_v57  ;;  %3441 = vset.pattern.permute.xlu0 %v3845_v57 }
0x2939   :  { %v3694_v26 = vpop.eup %3693 }
0x293a   :  { %v3134_v40 = vadd.f32 1.0, %v3694_v26 }
0x293b   :  { %2269 = vrot.lane.b32.xlu0 %v2267_v50, %s3843_s1 }
0x293c   :  { %3695 = vrcp.f32 %v3134_v40  ;;  %v3146_v58 = vand.u32 2147483648, %v3134_v40  ;;  %vm3140_vm4 = vweird.f32 %v3134_v40  ;;  %v3144_v54 = vand.u32 2147483647, %v3134_v40 }
0x293e   :  { %v3147_v2 = vor.u32 1.1754944e-38, %v3146_v58  ;;  %vm3145_vm6 = vcmp.eq.f32.partialorder %v3144_v54, 8.507059e+37 }
0x2942   :  { %v3696_v41 = vpop.eup %3695 }
0x2943   :  { %v3136_v28 = vmul.f32 %v3696_v41, %v3134_v40  ;;  %vm3141_vm3 = vweird.f32 %v3696_v41 }
0x2944   :  { %vm3142_vm5 = vmor %vm3140_vm4, %vm3141_vm3  ;;  %vm3247_vm3 = vcmask 261127   ;;  %vm3279_vm4 = vcmask 39936  }
0x2945   :  { %v3137_v30 = vsub.f32 1.0, %v3136_v28 }
0x2947   :  { %v3138_v31 = vmul.f32 %v3696_v41, %v3137_v30 }
0x2949   :  { %v3139_v43 = vadd.f32 %v3696_v41, %v3138_v31 }
0x294b   :  { %v3143_v21 = vsel %vm3142_vm5, %v3696_v41, %v3139_v43  ;;  %vm3281_vm5 = vcmask 48128  }
0x294c   :  { %v3148_v3 = vsel %vm3145_vm6, %v3147_v2, %v3143_v21  ;;  %vm3293_vm6 = vcmask 57344  }
0x294d   :  { %v3225_v5 = vmul.f32 %v3223_v56, %v3148_v3 }
0x298d   :  { %v3228_v42 = vpop.permute.xlu0 %3227 }
0x298e   :  { %v3230_v61 = vmul.f32 %v3228_v42, %v3103_v34 }
0x2990   :  { %3232 = vrot.lane.b32.xlu2 %v3230_v61, %s3843_s1 }
0x2995   :  { %v1881_v63 = vpop.permute.xlu0 %1880 }
0x2996   :  { %v1884_v0 = vsel %vm1883_vm0, %v1881_v63, 0.0  ;;  %vm3274_vm0 = vcmask 15360  }
0x2997   :  { %1885 = vadd.xlane.f32.xlu1 %v1884_v0 }
0x299d   :  { %v2075_v13 = vpop.permute.xlu0 %2074 }
0x299e   :  { %v2078_v37 = vsel %vm2077_vm15, %v2075_v13, 0.0  ;;  %vm3052_vm15 = vcmask 260102  }
0x29a5   :  { %v3200_v16 = vpop.permute.xlu0 %3199 }
0x29a6   :  { %v3202_v45 = vadd.f32 %v3200_v16, %v4388_v9 }
0x29a8   :  { %v3429_v10 = vmul.f32 -1.442695, %v3202_v45 }
0x29ad   :  { %v2270_v38 = vpop.permute.xlu0 %2269 }
0x29ae   :  { %v2273_v18 = vsel %vm2272_vm14, %v2270_v38, 0.0  ;;  %vm3276_vm14 = vcmask 23552  }
0x29af   :  { %2274 = vadd.xlane.f32.xlu0 %v2273_v18 }
0x29b9   :  { %2079 = vadd.xlane.f32.xlu2 %v2078_v37  ;;  %v3285_v37 = vld [vmem:[#allocation2] sm:$0x1] }
0x29d1   :  { %2464 = vrot.lane.b32.xlu2 %v2462_v27, %s3843_s1 }
0x29d9   :  { %2659 = vrot.lane.b32.xlu2 %v2657_v60, %s3843_s1 }
0x29e1   :  { %2854 = vrot.lane.b32.xlu2 %v2852_v1, %s3843_s1 }
0x29ea   :  { %v3233_v11 = vpop.permute.xlu2 %3232 }
0x29eb   :  { %v3235_v36 = vadd.f32 %v3233_v11, %v3225_v5 }
0x29ed   :  { %3697 = vtanh.f32 %v3235_v36 }
0x29ee   :  { %3699 = vpow2.f32 %v3429_v10 }
0x29f3   :  { %v3698_v20 = vpop.eup %3697 }
0x29f4   :  { %3238 = vrot.lane.b32.xlu1 %v3698_v20, %s3842_s0  ;;  %v3700_v6 = vpop.eup %3699 }
0x29f5   :  { %v3206_v48 = vadd.f32 1.0, %v3700_v6 }
0x29f7   :  { %3701 = vrcp.f32 %v3206_v48  ;;  %v3218_v32 = vand.u32 2147483648, %v3206_v48  ;;  %vm3212_vm2 = vweird.f32 %v3206_v48  ;;  %v3216_v62 = vand.u32 2147483647, %v3206_v48 }
0x29f9   :  { %v3219_v22 = vor.u32 1.1754944e-38, %v3218_v32  ;;  %vm3217_vm12 = vcmp.eq.f32.partialorder %v3216_v62, 8.507059e+37 }
0x29fd   :  { %v3702_v50 = vpop.eup %3701 }
0x29fe   :  { %v3208_v55 = vmul.f32 %v3702_v50, %v3206_v48  ;;  %vm3213_vm10 = vweird.f32 %v3702_v50 }
0x29ff   :  { %vm3214_vm11 = vmor %vm3212_vm2, %vm3213_vm10 }
0x2a00   :  { %v3209_v7 = vsub.f32 1.0, %v3208_v55 }
0x2a02   :  { %v3210_v9 = vmul.f32 %v3702_v50, %v3209_v7 }
0x2a04   :  { %v3211_v35 = vadd.f32 %v3702_v50, %v3210_v9 }
0x2a06   :  { %v3215_v12 = vsel %vm3214_vm11, %v3702_v50, %v3211_v35 }
0x2a07   :  { %v3220_v29 = vsel %vm3217_vm12, %v3219_v22, %v3215_v12 }
0x2a0a   :  { %v1886_v49 = vpop.xlane.xlu1 %1885 }
0x2a22   :  { %v2275_v25 = vpop.xlane.xlu0 %2274 }
0x2a23   :  { %v3255_v61 = vrot.slane %v2275_v25, 2 }
0x2a2c   :  { %v2080_v51 = vpop.xlane.xlu2 %2079 }
0x2a2d   :  { %v3252_v15 = vrot.slane %v2080_v51, 1 }
0x2a2f   :  { %v3273_v44 = vsel %vm3272_vm7, %v1886_v49, %v3252_v15 }
0x2a30   :  { %v3275_v0 = vsel %vm3274_vm0, %v3273_v44, %v3255_v61 }
0x2a34   :  { %v2465_v23 = vpop.permute.xlu2 %2464 }
0x2a35   :  { %v2468_v17 = vsel %vm2467_vm8, %v2465_v23, 0.0 }
0x2a36   :  { %2469 = vadd.xlane.f32.xlu1 %v2468_v17 }
0x2a3c   :  { %v2660_v52 = vpop.permute.xlu2 %2659 }
0x2a3d   :  { %v2663_v47 = vsel %vm2662_vm9, %v2660_v52, 0.0 }
0x2a3e   :  { %2664 = vadd.xlane.f32.xlu0 %v2663_v47 }
0x2a44   :  { %v2855_v4 = vpop.permute.xlu2 %2854 }
0x2a45   :  { %v2858_v14 = vsel %vm2857_vm13, %v2855_v4, 0.0 }
0x2a52   :  { %3049 = vrot.lane.b32.xlu0 %v3047_v53, %s3843_s1 }
0x2a66   :  { %v3239_v8 = vpop.permute.xlu1 %3238 }
0x2a67   :  { %v3241_v59 = vmul.f32 %v3239_v8, %v3220_v29 }
0x2a69   :  { %v3242_v19 = vmul.f32 %v3241_v59, %v4637_v46 }
0x2a6b   :  { %3244 = vrot.lane.b32.xlu2 %v3242_v19, %s3843_s1 }
0x2a94   :  { %2859 = vadd.xlane.f32.xlu2 %v2858_v14 }
0x2aa9   :  { %v2470_v42 = vpop.xlane.xlu1 %2469 }
0x2aaa   :  { %v3258_v34 = vrot.slane %v2470_v42, 3 }
0x2aac   :  { %v3277_v16 = vsel %vm3276_vm14, %v3275_v0, %v3258_v34 }
0x2ab1   :  { %v2665_v63 = vpop.xlane.xlu0 %2664 }
0x2ab2   :  { %v3261_v13 = vrot.slane %v2665_v63, 4 }
0x2ab4   :  { %v3278_v46 = vsel %vm94_vm1, %v3277_v16, %v3261_v13  ;;  %vm3283_vm1 = vcmask 56320  }
0x2ac4   :  { %v3050_v38 = vpop.permute.xlu0 %3049 }
0x2ac5   :  { %v3245_v18 = vpop.permute.xlu2 %3244  ;;  %v3053_v24 = vsel %vm3052_vm15, %v3050_v38, 0.0 }
0x2ac6   :  { %3054 = vadd.xlane.f32.xlu0 %v3053_v24  ;;  %v3248_v33 = vsel %vm3247_vm3, %v3245_v18, 0.0 }
0x2ac7   :  { %3249 = vadd.xlane.f32.xlu1 %v3248_v33 }
0x2ae0   :  { %3288 = vperm.xlu1 %3440, %v3285_v37  }
0x2b07   :  { %v2860_v39 = vpop.xlane.xlu2 %2859 }
0x2b08   :  { %v3264_v27 = vrot.slane %v2860_v39, 5 }
0x2b0a   :  { %v3280_v28 = vsel %vm3279_vm4, %v3278_v46, %v3264_v27 }
0x2b39   :  { %v3055_v26 = vpop.xlane.xlu0 %3054 }
0x2b3a   :  { %v3250_v40 = vpop.xlane.xlu1 %3249  ;;  %v3267_v41 = vrot.slane %v3055_v26, 6 }
0x2b3b   :  { %v3270_v60 = vrot.slane %v3250_v40, 7 }
0x2b3c   :  { %v3282_v30 = vsel %vm3281_vm5, %v3280_v28, %v3267_v41 }
0x2b3d   :  { %v3284_v43 = vsel %vm3283_vm1, %v3282_v30, %v3270_v60 }
0x2b52   :  { %v3289_v31 = vpop.permute.xlu1 %3288 }
0x2b53   :  { %v3291_v1 = vperm.slane %v3289_v31, 0 }
0x2b55   :  { %v3292_v58 = vadd.f32 %v3291_v1, %v3284_v43 }
0x2b57   :  { %3294 = vst.msk [vmem:[#allocation9] sm:$0x1] %vm3293_vm6, %v3292_v58 }
0x2b58   :  { %3305 = dma.vmem_to_hbm [thread:$0]  %s3301_s28, 16, %s3303_s30, [#allocation5]  }
0x2b59   :  { %3835 = dma.done.wait [#allocation5], 16  }
0x2b5a   :  { %3836 = vsyncadd [#allocation5], 4294967280 }
0x2b5b   :  { %3310 = vsyncpa [#allocation4], 1 }
0x2b5c   :  { %3311 = vsyncpa [#allocation7], 1 }
0x2b5d   :  { %3312 = vsyncpa [#allocation5], 1 }

</bundles_post_ra>
